<compile_context>
chip_gen: v5e
topology: v5e:2x2
jax: 0.10.0
libtpu: 0.0.40
codegen_flags: <defaults>
</compile_context>

<pallas_src>
import functools

import jax
import jax.numpy as jnp
from jax.experimental import pallas as pl
from jax.experimental.pallas import tpu as pltpu

# ----------------------------- configuration -----------------------------
BATCH = 2
IMG = 32
PATCH = 16
IN_CH = 3
EMBED = 128          # vit_base would be 768 (multiple of 128 => lane-dense)
HEADS = 4            # vit_base would be 12
DEPTH = 2            # vit_base would be 12
MLP_HIDDEN = 4 * EMBED
HEAD_DIM = EMBED // HEADS
N_PATCH = (IMG // PATCH) ** 2
SEQ = N_PATCH + 1    # +1 for CLS token (real sequence length)
SEQ_PAD = 8          # padded to a sublane multiple; extra keys masked out
LN_EPS = 1e-6        # timm ViT uses LayerNorm(eps=1e-6)


# ---------------------------- in-kernel helpers ----------------------------
def _layernorm(x, gamma, beta, eps):
    """LayerNorm over the last dim of a 2-D f32 value (f32 VPU math)."""
    mean = jnp.mean(x, axis=-1, keepdims=True)
    xc = x - mean
    var = jnp.mean(xc * xc, axis=-1, keepdims=True)
    return xc * jax.lax.rsqrt(var + eps) * gamma + beta


def _gelu_tanh(y):
    # TODO(synk): PyTorch nn.GELU() is exact erf-GELU; tanh approximation used
    # here (EUP tanh has a guaranteed Mosaic lowering, erf does not).
    c = jnp.float32(0.7978845608028654)  # sqrt(2/pi)
    return 0.5 * y * (1.0 + jnp.tanh(c * (y + 0.044715 * y * y * y)))


# ------------------------------- fused kernel ------------------------------
def _maskmol_kernel(patches_ref, patch_w_ref, patch_b_ref, pos_base_ref,
                    hmask_ref, kmask_ref,
                    ln1_g_ref, ln1_b_ref, qkv_w_ref, qkv_b_ref,
                    proj_w_ref, proj_b_ref, ln2_g_ref, ln2_b_ref,
                    fc1_w_ref, fc1_b_ref, fc2_w_ref, fc2_b_ref,
                    norm_g_ref, norm_b_ref, reg_w_ref, reg_b_ref,
                    o_ref, *, batch, n_patch, seq, depth, heads, eps):
    """Entire MaskMol forward pass, fully resident in VMEM.

    patches:[B*N, C*p*p] -> o:[B, 1].  Weights arrive pre-stacked over depth
    (leading axis) and pre-cast to bf16 for the MXU; biases/LN params are f32.
    """
    d_model = patch_w_ref.shape[1]

    # ---- patch embed (bf16 MXU, f32 accum) + CLS + positional embedding ----
    tok = jnp.dot(patches_ref[...].astype(jnp.bfloat16), patch_w_ref[...],
                  preferred_element_type=jnp.float32) + patch_b_ref[...]   # [B*N, D]
    pos_base = pos_base_ref[...]                       # [seq, D]; row0 = cls+pos0
    pad_rows = seq - 1 - n_patch
    per_batch = []
    for b in range(batch):                             # static, B=2
        rows = [pos_base[0:1, :],
                tok[b * n_patch:(b + 1) * n_patch, :] + pos_base[1:1 + n_patch, :]]
        if pad_rows:
            rows.append(jnp.zeros((pad_rows, d_model), jnp.float32))
        per_batch.append(jnp.concatenate(rows, axis=0))
    xs = jnp.concatenate(per_batch, axis=0)            # [B*seq, D], stays resident

    hmask = hmask_ref[...]                             # [H, D] 0/1 head-column masks
    kmask = kmask_ref[...]                             # [1, seq] additive (-1e30 on pad)

    # ---- transformer blocks (static unroll over depth) ----
    for dd in range(depth):
        # attention branch: LN1 -> QKV -> per-head masked softmax(QK^T)V -> proj
        h = _layernorm(xs, ln1_g_ref[dd], ln1_b_ref[dd], eps)
        qkv = jnp.dot(h.astype(jnp.bfloat16), qkv_w_ref[dd],
                      preferred_element_type=jnp.float32) + qkv_b_ref[dd]  # [B*S, 3D]
        # lane-aligned 128-wide slabs only (offsets 0 / D / 2D)
        q_all = qkv[:, 0:d_model]
        k_all = qkv[:, d_model:2 * d_model]
        v_all = qkv[:, 2 * d_model:3 * d_model]

        ctx_rows = []
        for b in range(batch):                         # sublane-aligned row blocks
            r0 = b * seq
            qb = q_all[r0:r0 + seq, :]                 # [S, D] (scale pre-folded)
            kb = k_all[r0:r0 + seq, :].astype(jnp.bfloat16)
            vb = v_all[r0:r0 + seq, :]
            ctx = jnp.zeros((seq, d_model), jnp.float32)
            for hh in range(heads):
                m = hmask[hh:hh + 1, :]                # [1, D] 0/1 mask for this head
                qh = (qb * m).astype(jnp.bfloat16)     # zero non-head columns (VPU)
                # full-width contraction; zeroed columns contribute nothing,
                # so this equals q_h @ k_h^T without any lane-offset slicing.
                s = jax.lax.dot_general(
                    qh, kb, (((1,), (1,)), ((), ())),
                    preferred_element_type=jnp.float32)                    # [S, S]
                s = s + kmask                          # mask padded keys
                s = s - jnp.max(s, axis=-1, keepdims=True)
                p = jnp.exp(s)                         # f32 EUP
                p = p * pl.reciprocal(jnp.sum(p, axis=-1, keepdims=True),
                                      approx=True)
                vh = (vb * m).astype(jnp.bfloat16)     # head-h columns of V
                # p @ vh lands this head's output in its own 32 columns; the
                # accumulate over heads reconstructs the concat'ed [S, D] slab.
                ctx = ctx + jnp.dot(p.astype(jnp.bfloat16), vh,
                                    preferred_element_type=jnp.float32)
            ctx_rows.append(ctx)
        ctx_all = jnp.concatenate(ctx_rows, axis=0)                        # [B*S, D]
        attn = jnp.dot(ctx_all.astype(jnp.bfloat16), proj_w_ref[dd],
                       preferred_element_type=jnp.float32) + proj_b_ref[dd]
        xs = xs + attn                                 # residual (in registers)

        # MLP branch: LN2 -> fc1 + GELU -> fc2 -> residual
        h = _layernorm(xs, ln2_g_ref[dd], ln2_b_ref[dd], eps)
        h = jnp.dot(h.astype(jnp.bfloat16), fc1_w_ref[dd],
                    preferred_element_type=jnp.float32) + fc1_b_ref[dd]
        h = _gelu_tanh(h)
        h = jnp.dot(h.astype(jnp.bfloat16), fc2_w_ref[dd],
                    preferred_element_type=jnp.float32) + fc2_b_ref[dd]
        xs = xs + h

    # ---- final LayerNorm on CLS rows (0, seq, 2*seq, ...) + regressor ----
    cls = jnp.concatenate([xs[b * seq:b * seq + 1, :] for b in range(batch)],
                          axis=0)                                           # [B, D]
    y = _layernorm(cls, norm_g_ref[...], norm_b_ref[...], eps)
    out = jnp.sum(y * reg_w_ref[...], axis=-1, keepdims=True) + reg_b_ref[...]
    o_ref[...] = out.astype(o_ref.dtype)


# --------------------------- model definition -----------------------------
def init_params(key):
    """PyTorch-layout parameters (deterministic random; no timm checkpoint)."""
    def nrm(k, shape, std=0.02):
        return (jax.random.normal(k, shape, jnp.float32) * std).astype(jnp.float32)

    keys = jax.random.split(key, 4 + DEPTH)
    params = {
        # patch embed: Conv2d(3, D, 16, stride=16) flattened to [C*p*p, D]
        "patch_w": nrm(keys[0], (IN_CH * PATCH * PATCH, EMBED)),
        "patch_b": jnp.zeros((EMBED,), jnp.float32),
        "cls_token": nrm(keys[1], (1, 1, EMBED)),
        "pos_embed": nrm(keys[2], (1, SEQ, EMBED)),
        "norm_g": jnp.ones((EMBED,), jnp.float32),
        "norm_b": jnp.zeros((EMBED,), jnp.float32),
        "reg_w": nrm(keys[3], (EMBED, 1)),
        "reg_b": jnp.zeros((1,), jnp.float32),
        "blocks": [],
    }
    for d in range(DEPTH):
        bk = jax.random.split(keys[4 + d], 4)
        params["blocks"].append({
            "ln1_g": jnp.ones((EMBED,), jnp.float32),
            "ln1_b": jnp.zeros((EMBED,), jnp.float32),
            "qkv_w": nrm(bk[0], (EMBED, 3 * EMBED)),
            "qkv_b": jnp.zeros((3 * EMBED,), jnp.float32),
            "proj_w": nrm(bk[1], (EMBED, EMBED)),
            "proj_b": jnp.zeros((EMBED,), jnp.float32),
            "ln2_g": jnp.ones((EMBED,), jnp.float32),
            "ln2_b": jnp.zeros((EMBED,), jnp.float32),
            "fc1_w": nrm(bk[2], (EMBED, MLP_HIDDEN)),
            "fc1_b": jnp.zeros((MLP_HIDDEN,), jnp.float32),
            "fc2_w": nrm(bk[3], (EMBED, EMBED * 4)),
            "fc2_b": jnp.zeros((EMBED,), jnp.float32),
        })
        # correct fc2 shape: [MLP_HIDDEN, EMBED]
        params["blocks"][-1]["fc2_w"] = nrm(bk[3], (MLP_HIDDEN, EMBED))
    return params


def prepare_params(params):
    """Static, one-time host-side preparation: stack per-block weights over a
    depth axis, fold the attention scale into the Q columns, pad pos-embed to
    SEQ_PAD, build head / key masks, and cast matmul weights to bf16."""
    f32, bf16 = jnp.float32, jnp.bfloat16

    pos = params["pos_embed"].reshape(SEQ, EMBED)
    cls = params["cls_token"].reshape(1, EMBED)
    pos_base = jnp.zeros((SEQ_PAD, EMBED), f32)
    pos_base = pos_base.at[0:1, :].set(cls + pos[0:1, :])   # row 0 = CLS + pos[0]
    pos_base = pos_base.at[1:SEQ, :].set(pos[1:SEQ, :])     # padded rows stay 0

    lane = jnp.arange(EMBED, dtype=jnp.int32)
    head_mask = (lane[None, :] // HEAD_DIM ==
                 jnp.arange(HEADS, dtype=jnp.int32)[:, None]).astype(f32)  # [H, D]
    key_mask = jnp.where(jnp.arange(SEQ_PAD) < SEQ, 0.0,
                         -1e30).astype(f32).reshape(1, SEQ_PAD)

    scale = float(HEAD_DIM) ** -0.5
    qcol = jnp.concatenate([jnp.full((EMBED,), scale, f32),
                            jnp.ones((2 * EMBED,), f32)])   # scale only Q columns

    def stack(name):
        return jnp.stack([blk[name] for blk in params["blocks"]], axis=0)

    return dict(
        patch_w=params["patch_w"].astype(bf16),
        patch_b=params["patch_b"].reshape(1, EMBED),
        pos_base=pos_base,
        head_mask=head_mask,
        key_mask=key_mask,
        ln1_g=stack("ln1_g").reshape(DEPTH, 1, EMBED),
        ln1_b=stack("ln1_b").reshape(DEPTH, 1, EMBED),
        qkv_w=(stack("qkv_w") * qcol[None, None, :]).astype(bf16),
        qkv_b=(stack("qkv_b") * qcol[None, :]).reshape(DEPTH, 1, 3 * EMBED),
        proj_w=stack("proj_w").astype(bf16),
        proj_b=stack("proj_b").reshape(DEPTH, 1, EMBED),
        ln2_g=stack("ln2_g").reshape(DEPTH, 1, EMBED),
        ln2_b=stack("ln2_b").reshape(DEPTH, 1, EMBED),
        fc1_w=stack("fc1_w").astype(bf16),
        fc1_b=stack("fc1_b").reshape(DEPTH, 1, MLP_HIDDEN),
        fc2_w=stack("fc2_w").astype(bf16),
        fc2_b=stack("fc2_b").reshape(DEPTH, 1, EMBED),
        norm_g=params["norm_g"].reshape(1, EMBED),
        norm_b=params["norm_b"].reshape(1, EMBED),
        reg_w=params["reg_w"].reshape(1, EMBED),
        reg_b=params["reg_b"].reshape(1, 1),
    )


def maskmol_forward(x, prep):
    """x: NCHW image [B, 3, IMG, IMG] -> regression output [B, 1]."""
    B, C, H, W = x.shape
    p = PATCH
    nh, nw = H // p, W // p
    n_patch = nh * nw

    # unfold (plain-JAX glue): row-major over (C, ph, pw) so it matches the
    # flattened Conv2d(3, D, 16, stride=16) weight layout [D, C*16*16]^T.
    patches = (
        x.reshape(B, C, nh, p, nw, p)
         .transpose(0, 2, 4, 1, 3, 5)          # [B, nh, nw, C, p, p]
         .reshape(B * n_patch, C * p * p)
    )

    kernel = functools.partial(
        _maskmol_kernel, batch=B, n_patch=n_patch, seq=SEQ_PAD,
        depth=DEPTH, heads=HEADS, eps=LN_EPS)

    args = (
        patches, prep["patch_w"], prep["patch_b"], prep["pos_base"],
        prep["head_mask"], prep["key_mask"],
        prep["ln1_g"], prep["ln1_b"], prep["qkv_w"], prep["qkv_b"],
        prep["proj_w"], prep["proj_b"], prep["ln2_g"], prep["ln2_b"],
        prep["fc1_w"], prep["fc1_b"], prep["fc2_w"], prep["fc2_b"],
        prep["norm_g"], prep["norm_b"], prep["reg_w"], prep["reg_b"],
    )

    # One pallas_call for the whole model: every operand is a full-array VMEM
    # block (total < 2 MiB).  At vit_base scale you would instead tile B*S
    # rows with a "parallel" grid axis (v7x: 2 TensorCores) and stream weight
    # tiles / keep them bf16-resident with a raised vmem_limit_bytes.
    return pl.pallas_call(
        kernel,
        out_shape=jax.ShapeDtypeStruct((B, 1), jnp.float32),
        grid=(1,),
        in_specs=[pl.BlockSpec(a.shape, lambda i, n=a.ndim: (0,) * n)
                  for a in args],
        out_specs=pl.BlockSpec((B, 1), lambda i: (0, 0)),
        compiler_params=pltpu.CompilerParams(
            dimension_semantics=("arbitrary",),
            vmem_limit_bytes=32 * 1024 * 1024),
    )(*args)


# --------------------------------- main ------------------------------------
if __name__ == "__main__":
    key = jax.random.PRNGKey(0)
    k_param, k_input = jax.random.split(key)

    params = init_params(k_param)
    prep = prepare_params(params)
    x = jax.random.normal(k_input, (BATCH, IN_CH, IMG, IMG), jnp.float32)

    fwd = jax.jit(maskmol_forward)
    y = fwd(x, prep)
    y = jax.block_until_ready(y)

    assert y.shape == (BATCH, 1), y.shape
    assert y.dtype == jnp.float32
    assert bool(jnp.all(jnp.isfinite(y)))
    print("KERNEL_OK")
</pallas_src>

<mosaic_0001>
module attributes {stable_mosaic.version = 11 : i64} {
  func.func @_maskmol_kernel(%arg0: i32, %arg1: memref<8x768xf32, #tpu.memory_space<vmem>>, %arg2: memref<768x128xbf16, #tpu.memory_space<vmem>>, %arg3: memref<1x128xf32, #tpu.memory_space<vmem>>, %arg4: memref<8x128xf32, #tpu.memory_space<vmem>>, %arg5: memref<4x128xf32, #tpu.memory_space<vmem>>, %arg6: memref<1x8xf32, #tpu.memory_space<vmem>>, %arg7: memref<2x1x128xf32, #tpu.memory_space<vmem>>, %arg8: memref<2x1x128xf32, #tpu.memory_space<vmem>>, %arg9: memref<2x128x384xbf16, #tpu.memory_space<vmem>>, %arg10: memref<2x1x384xf32, #tpu.memory_space<vmem>>, %arg11: memref<2x128x128xbf16, #tpu.memory_space<vmem>>, %arg12: memref<2x1x128xf32, #tpu.memory_space<vmem>>, %arg13: memref<2x1x128xf32, #tpu.memory_space<vmem>>, %arg14: memref<2x1x128xf32, #tpu.memory_space<vmem>>, %arg15: memref<2x128x512xbf16, #tpu.memory_space<vmem>>, %arg16: memref<2x1x512xf32, #tpu.memory_space<vmem>>, %arg17: memref<2x512x128xbf16, #tpu.memory_space<vmem>>, %arg18: memref<2x1x128xf32, #tpu.memory_space<vmem>>, %arg19: memref<1x128xf32, #tpu.memory_space<vmem>>, %arg20: memref<1x128xf32, #tpu.memory_space<vmem>>, %arg21: memref<1x128xf32, #tpu.memory_space<vmem>>, %arg22: memref<1x1xf32, #tpu.memory_space<vmem>>, %arg23: memref<2x1xf32, #tpu.memory_space<vmem>>) attributes {dimension_semantics = [#tpu.dimension_semantics<arbitrary>], iteration_bounds = array<i64: 1>, scalar_prefetch = 0 : i64, scratch_operands = 0 : i64, tpu.core_type = #tpu.core_type<tc>, window_params = [{pipeline_mode = #tpu.pipeline_mode<synchronous>, transform_indices = @transform_0, window_bounds = array<i64: 8, 768>}, {pipeline_mode = #tpu.pipeline_mode<synchronous>, transform_indices = @transform_1, window_bounds = array<i64: 768, 128>}, {pipeline_mode = #tpu.pipeline_mode<synchronous>, transform_indices = @transform_2, window_bounds = array<i64: 1, 128>}, {pipeline_mode = #tpu.pipeline_mode<synchronous>, transform_indices = @transform_3, window_bounds = array<i64: 8, 128>}, {pipeline_mode = #tpu.pipeline_mode<synchronous>, transform_indices = @transform_4, window_bounds = array<i64: 4, 128>}, {pipeline_mode = #tpu.pipeline_mode<synchronous>, transform_indices = @transform_5, window_bounds = array<i64: 1, 8>}, {pipeline_mode = #tpu.pipeline_mode<synchronous>, transform_indices = @transform_6, window_bounds = array<i64: 2, 1, 128>}, {pipeline_mode = #tpu.pipeline_mode<synchronous>, transform_indices = @transform_7, window_bounds = array<i64: 2, 1, 128>}, {pipeline_mode = #tpu.pipeline_mode<synchronous>, transform_indices = @transform_8, window_bounds = array<i64: 2, 128, 384>}, {pipeline_mode = #tpu.pipeline_mode<synchronous>, transform_indices = @transform_9, window_bounds = array<i64: 2, 1, 384>}, {pipeline_mode = #tpu.pipeline_mode<synchronous>, transform_indices = @transform_10, window_bounds = array<i64: 2, 128, 128>}, {pipeline_mode = #tpu.pipeline_mode<synchronous>, transform_indices = @transform_11, window_bounds = array<i64: 2, 1, 128>}, {pipeline_mode = #tpu.pipeline_mode<synchronous>, transform_indices = @transform_12, window_bounds = array<i64: 2, 1, 128>}, {pipeline_mode = #tpu.pipeline_mode<synchronous>, transform_indices = @transform_13, window_bounds = array<i64: 2, 1, 128>}, {pipeline_mode = #tpu.pipeline_mode<synchronous>, transform_indices = @transform_14, window_bounds = array<i64: 2, 128, 512>}, {pipeline_mode = #tpu.pipeline_mode<synchronous>, transform_indices = @transform_15, window_bounds = array<i64: 2, 1, 512>}, {pipeline_mode = #tpu.pipeline_mode<synchronous>, transform_indices = @transform_16, window_bounds = array<i64: 2, 512, 128>}, {pipeline_mode = #tpu.pipeline_mode<synchronous>, transform_indices = @transform_17, window_bounds = array<i64: 2, 1, 128>}, {pipeline_mode = #tpu.pipeline_mode<synchronous>, transform_indices = @transform_18, window_bounds = array<i64: 1, 128>}, {pipeline_mode = #tpu.pipeline_mode<synchronous>, transform_indices = @transform_19, window_bounds = array<i64: 1, 128>}, {pipeline_mode = #tpu.pipeline_mode<synchronous>, transform_indices = @transform_20, window_bounds = array<i64: 1, 128>}, {pipeline_mode = #tpu.pipeline_mode<synchronous>, transform_indices = @transform_21, window_bounds = array<i64: 1, 1>}, {pipeline_mode = #tpu.pipeline_mode<synchronous>, transform_indices = @transform_22, window_bounds = array<i64: 2, 1>}]} {
    %c0 = arith.constant 0 : index
    %c0_0 = arith.constant 0 : index
    %0 = vector.load %arg1[%c0, %c0_0] : memref<8x768xf32, #tpu.memory_space<vmem>>, vector<8x768xf32>
    %1 = arith.truncf %0 : vector<8x768xf32> to vector<8x768xbf16>
    %c0_1 = arith.constant 0 : index
    %c0_2 = arith.constant 0 : index
    %2 = vector.load %arg2[%c0_1, %c0_2] : memref<768x128xbf16, #tpu.memory_space<vmem>>, vector<768x128xbf16>
    %cst = arith.constant dense<0.000000e+00> : vector<8x128xf32>
    %3 = tpu.matmul %1, %2, %cst {dimension_numbers = #tpu.dot_dimension_numbers<[1], [0], [0], [1], [0, 0, 1, 1], [], []>} : vector<8x768xbf16>, vector<768x128xbf16>, vector<8x128xf32> -> vector<8x128xf32>
    %c0_3 = arith.constant 0 : index
    %c0_4 = arith.constant 0 : index
    %4 = vector.load %arg3[%c0_3, %c0_4] : memref<1x128xf32, #tpu.memory_space<vmem>>, vector<1x128xf32>
    %5 = vector.broadcast %4 : vector<1x128xf32> to vector<8x128xf32>
    %6 = arith.addf %3, %5 : vector<8x128xf32>
    %c0_5 = arith.constant 0 : index
    %c0_6 = arith.constant 0 : index
    %7 = vector.load %arg4[%c0_5, %c0_6] : memref<8x128xf32, #tpu.memory_space<vmem>>, vector<8x128xf32>
    %8 = vector.extract_strided_slice %7 {offsets = [0, 0], sizes = [1, 128], strides = [1, 1]} : vector<8x128xf32> to vector<1x128xf32>
    %9 = vector.extract_strided_slice %6 {offsets = [0, 0], sizes = [4, 128], strides = [1, 1]} : vector<8x128xf32> to vector<4x128xf32>
    %10 = vector.extract_strided_slice %7 {offsets = [1, 0], sizes = [4, 128], strides = [1, 1]} : vector<8x128xf32> to vector<4x128xf32>
    %11 = arith.addf %9, %10 : vector<4x128xf32>
    %cst_7 = arith.constant 0.000000e+00 : f32
    %12 = vector.broadcast %cst_7 : f32 to vector<3x128xf32>
    %13 = tpu.concatenate %8, %11, %12 in 0 : vector<1x128xf32>, vector<4x128xf32>, vector<3x128xf32> -> vector<8x128xf32>
    %14 = vector.extract_strided_slice %7 {offsets = [0, 0], sizes = [1, 128], strides = [1, 1]} : vector<8x128xf32> to vector<1x128xf32>
    %15 = vector.extract_strided_slice %6 {offsets = [4, 0], sizes = [4, 128], strides = [1, 1]} : vector<8x128xf32> to vector<4x128xf32>
    %16 = vector.extract_strided_slice %7 {offsets = [1, 0], sizes = [4, 128], strides = [1, 1]} : vector<8x128xf32> to vector<4x128xf32>
    %17 = arith.addf %15, %16 : vector<4x128xf32>
    %cst_8 = arith.constant 0.000000e+00 : f32
    %18 = vector.broadcast %cst_8 : f32 to vector<3x128xf32>
    %19 = tpu.concatenate %14, %17, %18 in 0 : vector<1x128xf32>, vector<4x128xf32>, vector<3x128xf32> -> vector<8x128xf32>
    %20 = tpu.concatenate %13, %19 in 0 : vector<8x128xf32>, vector<8x128xf32> -> vector<16x128xf32>
    %c0_9 = arith.constant 0 : index
    %c0_10 = arith.constant 0 : index
    %21 = vector.load %arg5[%c0_9, %c0_10] : memref<4x128xf32, #tpu.memory_space<vmem>>, vector<4x128xf32>
    %c0_11 = arith.constant 0 : index
    %c0_12 = arith.constant 0 : index
    %22 = vector.load %arg6[%c0_11, %c0_12] : memref<1x8xf32, #tpu.memory_space<vmem>>, vector<1x8xf32>
    %c0_13 = arith.constant 0 : index
    %c0_14 = arith.constant 0 : index
    %c0_15 = arith.constant 0 : index
    %23 = vector.load %arg7[%c0_13, %c0_14, %c0_15] : memref<2x1x128xf32, #tpu.memory_space<vmem>>, vector<1x1x128xf32>
    %24 = vector.shape_cast %23 : vector<1x1x128xf32> to vector<1x128xf32>
    %c0_16 = arith.constant 0 : index
    %c0_17 = arith.constant 0 : index
    %c0_18 = arith.constant 0 : index
    %25 = vector.load %arg8[%c0_16, %c0_17, %c0_18] : memref<2x1x128xf32, #tpu.memory_space<vmem>>, vector<1x1x128xf32>
    %26 = vector.shape_cast %25 : vector<1x1x128xf32> to vector<1x128xf32>
    %cst_19 = arith.constant dense<0.000000e+00> : vector<16xf32>
    %27 = vector.multi_reduction <add>, %20, %cst_19 [1] : vector<16x128xf32> to vector<16xf32>
    %28 = vector.shape_cast %27 : vector<16xf32> to vector<16x1xf32>
    %cst_20 = arith.constant 1.280000e+02 : f32
    %29 = vector.broadcast %cst_20 : f32 to vector<16x1xf32>
    %30 = arith.divf %28, %29 : vector<16x1xf32>
    %31 = vector.broadcast %30 : vector<16x1xf32> to vector<16x128xf32>
    %32 = arith.subf %20, %31 : vector<16x128xf32>
    %33 = arith.mulf %32, %32 : vector<16x128xf32>
    %cst_21 = arith.constant dense<0.000000e+00> : vector<16xf32>
    %34 = vector.multi_reduction <add>, %33, %cst_21 [1] : vector<16x128xf32> to vector<16xf32>
    %35 = vector.shape_cast %34 : vector<16xf32> to vector<16x1xf32>
    %cst_22 = arith.constant 1.280000e+02 : f32
    %36 = vector.broadcast %cst_22 : f32 to vector<16x1xf32>
    %37 = arith.divf %35, %36 : vector<16x1xf32>
    %cst_23 = arith.constant 9.99999997E-7 : f32
    %38 = vector.broadcast %cst_23 : f32 to vector<16x1xf32>
    %39 = arith.addf %37, %38 : vector<16x1xf32>
    %40 = math.rsqrt %39 : vector<16x1xf32>
    %41 = vector.broadcast %40 : vector<16x1xf32> to vector<16x128xf32>
    %42 = arith.mulf %32, %41 : vector<16x128xf32>
    %43 = vector.broadcast %24 : vector<1x128xf32> to vector<16x128xf32>
    %44 = arith.mulf %42, %43 : vector<16x128xf32>
    %45 = vector.broadcast %26 : vector<1x128xf32> to vector<16x128xf32>
    %46 = arith.addf %44, %45 : vector<16x128xf32>
    %47 = arith.truncf %46 : vector<16x128xf32> to vector<16x128xbf16>
    %c0_24 = arith.constant 0 : index
    %c0_25 = arith.constant 0 : index
    %c0_26 = arith.constant 0 : index
    %48 = vector.load %arg9[%c0_24, %c0_25, %c0_26] : memref<2x128x384xbf16, #tpu.memory_space<vmem>>, vector<1x128x384xbf16>
    %49 = vector.shape_cast %48 : vector<1x128x384xbf16> to vector<128x384xbf16>
    %cst_27 = arith.constant dense<0.000000e+00> : vector<16x384xf32>
    %50 = tpu.matmul %47, %49, %cst_27 {dimension_numbers = #tpu.dot_dimension_numbers<[1], [0], [0], [1], [0, 0, 1, 1], [], []>} : vector<16x128xbf16>, vector<128x384xbf16>, vector<16x384xf32> -> vector<16x384xf32>
    %c0_28 = arith.constant 0 : index
    %c0_29 = arith.constant 0 : index
    %c0_30 = arith.constant 0 : index
    %51 = vector.load %arg10[%c0_28, %c0_29, %c0_30] : memref<2x1x384xf32, #tpu.memory_space<vmem>>, vector<1x1x384xf32>
    %52 = vector.shape_cast %51 : vector<1x1x384xf32> to vector<1x384xf32>
    %53 = vector.broadcast %52 : vector<1x384xf32> to vector<16x384xf32>
    %54 = arith.addf %50, %53 : vector<16x384xf32>
    %55 = vector.extract_strided_slice %54 {offsets = [0, 0], sizes = [16, 128], strides = [1, 1]} : vector<16x384xf32> to vector<16x128xf32>
    %56 = vector.extract_strided_slice %54 {offsets = [0, 128], sizes = [16, 128], strides = [1, 1]} : vector<16x384xf32> to vector<16x128xf32>
    %57 = vector.extract_strided_slice %54 {offsets = [0, 256], sizes = [16, 128], strides = [1, 1]} : vector<16x384xf32> to vector<16x128xf32>
    %58 = vector.extract_strided_slice %55 {offsets = [0, 0], sizes = [8, 128], strides = [1, 1]} : vector<16x128xf32> to vector<8x128xf32>
    %59 = vector.extract_strided_slice %56 {offsets = [0, 0], sizes = [8, 128], strides = [1, 1]} : vector<16x128xf32> to vector<8x128xf32>
    %60 = arith.truncf %59 : vector<8x128xf32> to vector<8x128xbf16>
    %61 = vector.extract_strided_slice %57 {offsets = [0, 0], sizes = [8, 128], strides = [1, 1]} : vector<16x128xf32> to vector<8x128xf32>
    %cst_31 = arith.constant 0.000000e+00 : f32
    %62 = vector.broadcast %cst_31 : f32 to vector<8x128xf32>
    %63 = vector.extract_strided_slice %21 {offsets = [0, 0], sizes = [1, 128], strides = [1, 1]} : vector<4x128xf32> to vector<1x128xf32>
    %64 = vector.broadcast %63 : vector<1x128xf32> to vector<8x128xf32>
    %65 = arith.mulf %58, %64 : vector<8x128xf32>
    %66 = arith.truncf %65 : vector<8x128xf32> to vector<8x128xbf16>
    %cst_32 = arith.constant dense<0.000000e+00> : vector<8x8xf32>
    %67 = tpu.matmul %66, %60, %cst_32 {dimension_numbers = #tpu.dot_dimension_numbers<[1], [1], [0], [0], [0, 0, 1, 0], [], []>} : vector<8x128xbf16>, vector<8x128xbf16>, vector<8x8xf32> -> vector<8x8xf32>
    %68 = vector.broadcast %22 : vector<1x8xf32> to vector<8x8xf32>
    %69 = arith.addf %67, %68 : vector<8x8xf32>
    %cst_33 = arith.constant dense<0xFF800000> : vector<8xf32>
    %70 = vector.multi_reduction <maximumf>, %69, %cst_33 [1] : vector<8x8xf32> to vector<8xf32>
    %71 = vector.shape_cast %70 : vector<8xf32> to vector<8x1xf32>
    %72 = vector.broadcast %71 : vector<8x1xf32> to vector<8x8xf32>
    %73 = arith.subf %69, %72 : vector<8x8xf32>
    %74 = math.exp %73 : vector<8x8xf32>
    %cst_34 = arith.constant dense<0.000000e+00> : vector<8xf32>
    %75 = vector.multi_reduction <add>, %74, %cst_34 [1] : vector<8x8xf32> to vector<8xf32>
    %76 = vector.shape_cast %75 : vector<8xf32> to vector<8x1xf32>
    %77 = tpu.reciprocal %76 {approx = true} : vector<8x1xf32> -> vector<8x1xf32>
    %78 = vector.broadcast %77 : vector<8x1xf32> to vector<8x8xf32>
    %79 = arith.mulf %74, %78 : vector<8x8xf32>
    %80 = vector.broadcast %63 : vector<1x128xf32> to vector<8x128xf32>
    %81 = arith.mulf %61, %80 : vector<8x128xf32>
    %82 = arith.truncf %81 : vector<8x128xf32> to vector<8x128xbf16>
    %83 = arith.truncf %79 : vector<8x8xf32> to vector<8x8xbf16>
    %cst_35 = arith.constant dense<0.000000e+00> : vector<8x128xf32>
    %84 = tpu.matmul %83, %82, %cst_35 {dimension_numbers = #tpu.dot_dimension_numbers<[1], [0], [0], [1], [0, 0, 1, 1], [], []>} : vector<8x8xbf16>, vector<8x128xbf16>, vector<8x128xf32> -> vector<8x128xf32>
    %85 = arith.addf %62, %84 : vector<8x128xf32>
    %86 = vector.extract_strided_slice %21 {offsets = [1, 0], sizes = [1, 128], strides = [1, 1]} : vector<4x128xf32> to vector<1x128xf32>
    %87 = vector.broadcast %86 : vector<1x128xf32> to vector<8x128xf32>
    %88 = arith.mulf %58, %87 : vector<8x128xf32>
    %89 = arith.truncf %88 : vector<8x128xf32> to vector<8x128xbf16>
    %cst_36 = arith.constant dense<0.000000e+00> : vector<8x8xf32>
    %90 = tpu.matmul %89, %60, %cst_36 {dimension_numbers = #tpu.dot_dimension_numbers<[1], [1], [0], [0], [0, 0, 1, 0], [], []>} : vector<8x128xbf16>, vector<8x128xbf16>, vector<8x8xf32> -> vector<8x8xf32>
    %91 = vector.broadcast %22 : vector<1x8xf32> to vector<8x8xf32>
    %92 = arith.addf %90, %91 : vector<8x8xf32>
    %cst_37 = arith.constant dense<0xFF800000> : vector<8xf32>
    %93 = vector.multi_reduction <maximumf>, %92, %cst_37 [1] : vector<8x8xf32> to vector<8xf32>
    %94 = vector.shape_cast %93 : vector<8xf32> to vector<8x1xf32>
    %95 = vector.broadcast %94 : vector<8x1xf32> to vector<8x8xf32>
    %96 = arith.subf %92, %95 : vector<8x8xf32>
    %97 = math.exp %96 : vector<8x8xf32>
    %cst_38 = arith.constant dense<0.000000e+00> : vector<8xf32>
    %98 = vector.multi_reduction <add>, %97, %cst_38 [1] : vector<8x8xf32> to vector<8xf32>
    %99 = vector.shape_cast %98 : vector<8xf32> to vector<8x1xf32>
    %100 = tpu.reciprocal %99 {approx = true} : vector<8x1xf32> -> vector<8x1xf32>
    %101 = vector.broadcast %100 : vector<8x1xf32> to vector<8x8xf32>
    %102 = arith.mulf %97, %101 : vector<8x8xf32>
    %103 = vector.broadcast %86 : vector<1x128xf32> to vector<8x128xf32>
    %104 = arith.mulf %61, %103 : vector<8x128xf32>
    %105 = arith.truncf %104 : vector<8x128xf32> to vector<8x128xbf16>
    %106 = arith.truncf %102 : vector<8x8xf32> to vector<8x8xbf16>
    %cst_39 = arith.constant dense<0.000000e+00> : vector<8x128xf32>
    %107 = tpu.matmul %106, %105, %cst_39 {dimension_numbers = #tpu.dot_dimension_numbers<[1], [0], [0], [1], [0, 0, 1, 1], [], []>} : vector<8x8xbf16>, vector<8x128xbf16>, vector<8x128xf32> -> vector<8x128xf32>
    %108 = arith.addf %85, %107 : vector<8x128xf32>
    %109 = vector.extract_strided_slice %21 {offsets = [2, 0], sizes = [1, 128], strides = [1, 1]} : vector<4x128xf32> to vector<1x128xf32>
    %110 = vector.broadcast %109 : vector<1x128xf32> to vector<8x128xf32>
    %111 = arith.mulf %58, %110 : vector<8x128xf32>
    %112 = arith.truncf %111 : vector<8x128xf32> to vector<8x128xbf16>
    %cst_40 = arith.constant dense<0.000000e+00> : vector<8x8xf32>
    %113 = tpu.matmul %112, %60, %cst_40 {dimension_numbers = #tpu.dot_dimension_numbers<[1], [1], [0], [0], [0, 0, 1, 0], [], []>} : vector<8x128xbf16>, vector<8x128xbf16>, vector<8x8xf32> -> vector<8x8xf32>
    %114 = vector.broadcast %22 : vector<1x8xf32> to vector<8x8xf32>
    %115 = arith.addf %113, %114 : vector<8x8xf32>
    %cst_41 = arith.constant dense<0xFF800000> : vector<8xf32>
    %116 = vector.multi_reduction <maximumf>, %115, %cst_41 [1] : vector<8x8xf32> to vector<8xf32>
    %117 = vector.shape_cast %116 : vector<8xf32> to vector<8x1xf32>
    %118 = vector.broadcast %117 : vector<8x1xf32> to vector<8x8xf32>
    %119 = arith.subf %115, %118 : vector<8x8xf32>
    %120 = math.exp %119 : vector<8x8xf32>
    %cst_42 = arith.constant dense<0.000000e+00> : vector<8xf32>
    %121 = vector.multi_reduction <add>, %120, %cst_42 [1] : vector<8x8xf32> to vector<8xf32>
    %122 = vector.shape_cast %121 : vector<8xf32> to vector<8x1xf32>
    %123 = tpu.reciprocal %122 {approx = true} : vector<8x1xf32> -> vector<8x1xf32>
    %124 = vector.broadcast %123 : vector<8x1xf32> to vector<8x8xf32>
    %125 = arith.mulf %120, %124 : vector<8x8xf32>
    %126 = vector.broadcast %109 : vector<1x128xf32> to vector<8x128xf32>
    %127 = arith.mulf %61, %126 : vector<8x128xf32>
    %128 = arith.truncf %127 : vector<8x128xf32> to vector<8x128xbf16>
    %129 = arith.truncf %125 : vector<8x8xf32> to vector<8x8xbf16>
    %cst_43 = arith.constant dense<0.000000e+00> : vector<8x128xf32>
    %130 = tpu.matmul %129, %128, %cst_43 {dimension_numbers = #tpu.dot_dimension_numbers<[1], [0], [0], [1], [0, 0, 1, 1], [], []>} : vector<8x8xbf16>, vector<8x128xbf16>, vector<8x128xf32> -> vector<8x128xf32>
    %131 = arith.addf %108, %130 : vector<8x128xf32>
    %132 = vector.extract_strided_slice %21 {offsets = [3, 0], sizes = [1, 128], strides = [1, 1]} : vector<4x128xf32> to vector<1x128xf32>
    %133 = vector.broadcast %132 : vector<1x128xf32> to vector<8x128xf32>
    %134 = arith.mulf %58, %133 : vector<8x128xf32>
    %135 = arith.truncf %134 : vector<8x128xf32> to vector<8x128xbf16>
    %cst_44 = arith.constant dense<0.000000e+00> : vector<8x8xf32>
    %136 = tpu.matmul %135, %60, %cst_44 {dimension_numbers = #tpu.dot_dimension_numbers<[1], [1], [0], [0], [0, 0, 1, 0], [], []>} : vector<8x128xbf16>, vector<8x128xbf16>, vector<8x8xf32> -> vector<8x8xf32>
    %137 = vector.broadcast %22 : vector<1x8xf32> to vector<8x8xf32>
    %138 = arith.addf %136, %137 : vector<8x8xf32>
    %cst_45 = arith.constant dense<0xFF800000> : vector<8xf32>
    %139 = vector.multi_reduction <maximumf>, %138, %cst_45 [1] : vector<8x8xf32> to vector<8xf32>
    %140 = vector.shape_cast %139 : vector<8xf32> to vector<8x1xf32>
    %141 = vector.broadcast %140 : vector<8x1xf32> to vector<8x8xf32>
    %142 = arith.subf %138, %141 : vector<8x8xf32>
    %143 = math.exp %142 : vector<8x8xf32>
    %cst_46 = arith.constant dense<0.000000e+00> : vector<8xf32>
    %144 = vector.multi_reduction <add>, %143, %cst_46 [1] : vector<8x8xf32> to vector<8xf32>
    %145 = vector.shape_cast %144 : vector<8xf32> to vector<8x1xf32>
    %146 = tpu.reciprocal %145 {approx = true} : vector<8x1xf32> -> vector<8x1xf32>
    %147 = vector.broadcast %146 : vector<8x1xf32> to vector<8x8xf32>
    %148 = arith.mulf %143, %147 : vector<8x8xf32>
    %149 = vector.broadcast %132 : vector<1x128xf32> to vector<8x128xf32>
    %150 = arith.mulf %61, %149 : vector<8x128xf32>
    %151 = arith.truncf %150 : vector<8x128xf32> to vector<8x128xbf16>
    %152 = arith.truncf %148 : vector<8x8xf32> to vector<8x8xbf16>
    %cst_47 = arith.constant dense<0.000000e+00> : vector<8x128xf32>
    %153 = tpu.matmul %152, %151, %cst_47 {dimension_numbers = #tpu.dot_dimension_numbers<[1], [0], [0], [1], [0, 0, 1, 1], [], []>} : vector<8x8xbf16>, vector<8x128xbf16>, vector<8x128xf32> -> vector<8x128xf32>
    %154 = arith.addf %131, %153 : vector<8x128xf32>
    %155 = vector.extract_strided_slice %55 {offsets = [8, 0], sizes = [8, 128], strides = [1, 1]} : vector<16x128xf32> to vector<8x128xf32>
    %156 = vector.extract_strided_slice %56 {offsets = [8, 0], sizes = [8, 128], strides = [1, 1]} : vector<16x128xf32> to vector<8x128xf32>
    %157 = arith.truncf %156 : vector<8x128xf32> to vector<8x128xbf16>
    %158 = vector.extract_strided_slice %57 {offsets = [8, 0], sizes = [8, 128], strides = [1, 1]} : vector<16x128xf32> to vector<8x128xf32>
    %cst_48 = arith.constant 0.000000e+00 : f32
    %159 = vector.broadcast %cst_48 : f32 to vector<8x128xf32>
    %160 = vector.extract_strided_slice %21 {offsets = [0, 0], sizes = [1, 128], strides = [1, 1]} : vector<4x128xf32> to vector<1x128xf32>
    %161 = vector.broadcast %160 : vector<1x128xf32> to vector<8x128xf32>
    %162 = arith.mulf %155, %161 : vector<8x128xf32>
    %163 = arith.truncf %162 : vector<8x128xf32> to vector<8x128xbf16>
    %cst_49 = arith.constant dense<0.000000e+00> : vector<8x8xf32>
    %164 = tpu.matmul %163, %157, %cst_49 {dimension_numbers = #tpu.dot_dimension_numbers<[1], [1], [0], [0], [0, 0, 1, 0], [], []>} : vector<8x128xbf16>, vector<8x128xbf16>, vector<8x8xf32> -> vector<8x8xf32>
    %165 = vector.broadcast %22 : vector<1x8xf32> to vector<8x8xf32>
    %166 = arith.addf %164, %165 : vector<8x8xf32>
    %cst_50 = arith.constant dense<0xFF800000> : vector<8xf32>
    %167 = vector.multi_reduction <maximumf>, %166, %cst_50 [1] : vector<8x8xf32> to vector<8xf32>
    %168 = vector.shape_cast %167 : vector<8xf32> to vector<8x1xf32>
    %169 = vector.broadcast %168 : vector<8x1xf32> to vector<8x8xf32>
    %170 = arith.subf %166, %169 : vector<8x8xf32>
    %171 = math.exp %170 : vector<8x8xf32>
    %cst_51 = arith.constant dense<0.000000e+00> : vector<8xf32>
    %172 = vector.multi_reduction <add>, %171, %cst_51 [1] : vector<8x8xf32> to vector<8xf32>
    %173 = vector.shape_cast %172 : vector<8xf32> to vector<8x1xf32>
    %174 = tpu.reciprocal %173 {approx = true} : vector<8x1xf32> -> vector<8x1xf32>
    %175 = vector.broadcast %174 : vector<8x1xf32> to vector<8x8xf32>
    %176 = arith.mulf %171, %175 : vector<8x8xf32>
    %177 = vector.broadcast %160 : vector<1x128xf32> to vector<8x128xf32>
    %178 = arith.mulf %158, %177 : vector<8x128xf32>
    %179 = arith.truncf %178 : vector<8x128xf32> to vector<8x128xbf16>
    %180 = arith.truncf %176 : vector<8x8xf32> to vector<8x8xbf16>
    %cst_52 = arith.constant dense<0.000000e+00> : vector<8x128xf32>
    %181 = tpu.matmul %180, %179, %cst_52 {dimension_numbers = #tpu.dot_dimension_numbers<[1], [0], [0], [1], [0, 0, 1, 1], [], []>} : vector<8x8xbf16>, vector<8x128xbf16>, vector<8x128xf32> -> vector<8x128xf32>
    %182 = arith.addf %159, %181 : vector<8x128xf32>
    %183 = vector.extract_strided_slice %21 {offsets = [1, 0], sizes = [1, 128], strides = [1, 1]} : vector<4x128xf32> to vector<1x128xf32>
    %184 = vector.broadcast %183 : vector<1x128xf32> to vector<8x128xf32>
    %185 = arith.mulf %155, %184 : vector<8x128xf32>
    %186 = arith.truncf %185 : vector<8x128xf32> to vector<8x128xbf16>
    %cst_53 = arith.constant dense<0.000000e+00> : vector<8x8xf32>
    %187 = tpu.matmul %186, %157, %cst_53 {dimension_numbers = #tpu.dot_dimension_numbers<[1], [1], [0], [0], [0, 0, 1, 0], [], []>} : vector<8x128xbf16>, vector<8x128xbf16>, vector<8x8xf32> -> vector<8x8xf32>
    %188 = vector.broadcast %22 : vector<1x8xf32> to vector<8x8xf32>
    %189 = arith.addf %187, %188 : vector<8x8xf32>
    %cst_54 = arith.constant dense<0xFF800000> : vector<8xf32>
    %190 = vector.multi_reduction <maximumf>, %189, %cst_54 [1] : vector<8x8xf32> to vector<8xf32>
    %191 = vector.shape_cast %190 : vector<8xf32> to vector<8x1xf32>
    %192 = vector.broadcast %191 : vector<8x1xf32> to vector<8x8xf32>
    %193 = arith.subf %189, %192 : vector<8x8xf32>
    %194 = math.exp %193 : vector<8x8xf32>
    %cst_55 = arith.constant dense<0.000000e+00> : vector<8xf32>
    %195 = vector.multi_reduction <add>, %194, %cst_55 [1] : vector<8x8xf32> to vector<8xf32>
    %196 = vector.shape_cast %195 : vector<8xf32> to vector<8x1xf32>
    %197 = tpu.reciprocal %196 {approx = true} : vector<8x1xf32> -> vector<8x1xf32>
    %198 = vector.broadcast %197 : vector<8x1xf32> to vector<8x8xf32>
    %199 = arith.mulf %194, %198 : vector<8x8xf32>
    %200 = vector.broadcast %183 : vector<1x128xf32> to vector<8x128xf32>
    %201 = arith.mulf %158, %200 : vector<8x128xf32>
    %202 = arith.truncf %201 : vector<8x128xf32> to vector<8x128xbf16>
    %203 = arith.truncf %199 : vector<8x8xf32> to vector<8x8xbf16>
    %cst_56 = arith.constant dense<0.000000e+00> : vector<8x128xf32>
    %204 = tpu.matmul %203, %202, %cst_56 {dimension_numbers = #tpu.dot_dimension_numbers<[1], [0], [0], [1], [0, 0, 1, 1], [], []>} : vector<8x8xbf16>, vector<8x128xbf16>, vector<8x128xf32> -> vector<8x128xf32>
    %205 = arith.addf %182, %204 : vector<8x128xf32>
    %206 = vector.extract_strided_slice %21 {offsets = [2, 0], sizes = [1, 128], strides = [1, 1]} : vector<4x128xf32> to vector<1x128xf32>
    %207 = vector.broadcast %206 : vector<1x128xf32> to vector<8x128xf32>
    %208 = arith.mulf %155, %207 : vector<8x128xf32>
    %209 = arith.truncf %208 : vector<8x128xf32> to vector<8x128xbf16>
    %cst_57 = arith.constant dense<0.000000e+00> : vector<8x8xf32>
    %210 = tpu.matmul %209, %157, %cst_57 {dimension_numbers = #tpu.dot_dimension_numbers<[1], [1], [0], [0], [0, 0, 1, 0], [], []>} : vector<8x128xbf16>, vector<8x128xbf16>, vector<8x8xf32> -> vector<8x8xf32>
    %211 = vector.broadcast %22 : vector<1x8xf32> to vector<8x8xf32>
    %212 = arith.addf %210, %211 : vector<8x8xf32>
    %cst_58 = arith.constant dense<0xFF800000> : vector<8xf32>
    %213 = vector.multi_reduction <maximumf>, %212, %cst_58 [1] : vector<8x8xf32> to vector<8xf32>
    %214 = vector.shape_cast %213 : vector<8xf32> to vector<8x1xf32>
    %215 = vector.broadcast %214 : vector<8x1xf32> to vector<8x8xf32>
    %216 = arith.subf %212, %215 : vector<8x8xf32>
    %217 = math.exp %216 : vector<8x8xf32>
    %cst_59 = arith.constant dense<0.000000e+00> : vector<8xf32>
    %218 = vector.multi_reduction <add>, %217, %cst_59 [1] : vector<8x8xf32> to vector<8xf32>
    %219 = vector.shape_cast %218 : vector<8xf32> to vector<8x1xf32>
    %220 = tpu.reciprocal %219 {approx = true} : vector<8x1xf32> -> vector<8x1xf32>
    %221 = vector.broadcast %220 : vector<8x1xf32> to vector<8x8xf32>
    %222 = arith.mulf %217, %221 : vector<8x8xf32>
    %223 = vector.broadcast %206 : vector<1x128xf32> to vector<8x128xf32>
    %224 = arith.mulf %158, %223 : vector<8x128xf32>
    %225 = arith.truncf %224 : vector<8x128xf32> to vector<8x128xbf16>
    %226 = arith.truncf %222 : vector<8x8xf32> to vector<8x8xbf16>
    %cst_60 = arith.constant dense<0.000000e+00> : vector<8x128xf32>
    %227 = tpu.matmul %226, %225, %cst_60 {dimension_numbers = #tpu.dot_dimension_numbers<[1], [0], [0], [1], [0, 0, 1, 1], [], []>} : vector<8x8xbf16>, vector<8x128xbf16>, vector<8x128xf32> -> vector<8x128xf32>
    %228 = arith.addf %205, %227 : vector<8x128xf32>
    %229 = vector.extract_strided_slice %21 {offsets = [3, 0], sizes = [1, 128], strides = [1, 1]} : vector<4x128xf32> to vector<1x128xf32>
    %230 = vector.broadcast %229 : vector<1x128xf32> to vector<8x128xf32>
    %231 = arith.mulf %155, %230 : vector<8x128xf32>
    %232 = arith.truncf %231 : vector<8x128xf32> to vector<8x128xbf16>
    %cst_61 = arith.constant dense<0.000000e+00> : vector<8x8xf32>
    %233 = tpu.matmul %232, %157, %cst_61 {dimension_numbers = #tpu.dot_dimension_numbers<[1], [1], [0], [0], [0, 0, 1, 0], [], []>} : vector<8x128xbf16>, vector<8x128xbf16>, vector<8x8xf32> -> vector<8x8xf32>
    %234 = vector.broadcast %22 : vector<1x8xf32> to vector<8x8xf32>
    %235 = arith.addf %233, %234 : vector<8x8xf32>
    %cst_62 = arith.constant dense<0xFF800000> : vector<8xf32>
    %236 = vector.multi_reduction <maximumf>, %235, %cst_62 [1] : vector<8x8xf32> to vector<8xf32>
    %237 = vector.shape_cast %236 : vector<8xf32> to vector<8x1xf32>
    %238 = vector.broadcast %237 : vector<8x1xf32> to vector<8x8xf32>
    %239 = arith.subf %235, %238 : vector<8x8xf32>
    %240 = math.exp %239 : vector<8x8xf32>
    %cst_63 = arith.constant dense<0.000000e+00> : vector<8xf32>
    %241 = vector.multi_reduction <add>, %240, %cst_63 [1] : vector<8x8xf32> to vector<8xf32>
    %242 = vector.shape_cast %241 : vector<8xf32> to vector<8x1xf32>
    %243 = tpu.reciprocal %242 {approx = true} : vector<8x1xf32> -> vector<8x1xf32>
    %244 = vector.broadcast %243 : vector<8x1xf32> to vector<8x8xf32>
    %245 = arith.mulf %240, %244 : vector<8x8xf32>
    %246 = vector.broadcast %229 : vector<1x128xf32> to vector<8x128xf32>
    %247 = arith.mulf %158, %246 : vector<8x128xf32>
    %248 = arith.truncf %247 : vector<8x128xf32> to vector<8x128xbf16>
    %249 = arith.truncf %245 : vector<8x8xf32> to vector<8x8xbf16>
    %cst_64 = arith.constant dense<0.000000e+00> : vector<8x128xf32>
    %250 = tpu.matmul %249, %248, %cst_64 {dimension_numbers = #tpu.dot_dimension_numbers<[1], [0], [0], [1], [0, 0, 1, 1], [], []>} : vector<8x8xbf16>, vector<8x128xbf16>, vector<8x128xf32> -> vector<8x128xf32>
    %251 = arith.addf %228, %250 : vector<8x128xf32>
    %252 = tpu.concatenate %154, %251 in 0 : vector<8x128xf32>, vector<8x128xf32> -> vector<16x128xf32>
    %253 = arith.truncf %252 : vector<16x128xf32> to vector<16x128xbf16>
    %c0_65 = arith.constant 0 : index
    %c0_66 = arith.constant 0 : index
    %c0_67 = arith.constant 0 : index
    %254 = vector.load %arg11[%c0_65, %c0_66, %c0_67] : memref<2x128x128xbf16, #tpu.memory_space<vmem>>, vector<1x128x128xbf16>
    %255 = vector.shape_cast %254 : vector<1x128x128xbf16> to vector<128x128xbf16>
    %cst_68 = arith.constant dense<0.000000e+00> : vector<16x128xf32>
    %256 = tpu.matmul %253, %255, %cst_68 {dimension_numbers = #tpu.dot_dimension_numbers<[1], [0], [0], [1], [0, 0, 1, 1], [], []>} : vector<16x128xbf16>, vector<128x128xbf16>, vector<16x128xf32> -> vector<16x128xf32>
    %c0_69 = arith.constant 0 : index
    %c0_70 = arith.constant 0 : index
    %c0_71 = arith.constant 0 : index
    %257 = vector.load %arg12[%c0_69, %c0_70, %c0_71] : memref<2x1x128xf32, #tpu.memory_space<vmem>>, vector<1x1x128xf32>
    %258 = vector.shape_cast %257 : vector<1x1x128xf32> to vector<1x128xf32>
    %259 = vector.broadcast %258 : vector<1x128xf32> to vector<16x128xf32>
    %260 = arith.addf %256, %259 : vector<16x128xf32>
    %261 = arith.addf %20, %260 : vector<16x128xf32>
    %c0_72 = arith.constant 0 : index
    %c0_73 = arith.constant 0 : index
    %c0_74 = arith.constant 0 : index
    %262 = vector.load %arg13[%c0_72, %c0_73, %c0_74] : memref<2x1x128xf32, #tpu.memory_space<vmem>>, vector<1x1x128xf32>
    %263 = vector.shape_cast %262 : vector<1x1x128xf32> to vector<1x128xf32>
    %c0_75 = arith.constant 0 : index
    %c0_76 = arith.constant 0 : index
    %c0_77 = arith.constant 0 : index
    %264 = vector.load %arg14[%c0_75, %c0_76, %c0_77] : memref<2x1x128xf32, #tpu.memory_space<vmem>>, vector<1x1x128xf32>
    %265 = vector.shape_cast %264 : vector<1x1x128xf32> to vector<1x128xf32>
    %cst_78 = arith.constant dense<0.000000e+00> : vector<16xf32>
    %266 = vector.multi_reduction <add>, %261, %cst_78 [1] : vector<16x128xf32> to vector<16xf32>
    %267 = vector.shape_cast %266 : vector<16xf32> to vector<16x1xf32>
    %cst_79 = arith.constant 1.280000e+02 : f32
    %268 = vector.broadcast %cst_79 : f32 to vector<16x1xf32>
    %269 = arith.divf %267, %268 : vector<16x1xf32>
    %270 = vector.broadcast %269 : vector<16x1xf32> to vector<16x128xf32>
    %271 = arith.subf %261, %270 : vector<16x128xf32>
    %272 = arith.mulf %271, %271 : vector<16x128xf32>
    %cst_80 = arith.constant dense<0.000000e+00> : vector<16xf32>
    %273 = vector.multi_reduction <add>, %272, %cst_80 [1] : vector<16x128xf32> to vector<16xf32>
    %274 = vector.shape_cast %273 : vector<16xf32> to vector<16x1xf32>
    %cst_81 = arith.constant 1.280000e+02 : f32
    %275 = vector.broadcast %cst_81 : f32 to vector<16x1xf32>
    %276 = arith.divf %274, %275 : vector<16x1xf32>
    %cst_82 = arith.constant 9.99999997E-7 : f32
    %277 = vector.broadcast %cst_82 : f32 to vector<16x1xf32>
    %278 = arith.addf %276, %277 : vector<16x1xf32>
    %279 = math.rsqrt %278 : vector<16x1xf32>
    %280 = vector.broadcast %279 : vector<16x1xf32> to vector<16x128xf32>
    %281 = arith.mulf %271, %280 : vector<16x128xf32>
    %282 = vector.broadcast %263 : vector<1x128xf32> to vector<16x128xf32>
    %283 = arith.mulf %281, %282 : vector<16x128xf32>
    %284 = vector.broadcast %265 : vector<1x128xf32> to vector<16x128xf32>
    %285 = arith.addf %283, %284 : vector<16x128xf32>
    %286 = arith.truncf %285 : vector<16x128xf32> to vector<16x128xbf16>
    %c0_83 = arith.constant 0 : index
    %c0_84 = arith.constant 0 : index
    %c0_85 = arith.constant 0 : index
    %287 = vector.load %arg15[%c0_83, %c0_84, %c0_85] : memref<2x128x512xbf16, #tpu.memory_space<vmem>>, vector<1x128x512xbf16>
    %288 = vector.shape_cast %287 : vector<1x128x512xbf16> to vector<128x512xbf16>
    %cst_86 = arith.constant dense<0.000000e+00> : vector<16x512xf32>
    %289 = tpu.matmul %286, %288, %cst_86 {dimension_numbers = #tpu.dot_dimension_numbers<[1], [0], [0], [1], [0, 0, 1, 1], [], []>} : vector<16x128xbf16>, vector<128x512xbf16>, vector<16x512xf32> -> vector<16x512xf32>
    %c0_87 = arith.constant 0 : index
    %c0_88 = arith.constant 0 : index
    %c0_89 = arith.constant 0 : index
    %290 = vector.load %arg16[%c0_87, %c0_88, %c0_89] : memref<2x1x512xf32, #tpu.memory_space<vmem>>, vector<1x1x512xf32>
    %291 = vector.shape_cast %290 : vector<1x1x512xf32> to vector<1x512xf32>
    %292 = vector.broadcast %291 : vector<1x512xf32> to vector<16x512xf32>
    %293 = arith.addf %289, %292 : vector<16x512xf32>
    %cst_90 = arith.constant 5.000000e-01 : f32
    %294 = vector.broadcast %cst_90 : f32 to vector<16x512xf32>
    %295 = arith.mulf %294, %293 : vector<16x512xf32>
    %cst_91 = arith.constant 4.471500e-02 : f32
    %296 = vector.broadcast %cst_91 : f32 to vector<16x512xf32>
    %297 = arith.mulf %296, %293 : vector<16x512xf32>
    %298 = arith.mulf %297, %293 : vector<16x512xf32>
    %299 = arith.mulf %298, %293 : vector<16x512xf32>
    %300 = arith.addf %293, %299 : vector<16x512xf32>
    %cst_92 = arith.constant 0.797884583 : f32
    %301 = vector.broadcast %cst_92 : f32 to vector<16x512xf32>
    %302 = arith.mulf %301, %300 : vector<16x512xf32>
    %303 = math.tanh %302 : vector<16x512xf32>
    %cst_93 = arith.constant 1.000000e+00 : f32
    %304 = vector.broadcast %cst_93 : f32 to vector<16x512xf32>
    %305 = arith.addf %304, %303 : vector<16x512xf32>
    %306 = arith.mulf %295, %305 : vector<16x512xf32>
    %307 = arith.truncf %306 : vector<16x512xf32> to vector<16x512xbf16>
    %c0_94 = arith.constant 0 : index
    %c0_95 = arith.constant 0 : index
    %c0_96 = arith.constant 0 : index
    %308 = vector.load %arg17[%c0_94, %c0_95, %c0_96] : memref<2x512x128xbf16, #tpu.memory_space<vmem>>, vector<1x512x128xbf16>
    %309 = vector.shape_cast %308 : vector<1x512x128xbf16> to vector<512x128xbf16>
    %cst_97 = arith.constant dense<0.000000e+00> : vector<16x128xf32>
    %310 = tpu.matmul %307, %309, %cst_97 {dimension_numbers = #tpu.dot_dimension_numbers<[1], [0], [0], [1], [0, 0, 1, 1], [], []>} : vector<16x512xbf16>, vector<512x128xbf16>, vector<16x128xf32> -> vector<16x128xf32>
    %c0_98 = arith.constant 0 : index
    %c0_99 = arith.constant 0 : index
    %c0_100 = arith.constant 0 : index
    %311 = vector.load %arg18[%c0_98, %c0_99, %c0_100] : memref<2x1x128xf32, #tpu.memory_space<vmem>>, vector<1x1x128xf32>
    %312 = vector.shape_cast %311 : vector<1x1x128xf32> to vector<1x128xf32>
    %313 = vector.broadcast %312 : vector<1x128xf32> to vector<16x128xf32>
    %314 = arith.addf %310, %313 : vector<16x128xf32>
    %315 = arith.addf %261, %314 : vector<16x128xf32>
    %c1 = arith.constant 1 : index
    %c0_101 = arith.constant 0 : index
    %c0_102 = arith.constant 0 : index
    %316 = vector.load %arg7[%c1, %c0_101, %c0_102] : memref<2x1x128xf32, #tpu.memory_space<vmem>>, vector<1x1x128xf32>
    %317 = vector.shape_cast %316 : vector<1x1x128xf32> to vector<1x128xf32>
    %c1_103 = arith.constant 1 : index
    %c0_104 = arith.constant 0 : index
    %c0_105 = arith.constant 0 : index
    %318 = vector.load %arg8[%c1_103, %c0_104, %c0_105] : memref<2x1x128xf32, #tpu.memory_space<vmem>>, vector<1x1x128xf32>
    %319 = vector.shape_cast %318 : vector<1x1x128xf32> to vector<1x128xf32>
    %cst_106 = arith.constant dense<0.000000e+00> : vector<16xf32>
    %320 = vector.multi_reduction <add>, %315, %cst_106 [1] : vector<16x128xf32> to vector<16xf32>
    %321 = vector.shape_cast %320 : vector<16xf32> to vector<16x1xf32>
    %cst_107 = arith.constant 1.280000e+02 : f32
    %322 = vector.broadcast %cst_107 : f32 to vector<16x1xf32>
    %323 = arith.divf %321, %322 : vector<16x1xf32>
    %324 = vector.broadcast %323 : vector<16x1xf32> to vector<16x128xf32>
    %325 = arith.subf %315, %324 : vector<16x128xf32>
    %326 = arith.mulf %325, %325 : vector<16x128xf32>
    %cst_108 = arith.constant dense<0.000000e+00> : vector<16xf32>
    %327 = vector.multi_reduction <add>, %326, %cst_108 [1] : vector<16x128xf32> to vector<16xf32>
    %328 = vector.shape_cast %327 : vector<16xf32> to vector<16x1xf32>
    %cst_109 = arith.constant 1.280000e+02 : f32
    %329 = vector.broadcast %cst_109 : f32 to vector<16x1xf32>
    %330 = arith.divf %328, %329 : vector<16x1xf32>
    %cst_110 = arith.constant 9.99999997E-7 : f32
    %331 = vector.broadcast %cst_110 : f32 to vector<16x1xf32>
    %332 = arith.addf %330, %331 : vector<16x1xf32>
    %333 = math.rsqrt %332 : vector<16x1xf32>
    %334 = vector.broadcast %333 : vector<16x1xf32> to vector<16x128xf32>
    %335 = arith.mulf %325, %334 : vector<16x128xf32>
    %336 = vector.broadcast %317 : vector<1x128xf32> to vector<16x128xf32>
    %337 = arith.mulf %335, %336 : vector<16x128xf32>
    %338 = vector.broadcast %319 : vector<1x128xf32> to vector<16x128xf32>
    %339 = arith.addf %337, %338 : vector<16x128xf32>
    %340 = arith.truncf %339 : vector<16x128xf32> to vector<16x128xbf16>
    %c1_111 = arith.constant 1 : index
    %c0_112 = arith.constant 0 : index
    %c0_113 = arith.constant 0 : index
    %341 = vector.load %arg9[%c1_111, %c0_112, %c0_113] : memref<2x128x384xbf16, #tpu.memory_space<vmem>>, vector<1x128x384xbf16>
    %342 = vector.shape_cast %341 : vector<1x128x384xbf16> to vector<128x384xbf16>
    %cst_114 = arith.constant dense<0.000000e+00> : vector<16x384xf32>
    %343 = tpu.matmul %340, %342, %cst_114 {dimension_numbers = #tpu.dot_dimension_numbers<[1], [0], [0], [1], [0, 0, 1, 1], [], []>} : vector<16x128xbf16>, vector<128x384xbf16>, vector<16x384xf32> -> vector<16x384xf32>
    %c1_115 = arith.constant 1 : index
    %c0_116 = arith.constant 0 : index
    %c0_117 = arith.constant 0 : index
    %344 = vector.load %arg10[%c1_115, %c0_116, %c0_117] : memref<2x1x384xf32, #tpu.memory_space<vmem>>, vector<1x1x384xf32>
    %345 = vector.shape_cast %344 : vector<1x1x384xf32> to vector<1x384xf32>
    %346 = vector.broadcast %345 : vector<1x384xf32> to vector<16x384xf32>
    %347 = arith.addf %343, %346 : vector<16x384xf32>
    %348 = vector.extract_strided_slice %347 {offsets = [0, 0], sizes = [16, 128], strides = [1, 1]} : vector<16x384xf32> to vector<16x128xf32>
    %349 = vector.extract_strided_slice %347 {offsets = [0, 128], sizes = [16, 128], strides = [1, 1]} : vector<16x384xf32> to vector<16x128xf32>
    %350 = vector.extract_strided_slice %347 {offsets = [0, 256], sizes = [16, 128], strides = [1, 1]} : vector<16x384xf32> to vector<16x128xf32>
    %351 = vector.extract_strided_slice %348 {offsets = [0, 0], sizes = [8, 128], strides = [1, 1]} : vector<16x128xf32> to vector<8x128xf32>
    %352 = vector.extract_strided_slice %349 {offsets = [0, 0], sizes = [8, 128], strides = [1, 1]} : vector<16x128xf32> to vector<8x128xf32>
    %353 = arith.truncf %352 : vector<8x128xf32> to vector<8x128xbf16>
    %354 = vector.extract_strided_slice %350 {offsets = [0, 0], sizes = [8, 128], strides = [1, 1]} : vector<16x128xf32> to vector<8x128xf32>
    %cst_118 = arith.constant 0.000000e+00 : f32
    %355 = vector.broadcast %cst_118 : f32 to vector<8x128xf32>
    %356 = vector.extract_strided_slice %21 {offsets = [0, 0], sizes = [1, 128], strides = [1, 1]} : vector<4x128xf32> to vector<1x128xf32>
    %357 = vector.broadcast %356 : vector<1x128xf32> to vector<8x128xf32>
    %358 = arith.mulf %351, %357 : vector<8x128xf32>
    %359 = arith.truncf %358 : vector<8x128xf32> to vector<8x128xbf16>
    %cst_119 = arith.constant dense<0.000000e+00> : vector<8x8xf32>
    %360 = tpu.matmul %359, %353, %cst_119 {dimension_numbers = #tpu.dot_dimension_numbers<[1], [1], [0], [0], [0, 0, 1, 0], [], []>} : vector<8x128xbf16>, vector<8x128xbf16>, vector<8x8xf32> -> vector<8x8xf32>
    %361 = vector.broadcast %22 : vector<1x8xf32> to vector<8x8xf32>
    %362 = arith.addf %360, %361 : vector<8x8xf32>
    %cst_120 = arith.constant dense<0xFF800000> : vector<8xf32>
    %363 = vector.multi_reduction <maximumf>, %362, %cst_120 [1] : vector<8x8xf32> to vector<8xf32>
    %364 = vector.shape_cast %363 : vector<8xf32> to vector<8x1xf32>
    %365 = vector.broadcast %364 : vector<8x1xf32> to vector<8x8xf32>
    %366 = arith.subf %362, %365 : vector<8x8xf32>
    %367 = math.exp %366 : vector<8x8xf32>
    %cst_121 = arith.constant dense<0.000000e+00> : vector<8xf32>
    %368 = vector.multi_reduction <add>, %367, %cst_121 [1] : vector<8x8xf32> to vector<8xf32>
    %369 = vector.shape_cast %368 : vector<8xf32> to vector<8x1xf32>
    %370 = tpu.reciprocal %369 {approx = true} : vector<8x1xf32> -> vector<8x1xf32>
    %371 = vector.broadcast %370 : vector<8x1xf32> to vector<8x8xf32>
    %372 = arith.mulf %367, %371 : vector<8x8xf32>
    %373 = vector.broadcast %356 : vector<1x128xf32> to vector<8x128xf32>
    %374 = arith.mulf %354, %373 : vector<8x128xf32>
    %375 = arith.truncf %374 : vector<8x128xf32> to vector<8x128xbf16>
    %376 = arith.truncf %372 : vector<8x8xf32> to vector<8x8xbf16>
    %cst_122 = arith.constant dense<0.000000e+00> : vector<8x128xf32>
    %377 = tpu.matmul %376, %375, %cst_122 {dimension_numbers = #tpu.dot_dimension_numbers<[1], [0], [0], [1], [0, 0, 1, 1], [], []>} : vector<8x8xbf16>, vector<8x128xbf16>, vector<8x128xf32> -> vector<8x128xf32>
    %378 = arith.addf %355, %377 : vector<8x128xf32>
    %379 = vector.extract_strided_slice %21 {offsets = [1, 0], sizes = [1, 128], strides = [1, 1]} : vector<4x128xf32> to vector<1x128xf32>
    %380 = vector.broadcast %379 : vector<1x128xf32> to vector<8x128xf32>
    %381 = arith.mulf %351, %380 : vector<8x128xf32>
    %382 = arith.truncf %381 : vector<8x128xf32> to vector<8x128xbf16>
    %cst_123 = arith.constant dense<0.000000e+00> : vector<8x8xf32>
    %383 = tpu.matmul %382, %353, %cst_123 {dimension_numbers = #tpu.dot_dimension_numbers<[1], [1], [0], [0], [0, 0, 1, 0], [], []>} : vector<8x128xbf16>, vector<8x128xbf16>, vector<8x8xf32> -> vector<8x8xf32>
    %384 = vector.broadcast %22 : vector<1x8xf32> to vector<8x8xf32>
    %385 = arith.addf %383, %384 : vector<8x8xf32>
    %cst_124 = arith.constant dense<0xFF800000> : vector<8xf32>
    %386 = vector.multi_reduction <maximumf>, %385, %cst_124 [1] : vector<8x8xf32> to vector<8xf32>
    %387 = vector.shape_cast %386 : vector<8xf32> to vector<8x1xf32>
    %388 = vector.broadcast %387 : vector<8x1xf32> to vector<8x8xf32>
    %389 = arith.subf %385, %388 : vector<8x8xf32>
    %390 = math.exp %389 : vector<8x8xf32>
    %cst_125 = arith.constant dense<0.000000e+00> : vector<8xf32>
    %391 = vector.multi_reduction <add>, %390, %cst_125 [1] : vector<8x8xf32> to vector<8xf32>
    %392 = vector.shape_cast %391 : vector<8xf32> to vector<8x1xf32>
    %393 = tpu.reciprocal %392 {approx = true} : vector<8x1xf32> -> vector<8x1xf32>
    %394 = vector.broadcast %393 : vector<8x1xf32> to vector<8x8xf32>
    %395 = arith.mulf %390, %394 : vector<8x8xf32>
    %396 = vector.broadcast %379 : vector<1x128xf32> to vector<8x128xf32>
    %397 = arith.mulf %354, %396 : vector<8x128xf32>
    %398 = arith.truncf %397 : vector<8x128xf32> to vector<8x128xbf16>
    %399 = arith.truncf %395 : vector<8x8xf32> to vector<8x8xbf16>
    %cst_126 = arith.constant dense<0.000000e+00> : vector<8x128xf32>
    %400 = tpu.matmul %399, %398, %cst_126 {dimension_numbers = #tpu.dot_dimension_numbers<[1], [0], [0], [1], [0, 0, 1, 1], [], []>} : vector<8x8xbf16>, vector<8x128xbf16>, vector<8x128xf32> -> vector<8x128xf32>
    %401 = arith.addf %378, %400 : vector<8x128xf32>
    %402 = vector.extract_strided_slice %21 {offsets = [2, 0], sizes = [1, 128], strides = [1, 1]} : vector<4x128xf32> to vector<1x128xf32>
    %403 = vector.broadcast %402 : vector<1x128xf32> to vector<8x128xf32>
    %404 = arith.mulf %351, %403 : vector<8x128xf32>
    %405 = arith.truncf %404 : vector<8x128xf32> to vector<8x128xbf16>
    %cst_127 = arith.constant dense<0.000000e+00> : vector<8x8xf32>
    %406 = tpu.matmul %405, %353, %cst_127 {dimension_numbers = #tpu.dot_dimension_numbers<[1], [1], [0], [0], [0, 0, 1, 0], [], []>} : vector<8x128xbf16>, vector<8x128xbf16>, vector<8x8xf32> -> vector<8x8xf32>
    %407 = vector.broadcast %22 : vector<1x8xf32> to vector<8x8xf32>
    %408 = arith.addf %406, %407 : vector<8x8xf32>
    %cst_128 = arith.constant dense<0xFF800000> : vector<8xf32>
    %409 = vector.multi_reduction <maximumf>, %408, %cst_128 [1] : vector<8x8xf32> to vector<8xf32>
    %410 = vector.shape_cast %409 : vector<8xf32> to vector<8x1xf32>
    %411 = vector.broadcast %410 : vector<8x1xf32> to vector<8x8xf32>
    %412 = arith.subf %408, %411 : vector<8x8xf32>
    %413 = math.exp %412 : vector<8x8xf32>
    %cst_129 = arith.constant dense<0.000000e+00> : vector<8xf32>
    %414 = vector.multi_reduction <add>, %413, %cst_129 [1] : vector<8x8xf32> to vector<8xf32>
    %415 = vector.shape_cast %414 : vector<8xf32> to vector<8x1xf32>
    %416 = tpu.reciprocal %415 {approx = true} : vector<8x1xf32> -> vector<8x1xf32>
    %417 = vector.broadcast %416 : vector<8x1xf32> to vector<8x8xf32>
    %418 = arith.mulf %413, %417 : vector<8x8xf32>
    %419 = vector.broadcast %402 : vector<1x128xf32> to vector<8x128xf32>
    %420 = arith.mulf %354, %419 : vector<8x128xf32>
    %421 = arith.truncf %420 : vector<8x128xf32> to vector<8x128xbf16>
    %422 = arith.truncf %418 : vector<8x8xf32> to vector<8x8xbf16>
    %cst_130 = arith.constant dense<0.000000e+00> : vector<8x128xf32>
    %423 = tpu.matmul %422, %421, %cst_130 {dimension_numbers = #tpu.dot_dimension_numbers<[1], [0], [0], [1], [0, 0, 1, 1], [], []>} : vector<8x8xbf16>, vector<8x128xbf16>, vector<8x128xf32> -> vector<8x128xf32>
    %424 = arith.addf %401, %423 : vector<8x128xf32>
    %425 = vector.extract_strided_slice %21 {offsets = [3, 0], sizes = [1, 128], strides = [1, 1]} : vector<4x128xf32> to vector<1x128xf32>
    %426 = vector.broadcast %425 : vector<1x128xf32> to vector<8x128xf32>
    %427 = arith.mulf %351, %426 : vector<8x128xf32>
    %428 = arith.truncf %427 : vector<8x128xf32> to vector<8x128xbf16>
    %cst_131 = arith.constant dense<0.000000e+00> : vector<8x8xf32>
    %429 = tpu.matmul %428, %353, %cst_131 {dimension_numbers = #tpu.dot_dimension_numbers<[1], [1], [0], [0], [0, 0, 1, 0], [], []>} : vector<8x128xbf16>, vector<8x128xbf16>, vector<8x8xf32> -> vector<8x8xf32>
    %430 = vector.broadcast %22 : vector<1x8xf32> to vector<8x8xf32>
    %431 = arith.addf %429, %430 : vector<8x8xf32>
    %cst_132 = arith.constant dense<0xFF800000> : vector<8xf32>
    %432 = vector.multi_reduction <maximumf>, %431, %cst_132 [1] : vector<8x8xf32> to vector<8xf32>
    %433 = vector.shape_cast %432 : vector<8xf32> to vector<8x1xf32>
    %434 = vector.broadcast %433 : vector<8x1xf32> to vector<8x8xf32>
    %435 = arith.subf %431, %434 : vector<8x8xf32>
    %436 = math.exp %435 : vector<8x8xf32>
    %cst_133 = arith.constant dense<0.000000e+00> : vector<8xf32>
    %437 = vector.multi_reduction <add>, %436, %cst_133 [1] : vector<8x8xf32> to vector<8xf32>
    %438 = vector.shape_cast %437 : vector<8xf32> to vector<8x1xf32>
    %439 = tpu.reciprocal %438 {approx = true} : vector<8x1xf32> -> vector<8x1xf32>
    %440 = vector.broadcast %439 : vector<8x1xf32> to vector<8x8xf32>
    %441 = arith.mulf %436, %440 : vector<8x8xf32>
    %442 = vector.broadcast %425 : vector<1x128xf32> to vector<8x128xf32>
    %443 = arith.mulf %354, %442 : vector<8x128xf32>
    %444 = arith.truncf %443 : vector<8x128xf32> to vector<8x128xbf16>
    %445 = arith.truncf %441 : vector<8x8xf32> to vector<8x8xbf16>
    %cst_134 = arith.constant dense<0.000000e+00> : vector<8x128xf32>
    %446 = tpu.matmul %445, %444, %cst_134 {dimension_numbers = #tpu.dot_dimension_numbers<[1], [0], [0], [1], [0, 0, 1, 1], [], []>} : vector<8x8xbf16>, vector<8x128xbf16>, vector<8x128xf32> -> vector<8x128xf32>
    %447 = arith.addf %424, %446 : vector<8x128xf32>
    %448 = vector.extract_strided_slice %348 {offsets = [8, 0], sizes = [8, 128], strides = [1, 1]} : vector<16x128xf32> to vector<8x128xf32>
    %449 = vector.extract_strided_slice %349 {offsets = [8, 0], sizes = [8, 128], strides = [1, 1]} : vector<16x128xf32> to vector<8x128xf32>
    %450 = arith.truncf %449 : vector<8x128xf32> to vector<8x128xbf16>
    %451 = vector.extract_strided_slice %350 {offsets = [8, 0], sizes = [8, 128], strides = [1, 1]} : vector<16x128xf32> to vector<8x128xf32>
    %cst_135 = arith.constant 0.000000e+00 : f32
    %452 = vector.broadcast %cst_135 : f32 to vector<8x128xf32>
    %453 = vector.extract_strided_slice %21 {offsets = [0, 0], sizes = [1, 128], strides = [1, 1]} : vector<4x128xf32> to vector<1x128xf32>
    %454 = vector.broadcast %453 : vector<1x128xf32> to vector<8x128xf32>
    %455 = arith.mulf %448, %454 : vector<8x128xf32>
    %456 = arith.truncf %455 : vector<8x128xf32> to vector<8x128xbf16>
    %cst_136 = arith.constant dense<0.000000e+00> : vector<8x8xf32>
    %457 = tpu.matmul %456, %450, %cst_136 {dimension_numbers = #tpu.dot_dimension_numbers<[1], [1], [0], [0], [0, 0, 1, 0], [], []>} : vector<8x128xbf16>, vector<8x128xbf16>, vector<8x8xf32> -> vector<8x8xf32>
    %458 = vector.broadcast %22 : vector<1x8xf32> to vector<8x8xf32>
    %459 = arith.addf %457, %458 : vector<8x8xf32>
    %cst_137 = arith.constant dense<0xFF800000> : vector<8xf32>
    %460 = vector.multi_reduction <maximumf>, %459, %cst_137 [1] : vector<8x8xf32> to vector<8xf32>
    %461 = vector.shape_cast %460 : vector<8xf32> to vector<8x1xf32>
    %462 = vector.broadcast %461 : vector<8x1xf32> to vector<8x8xf32>
    %463 = arith.subf %459, %462 : vector<8x8xf32>
    %464 = math.exp %463 : vector<8x8xf32>
    %cst_138 = arith.constant dense<0.000000e+00> : vector<8xf32>
    %465 = vector.multi_reduction <add>, %464, %cst_138 [1] : vector<8x8xf32> to vector<8xf32>
    %466 = vector.shape_cast %465 : vector<8xf32> to vector<8x1xf32>
    %467 = tpu.reciprocal %466 {approx = true} : vector<8x1xf32> -> vector<8x1xf32>
    %468 = vector.broadcast %467 : vector<8x1xf32> to vector<8x8xf32>
    %469 = arith.mulf %464, %468 : vector<8x8xf32>
    %470 = vector.broadcast %453 : vector<1x128xf32> to vector<8x128xf32>
    %471 = arith.mulf %451, %470 : vector<8x128xf32>
    %472 = arith.truncf %471 : vector<8x128xf32> to vector<8x128xbf16>
    %473 = arith.truncf %469 : vector<8x8xf32> to vector<8x8xbf16>
    %cst_139 = arith.constant dense<0.000000e+00> : vector<8x128xf32>
    %474 = tpu.matmul %473, %472, %cst_139 {dimension_numbers = #tpu.dot_dimension_numbers<[1], [0], [0], [1], [0, 0, 1, 1], [], []>} : vector<8x8xbf16>, vector<8x128xbf16>, vector<8x128xf32> -> vector<8x128xf32>
    %475 = arith.addf %452, %474 : vector<8x128xf32>
    %476 = vector.extract_strided_slice %21 {offsets = [1, 0], sizes = [1, 128], strides = [1, 1]} : vector<4x128xf32> to vector<1x128xf32>
    %477 = vector.broadcast %476 : vector<1x128xf32> to vector<8x128xf32>
    %478 = arith.mulf %448, %477 : vector<8x128xf32>
    %479 = arith.truncf %478 : vector<8x128xf32> to vector<8x128xbf16>
    %cst_140 = arith.constant dense<0.000000e+00> : vector<8x8xf32>
    %480 = tpu.matmul %479, %450, %cst_140 {dimension_numbers = #tpu.dot_dimension_numbers<[1], [1], [0], [0], [0, 0, 1, 0], [], []>} : vector<8x128xbf16>, vector<8x128xbf16>, vector<8x8xf32> -> vector<8x8xf32>
    %481 = vector.broadcast %22 : vector<1x8xf32> to vector<8x8xf32>
    %482 = arith.addf %480, %481 : vector<8x8xf32>
    %cst_141 = arith.constant dense<0xFF800000> : vector<8xf32>
    %483 = vector.multi_reduction <maximumf>, %482, %cst_141 [1] : vector<8x8xf32> to vector<8xf32>
    %484 = vector.shape_cast %483 : vector<8xf32> to vector<8x1xf32>
    %485 = vector.broadcast %484 : vector<8x1xf32> to vector<8x8xf32>
    %486 = arith.subf %482, %485 : vector<8x8xf32>
    %487 = math.exp %486 : vector<8x8xf32>
    %cst_142 = arith.constant dense<0.000000e+00> : vector<8xf32>
    %488 = vector.multi_reduction <add>, %487, %cst_142 [1] : vector<8x8xf32> to vector<8xf32>
    %489 = vector.shape_cast %488 : vector<8xf32> to vector<8x1xf32>
    %490 = tpu.reciprocal %489 {approx = true} : vector<8x1xf32> -> vector<8x1xf32>
    %491 = vector.broadcast %490 : vector<8x1xf32> to vector<8x8xf32>
    %492 = arith.mulf %487, %491 : vector<8x8xf32>
    %493 = vector.broadcast %476 : vector<1x128xf32> to vector<8x128xf32>
    %494 = arith.mulf %451, %493 : vector<8x128xf32>
    %495 = arith.truncf %494 : vector<8x128xf32> to vector<8x128xbf16>
    %496 = arith.truncf %492 : vector<8x8xf32> to vector<8x8xbf16>
    %cst_143 = arith.constant dense<0.000000e+00> : vector<8x128xf32>
    %497 = tpu.matmul %496, %495, %cst_143 {dimension_numbers = #tpu.dot_dimension_numbers<[1], [0], [0], [1], [0, 0, 1, 1], [], []>} : vector<8x8xbf16>, vector<8x128xbf16>, vector<8x128xf32> -> vector<8x128xf32>
    %498 = arith.addf %475, %497 : vector<8x128xf32>
    %499 = vector.extract_strided_slice %21 {offsets = [2, 0], sizes = [1, 128], strides = [1, 1]} : vector<4x128xf32> to vector<1x128xf32>
    %500 = vector.broadcast %499 : vector<1x128xf32> to vector<8x128xf32>
    %501 = arith.mulf %448, %500 : vector<8x128xf32>
    %502 = arith.truncf %501 : vector<8x128xf32> to vector<8x128xbf16>
    %cst_144 = arith.constant dense<0.000000e+00> : vector<8x8xf32>
    %503 = tpu.matmul %502, %450, %cst_144 {dimension_numbers = #tpu.dot_dimension_numbers<[1], [1], [0], [0], [0, 0, 1, 0], [], []>} : vector<8x128xbf16>, vector<8x128xbf16>, vector<8x8xf32> -> vector<8x8xf32>
    %504 = vector.broadcast %22 : vector<1x8xf32> to vector<8x8xf32>
    %505 = arith.addf %503, %504 : vector<8x8xf32>
    %cst_145 = arith.constant dense<0xFF800000> : vector<8xf32>
    %506 = vector.multi_reduction <maximumf>, %505, %cst_145 [1] : vector<8x8xf32> to vector<8xf32>
    %507 = vector.shape_cast %506 : vector<8xf32> to vector<8x1xf32>
    %508 = vector.broadcast %507 : vector<8x1xf32> to vector<8x8xf32>
    %509 = arith.subf %505, %508 : vector<8x8xf32>
    %510 = math.exp %509 : vector<8x8xf32>
    %cst_146 = arith.constant dense<0.000000e+00> : vector<8xf32>
    %511 = vector.multi_reduction <add>, %510, %cst_146 [1] : vector<8x8xf32> to vector<8xf32>
    %512 = vector.shape_cast %511 : vector<8xf32> to vector<8x1xf32>
    %513 = tpu.reciprocal %512 {approx = true} : vector<8x1xf32> -> vector<8x1xf32>
    %514 = vector.broadcast %513 : vector<8x1xf32> to vector<8x8xf32>
    %515 = arith.mulf %510, %514 : vector<8x8xf32>
    %516 = vector.broadcast %499 : vector<1x128xf32> to vector<8x128xf32>
    %517 = arith.mulf %451, %516 : vector<8x128xf32>
    %518 = arith.truncf %517 : vector<8x128xf32> to vector<8x128xbf16>
    %519 = arith.truncf %515 : vector<8x8xf32> to vector<8x8xbf16>
    %cst_147 = arith.constant dense<0.000000e+00> : vector<8x128xf32>
    %520 = tpu.matmul %519, %518, %cst_147 {dimension_numbers = #tpu.dot_dimension_numbers<[1], [0], [0], [1], [0, 0, 1, 1], [], []>} : vector<8x8xbf16>, vector<8x128xbf16>, vector<8x128xf32> -> vector<8x128xf32>
    %521 = arith.addf %498, %520 : vector<8x128xf32>
    %522 = vector.extract_strided_slice %21 {offsets = [3, 0], sizes = [1, 128], strides = [1, 1]} : vector<4x128xf32> to vector<1x128xf32>
    %523 = vector.broadcast %522 : vector<1x128xf32> to vector<8x128xf32>
    %524 = arith.mulf %448, %523 : vector<8x128xf32>
    %525 = arith.truncf %524 : vector<8x128xf32> to vector<8x128xbf16>
    %cst_148 = arith.constant dense<0.000000e+00> : vector<8x8xf32>
    %526 = tpu.matmul %525, %450, %cst_148 {dimension_numbers = #tpu.dot_dimension_numbers<[1], [1], [0], [0], [0, 0, 1, 0], [], []>} : vector<8x128xbf16>, vector<8x128xbf16>, vector<8x8xf32> -> vector<8x8xf32>
    %527 = vector.broadcast %22 : vector<1x8xf32> to vector<8x8xf32>
    %528 = arith.addf %526, %527 : vector<8x8xf32>
    %cst_149 = arith.constant dense<0xFF800000> : vector<8xf32>
    %529 = vector.multi_reduction <maximumf>, %528, %cst_149 [1] : vector<8x8xf32> to vector<8xf32>
    %530 = vector.shape_cast %529 : vector<8xf32> to vector<8x1xf32>
    %531 = vector.broadcast %530 : vector<8x1xf32> to vector<8x8xf32>
    %532 = arith.subf %528, %531 : vector<8x8xf32>
    %533 = math.exp %532 : vector<8x8xf32>
    %cst_150 = arith.constant dense<0.000000e+00> : vector<8xf32>
    %534 = vector.multi_reduction <add>, %533, %cst_150 [1] : vector<8x8xf32> to vector<8xf32>
    %535 = vector.shape_cast %534 : vector<8xf32> to vector<8x1xf32>
    %536 = tpu.reciprocal %535 {approx = true} : vector<8x1xf32> -> vector<8x1xf32>
    %537 = vector.broadcast %536 : vector<8x1xf32> to vector<8x8xf32>
    %538 = arith.mulf %533, %537 : vector<8x8xf32>
    %539 = vector.broadcast %522 : vector<1x128xf32> to vector<8x128xf32>
    %540 = arith.mulf %451, %539 : vector<8x128xf32>
    %541 = arith.truncf %540 : vector<8x128xf32> to vector<8x128xbf16>
    %542 = arith.truncf %538 : vector<8x8xf32> to vector<8x8xbf16>
    %cst_151 = arith.constant dense<0.000000e+00> : vector<8x128xf32>
    %543 = tpu.matmul %542, %541, %cst_151 {dimension_numbers = #tpu.dot_dimension_numbers<[1], [0], [0], [1], [0, 0, 1, 1], [], []>} : vector<8x8xbf16>, vector<8x128xbf16>, vector<8x128xf32> -> vector<8x128xf32>
    %544 = arith.addf %521, %543 : vector<8x128xf32>
    %545 = tpu.concatenate %447, %544 in 0 : vector<8x128xf32>, vector<8x128xf32> -> vector<16x128xf32>
    %546 = arith.truncf %545 : vector<16x128xf32> to vector<16x128xbf16>
    %c1_152 = arith.constant 1 : index
    %c0_153 = arith.constant 0 : index
    %c0_154 = arith.constant 0 : index
    %547 = vector.load %arg11[%c1_152, %c0_153, %c0_154] : memref<2x128x128xbf16, #tpu.memory_space<vmem>>, vector<1x128x128xbf16>
    %548 = vector.shape_cast %547 : vector<1x128x128xbf16> to vector<128x128xbf16>
    %cst_155 = arith.constant dense<0.000000e+00> : vector<16x128xf32>
    %549 = tpu.matmul %546, %548, %cst_155 {dimension_numbers = #tpu.dot_dimension_numbers<[1], [0], [0], [1], [0, 0, 1, 1], [], []>} : vector<16x128xbf16>, vector<128x128xbf16>, vector<16x128xf32> -> vector<16x128xf32>
    %c1_156 = arith.constant 1 : index
    %c0_157 = arith.constant 0 : index
    %c0_158 = arith.constant 0 : index
    %550 = vector.load %arg12[%c1_156, %c0_157, %c0_158] : memref<2x1x128xf32, #tpu.memory_space<vmem>>, vector<1x1x128xf32>
    %551 = vector.shape_cast %550 : vector<1x1x128xf32> to vector<1x128xf32>
    %552 = vector.broadcast %551 : vector<1x128xf32> to vector<16x128xf32>
    %553 = arith.addf %549, %552 : vector<16x128xf32>
    %554 = arith.addf %315, %553 : vector<16x128xf32>
    %c1_159 = arith.constant 1 : index
    %c0_160 = arith.constant 0 : index
    %c0_161 = arith.constant 0 : index
    %555 = vector.load %arg13[%c1_159, %c0_160, %c0_161] : memref<2x1x128xf32, #tpu.memory_space<vmem>>, vector<1x1x128xf32>
    %556 = vector.shape_cast %555 : vector<1x1x128xf32> to vector<1x128xf32>
    %c1_162 = arith.constant 1 : index
    %c0_163 = arith.constant 0 : index
    %c0_164 = arith.constant 0 : index
    %557 = vector.load %arg14[%c1_162, %c0_163, %c0_164] : memref<2x1x128xf32, #tpu.memory_space<vmem>>, vector<1x1x128xf32>
    %558 = vector.shape_cast %557 : vector<1x1x128xf32> to vector<1x128xf32>
    %cst_165 = arith.constant dense<0.000000e+00> : vector<16xf32>
    %559 = vector.multi_reduction <add>, %554, %cst_165 [1] : vector<16x128xf32> to vector<16xf32>
    %560 = vector.shape_cast %559 : vector<16xf32> to vector<16x1xf32>
    %cst_166 = arith.constant 1.280000e+02 : f32
    %561 = vector.broadcast %cst_166 : f32 to vector<16x1xf32>
    %562 = arith.divf %560, %561 : vector<16x1xf32>
    %563 = vector.broadcast %562 : vector<16x1xf32> to vector<16x128xf32>
    %564 = arith.subf %554, %563 : vector<16x128xf32>
    %565 = arith.mulf %564, %564 : vector<16x128xf32>
    %cst_167 = arith.constant dense<0.000000e+00> : vector<16xf32>
    %566 = vector.multi_reduction <add>, %565, %cst_167 [1] : vector<16x128xf32> to vector<16xf32>
    %567 = vector.shape_cast %566 : vector<16xf32> to vector<16x1xf32>
    %cst_168 = arith.constant 1.280000e+02 : f32
    %568 = vector.broadcast %cst_168 : f32 to vector<16x1xf32>
    %569 = arith.divf %567, %568 : vector<16x1xf32>
    %cst_169 = arith.constant 9.99999997E-7 : f32
    %570 = vector.broadcast %cst_169 : f32 to vector<16x1xf32>
    %571 = arith.addf %569, %570 : vector<16x1xf32>
    %572 = math.rsqrt %571 : vector<16x1xf32>
    %573 = vector.broadcast %572 : vector<16x1xf32> to vector<16x128xf32>
    %574 = arith.mulf %564, %573 : vector<16x128xf32>
    %575 = vector.broadcast %556 : vector<1x128xf32> to vector<16x128xf32>
    %576 = arith.mulf %574, %575 : vector<16x128xf32>
    %577 = vector.broadcast %558 : vector<1x128xf32> to vector<16x128xf32>
    %578 = arith.addf %576, %577 : vector<16x128xf32>
    %579 = arith.truncf %578 : vector<16x128xf32> to vector<16x128xbf16>
    %c1_170 = arith.constant 1 : index
    %c0_171 = arith.constant 0 : index
    %c0_172 = arith.constant 0 : index
    %580 = vector.load %arg15[%c1_170, %c0_171, %c0_172] : memref<2x128x512xbf16, #tpu.memory_space<vmem>>, vector<1x128x512xbf16>
    %581 = vector.shape_cast %580 : vector<1x128x512xbf16> to vector<128x512xbf16>
    %cst_173 = arith.constant dense<0.000000e+00> : vector<16x512xf32>
    %582 = tpu.matmul %579, %581, %cst_173 {dimension_numbers = #tpu.dot_dimension_numbers<[1], [0], [0], [1], [0, 0, 1, 1], [], []>} : vector<16x128xbf16>, vector<128x512xbf16>, vector<16x512xf32> -> vector<16x512xf32>
    %c1_174 = arith.constant 1 : index
    %c0_175 = arith.constant 0 : index
    %c0_176 = arith.constant 0 : index
    %583 = vector.load %arg16[%c1_174, %c0_175, %c0_176] : memref<2x1x512xf32, #tpu.memory_space<vmem>>, vector<1x1x512xf32>
    %584 = vector.shape_cast %583 : vector<1x1x512xf32> to vector<1x512xf32>
    %585 = vector.broadcast %584 : vector<1x512xf32> to vector<16x512xf32>
    %586 = arith.addf %582, %585 : vector<16x512xf32>
    %cst_177 = arith.constant 5.000000e-01 : f32
    %587 = vector.broadcast %cst_177 : f32 to vector<16x512xf32>
    %588 = arith.mulf %587, %586 : vector<16x512xf32>
    %cst_178 = arith.constant 4.471500e-02 : f32
    %589 = vector.broadcast %cst_178 : f32 to vector<16x512xf32>
    %590 = arith.mulf %589, %586 : vector<16x512xf32>
    %591 = arith.mulf %590, %586 : vector<16x512xf32>
    %592 = arith.mulf %591, %586 : vector<16x512xf32>
    %593 = arith.addf %586, %592 : vector<16x512xf32>
    %cst_179 = arith.constant 0.797884583 : f32
    %594 = vector.broadcast %cst_179 : f32 to vector<16x512xf32>
    %595 = arith.mulf %594, %593 : vector<16x512xf32>
    %596 = math.tanh %595 : vector<16x512xf32>
    %cst_180 = arith.constant 1.000000e+00 : f32
    %597 = vector.broadcast %cst_180 : f32 to vector<16x512xf32>
    %598 = arith.addf %597, %596 : vector<16x512xf32>
    %599 = arith.mulf %588, %598 : vector<16x512xf32>
    %600 = arith.truncf %599 : vector<16x512xf32> to vector<16x512xbf16>
    %c1_181 = arith.constant 1 : index
    %c0_182 = arith.constant 0 : index
    %c0_183 = arith.constant 0 : index
    %601 = vector.load %arg17[%c1_181, %c0_182, %c0_183] : memref<2x512x128xbf16, #tpu.memory_space<vmem>>, vector<1x512x128xbf16>
    %602 = vector.shape_cast %601 : vector<1x512x128xbf16> to vector<512x128xbf16>
    %cst_184 = arith.constant dense<0.000000e+00> : vector<16x128xf32>
    %603 = tpu.matmul %600, %602, %cst_184 {dimension_numbers = #tpu.dot_dimension_numbers<[1], [0], [0], [1], [0, 0, 1, 1], [], []>} : vector<16x512xbf16>, vector<512x128xbf16>, vector<16x128xf32> -> vector<16x128xf32>
    %c1_185 = arith.constant 1 : index
    %c0_186 = arith.constant 0 : index
    %c0_187 = arith.constant 0 : index
    %604 = vector.load %arg18[%c1_185, %c0_186, %c0_187] : memref<2x1x128xf32, #tpu.memory_space<vmem>>, vector<1x1x128xf32>
    %605 = vector.shape_cast %604 : vector<1x1x128xf32> to vector<1x128xf32>
    %606 = vector.broadcast %605 : vector<1x128xf32> to vector<16x128xf32>
    %607 = arith.addf %603, %606 : vector<16x128xf32>
    %608 = arith.addf %554, %607 : vector<16x128xf32>
    %609 = vector.extract_strided_slice %608 {offsets = [0, 0], sizes = [1, 128], strides = [1, 1]} : vector<16x128xf32> to vector<1x128xf32>
    %610 = vector.extract_strided_slice %608 {offsets = [8, 0], sizes = [1, 128], strides = [1, 1]} : vector<16x128xf32> to vector<1x128xf32>
    %611 = tpu.concatenate %609, %610 in 0 : vector<1x128xf32>, vector<1x128xf32> -> vector<2x128xf32>
    %c0_188 = arith.constant 0 : index
    %c0_189 = arith.constant 0 : index
    %612 = vector.load %arg19[%c0_188, %c0_189] : memref<1x128xf32, #tpu.memory_space<vmem>>, vector<1x128xf32>
    %c0_190 = arith.constant 0 : index
    %c0_191 = arith.constant 0 : index
    %613 = vector.load %arg20[%c0_190, %c0_191] : memref<1x128xf32, #tpu.memory_space<vmem>>, vector<1x128xf32>
    %cst_192 = arith.constant dense<0.000000e+00> : vector<2xf32>
    %614 = vector.multi_reduction <add>, %611, %cst_192 [1] : vector<2x128xf32> to vector<2xf32>
    %615 = vector.shape_cast %614 : vector<2xf32> to vector<2x1xf32>
    %cst_193 = arith.constant 1.280000e+02 : f32
    %616 = vector.broadcast %cst_193 : f32 to vector<2x1xf32>
    %617 = arith.divf %615, %616 : vector<2x1xf32>
    %618 = vector.broadcast %617 : vector<2x1xf32> to vector<2x128xf32>
    %619 = arith.subf %611, %618 : vector<2x128xf32>
    %620 = arith.mulf %619, %619 : vector<2x128xf32>
    %cst_194 = arith.constant dense<0.000000e+00> : vector<2xf32>
    %621 = vector.multi_reduction <add>, %620, %cst_194 [1] : vector<2x128xf32> to vector<2xf32>
    %622 = vector.shape_cast %621 : vector<2xf32> to vector<2x1xf32>
    %cst_195 = arith.constant 1.280000e+02 : f32
    %623 = vector.broadcast %cst_195 : f32 to vector<2x1xf32>
    %624 = arith.divf %622, %623 : vector<2x1xf32>
    %cst_196 = arith.constant 9.99999997E-7 : f32
    %625 = vector.broadcast %cst_196 : f32 to vector<2x1xf32>
    %626 = arith.addf %624, %625 : vector<2x1xf32>
    %627 = math.rsqrt %626 : vector<2x1xf32>
    %628 = vector.broadcast %627 : vector<2x1xf32> to vector<2x128xf32>
    %629 = arith.mulf %619, %628 : vector<2x128xf32>
    %630 = vector.broadcast %612 : vector<1x128xf32> to vector<2x128xf32>
    %631 = arith.mulf %629, %630 : vector<2x128xf32>
    %632 = vector.broadcast %613 : vector<1x128xf32> to vector<2x128xf32>
    %633 = arith.addf %631, %632 : vector<2x128xf32>
    %c0_197 = arith.constant 0 : index
    %c0_198 = arith.constant 0 : index
    %634 = vector.load %arg21[%c0_197, %c0_198] : memref<1x128xf32, #tpu.memory_space<vmem>>, vector<1x128xf32>
    %635 = vector.broadcast %634 : vector<1x128xf32> to vector<2x128xf32>
    %636 = arith.mulf %633, %635 : vector<2x128xf32>
    %cst_199 = arith.constant dense<0.000000e+00> : vector<2xf32>
    %637 = vector.multi_reduction <add>, %636, %cst_199 [1] : vector<2x128xf32> to vector<2xf32>
    %638 = vector.shape_cast %637 : vector<2xf32> to vector<2x1xf32>
    %c0_200 = arith.constant 0 : index
    %c0_201 = arith.constant 0 : index
    %639 = vector.load %arg22[%c0_200, %c0_201] : memref<1x1xf32, #tpu.memory_space<vmem>>, vector<1x1xf32>
    %640 = vector.broadcast %639 : vector<1x1xf32> to vector<2x1xf32>
    %641 = arith.addf %638, %640 : vector<2x1xf32>
    %c0_202 = arith.constant 0 : index
    %c0_203 = arith.constant 0 : index
    %642 = vector.load %arg23[%c0_202, %c0_203] : memref<2x1xf32, #tpu.memory_space<vmem>>, vector<2x1xf32>
    tpu.vector_store %arg23[%c0_202, %c0_203], %641 {strides = array<i32>} : memref<2x1xf32, #tpu.memory_space<vmem>>, vector<2x1xf32>,
    return
  }
  func.func @transform_0(%arg0: i32) -> (i32, i32) {
    %c0_i32 = arith.constant 0 : i32
    %c0_i32_0 = arith.constant 0 : i32
    %c0_i32_1 = arith.constant 0 : i32
    return %c0_i32, %c0_i32_0 : i32, i32
  }
  func.func @transform_1(%arg0: i32) -> (i32, i32) {
    %c0_i32 = arith.constant 0 : i32
    %c0_i32_0 = arith.constant 0 : i32
    %c0_i32_1 = arith.constant 0 : i32
    return %c0_i32, %c0_i32_0 : i32, i32
  }
  func.func @transform_2(%arg0: i32) -> (i32, i32) {
    %c0_i32 = arith.constant 0 : i32
    %c0_i32_0 = arith.constant 0 : i32
    %c0_i32_1 = arith.constant 0 : i32
    return %c0_i32, %c0_i32_0 : i32, i32
  }
  func.func @transform_3(%arg0: i32) -> (i32, i32) {
    %c0_i32 = arith.constant 0 : i32
    %c0_i32_0 = arith.constant 0 : i32
    %c0_i32_1 = arith.constant 0 : i32
    return %c0_i32, %c0_i32_0 : i32, i32
  }
  func.func @transform_4(%arg0: i32) -> (i32, i32) {
    %c0_i32 = arith.constant 0 : i32
    %c0_i32_0 = arith.constant 0 : i32
    %c0_i32_1 = arith.constant 0 : i32
    return %c0_i32, %c0_i32_0 : i32, i32
  }
  func.func @transform_5(%arg0: i32) -> (i32, i32) {
    %c0_i32 = arith.constant 0 : i32
    %c0_i32_0 = arith.constant 0 : i32
    %c0_i32_1 = arith.constant 0 : i32
    return %c0_i32, %c0_i32_0 : i32, i32
  }
  func.func @transform_6(%arg0: i32) -> (i32, i32, i32) {
    %c0_i32 = arith.constant 0 : i32
    %c0_i32_0 = arith.constant 0 : i32
    %c0_i32_1 = arith.constant 0 : i32
    %c0_i32_2 = arith.constant 0 : i32
    return %c0_i32, %c0_i32_0, %c0_i32_1 : i32, i32, i32
  }
  func.func @transform_7(%arg0: i32) -> (i32, i32, i32) {
    %c0_i32 = arith.constant 0 : i32
    %c0_i32_0 = arith.constant 0 : i32
    %c0_i32_1 = arith.constant 0 : i32
    %c0_i32_2 = arith.constant 0 : i32
    return %c0_i32, %c0_i32_0, %c0_i32_1 : i32, i32, i32
  }
  func.func @transform_8(%arg0: i32) -> (i32, i32, i32) {
    %c0_i32 = arith.constant 0 : i32
    %c0_i32_0 = arith.constant 0 : i32
    %c0_i32_1 = arith.constant 0 : i32
    %c0_i32_2 = arith.constant 0 : i32
    return %c0_i32, %c0_i32_0, %c0_i32_1 : i32, i32, i32
  }
  func.func @transform_9(%arg0: i32) -> (i32, i32, i32) {
    %c0_i32 = arith.constant 0 : i32
    %c0_i32_0 = arith.constant 0 : i32
    %c0_i32_1 = arith.constant 0 : i32
    %c0_i32_2 = arith.constant 0 : i32
    return %c0_i32, %c0_i32_0, %c0_i32_1 : i32, i32, i32
  }
  func.func @transform_10(%arg0: i32) -> (i32, i32, i32) {
    %c0_i32 = arith.constant 0 : i32
    %c0_i32_0 = arith.constant 0 : i32
    %c0_i32_1 = arith.constant 0 : i32
    %c0_i32_2 = arith.constant 0 : i32
    return %c0_i32, %c0_i32_0, %c0_i32_1 : i32, i32, i32
  }
  func.func @transform_11(%arg0: i32) -> (i32, i32, i32) {
    %c0_i32 = arith.constant 0 : i32
    %c0_i32_0 = arith.constant 0 : i32
    %c0_i32_1 = arith.constant 0 : i32
    %c0_i32_2 = arith.constant 0 : i32
    return %c0_i32, %c0_i32_0, %c0_i32_1 : i32, i32, i32
  }
  func.func @transform_12(%arg0: i32) -> (i32, i32, i32) {
    %c0_i32 = arith.constant 0 : i32
    %c0_i32_0 = arith.constant 0 : i32
    %c0_i32_1 = arith.constant 0 : i32
    %c0_i32_2 = arith.constant 0 : i32
    return %c0_i32, %c0_i32_0, %c0_i32_1 : i32, i32, i32
  }
  func.func @transform_13(%arg0: i32) -> (i32, i32, i32) {
    %c0_i32 = arith.constant 0 : i32
    %c0_i32_0 = arith.constant 0 : i32
    %c0_i32_1 = arith.constant 0 : i32
    %c0_i32_2 = arith.constant 0 : i32
    return %c0_i32, %c0_i32_0, %c0_i32_1 : i32, i32, i32
  }
  func.func @transform_14(%arg0: i32) -> (i32, i32, i32) {
    %c0_i32 = arith.constant 0 : i32
    %c0_i32_0 = arith.constant 0 : i32
    %c0_i32_1 = arith.constant 0 : i32
    %c0_i32_2 = arith.constant 0 : i32
    return %c0_i32, %c0_i32_0, %c0_i32_1 : i32, i32, i32
  }
  func.func @transform_15(%arg0: i32) -> (i32, i32, i32) {
    %c0_i32 = arith.constant 0 : i32
    %c0_i32_0 = arith.constant 0 : i32
    %c0_i32_1 = arith.constant 0 : i32
    %c0_i32_2 = arith.constant 0 : i32
    return %c0_i32, %c0_i32_0, %c0_i32_1 : i32, i32, i32
  }
  func.func @transform_16(%arg0: i32) -> (i32, i32, i32) {
    %c0_i32 = arith.constant 0 : i32
    %c0_i32_0 = arith.constant 0 : i32
    %c0_i32_1 = arith.constant 0 : i32
    %c0_i32_2 = arith.constant 0 : i32
    return %c0_i32, %c0_i32_0, %c0_i32_1 : i32, i32, i32
  }
  func.func @transform_17(%arg0: i32) -> (i32, i32, i32) {
    %c0_i32 = arith.constant 0 : i32
    %c0_i32_0 = arith.constant 0 : i32
    %c0_i32_1 = arith.constant 0 : i32
    %c0_i32_2 = arith.constant 0 : i32
    return %c0_i32, %c0_i32_0, %c0_i32_1 : i32, i32, i32
  }
  func.func @transform_18(%arg0: i32) -> (i32, i32) {
    %c0_i32 = arith.constant 0 : i32
    %c0_i32_0 = arith.constant 0 : i32
    %c0_i32_1 = arith.constant 0 : i32
    return %c0_i32, %c0_i32_0 : i32, i32
  }
  func.func @transform_19(%arg0: i32) -> (i32, i32) {
    %c0_i32 = arith.constant 0 : i32
    %c0_i32_0 = arith.constant 0 : i32
    %c0_i32_1 = arith.constant 0 : i32
    return %c0_i32, %c0_i32_0 : i32, i32
  }
  func.func @transform_20(%arg0: i32) -> (i32, i32) {
    %c0_i32 = arith.constant 0 : i32
    %c0_i32_0 = arith.constant 0 : i32
    %c0_i32_1 = arith.constant 0 : i32
    return %c0_i32, %c0_i32_0 : i32, i32
  }
  func.func @transform_21(%arg0: i32) -> (i32, i32) {
    %c0_i32 = arith.constant 0 : i32
    %c0_i32_0 = arith.constant 0 : i32
    %c0_i32_1 = arith.constant 0 : i32
    return %c0_i32, %c0_i32_0 : i32, i32
  }
  func.func @transform_22(%arg0: i32) -> (i32, i32) {
    %c0_i32 = arith.constant 0 : i32
    %c0_i32_0 = arith.constant 0 : i32
    %c0_i32_1 = arith.constant 0 : i32
    return %c0_i32, %c0_i32_0 : i32, i32
  }
}

</mosaic_0001>

<bundles_post_ra>
// kernel: maskmol_forward.1
= control target key start
LH: loop header
LB: loop body
LE: loop exit
PB: predicated region body
PF: predicated region fallthrough
CT: control target
= control target key end

     0   :  { %s6426_s0 = inlined_call_operand.vmem [shape: f32[8,768], index: 0, kind: input, shape index: {}]   ;;  %s6427_s1 = inlined_call_operand.vmem [shape: bf16[768,128], index: 1, kind: input, shape index: {}]   ;;  %s6428_s2 = inlined_call_operand.vmem [shape: f32[1,128], index: 2, kind: input, shape index: {}]   ;;  %s6429_s3 = inlined_call_operand.vmem [shape: f32[8,128], index: 3, kind: input, shape index: {}]   ;;  %s6430_s4 = inlined_call_operand.vmem [shape: f32[4,128], index: 4, kind: input, shape index: {}]   ;;  %s6431_s5 = inlined_call_operand.vmem [shape: f32[1,8], index: 5, kind: input, shape index: {}]   ;;  %s6432_s6 = inlined_call_operand.vmem [shape: f32[2,1,128], index: 6, kind: input, shape index: {}]   ;;  %s6433_s7 = inlined_call_operand.vmem [shape: f32[2,1,128], index: 7, kind: input, shape index: {}]   ;;  %s6434_s8 = inlined_call_operand.hbm [shape: bf16[2,128,384], index: 8, kind: input, shape index: {}]   ;;  %s6435_s9 = inlined_call_operand.vmem [shape: f32[2,1,384], index: 9, kind: input, shape index: {}]   ;;  %s6436_s10 = inlined_call_operand.vmem [shape: bf16[2,128,128], index: 10, kind: input, shape index: {}]   ;;  %s6437_s11 = inlined_call_operand.vmem [shape: f32[2,1,128], index: 11, kind: input, shape index: {}]   ;;  %s6438_s12 = inlined_call_operand.vmem [shape: f32[2,1,128], index: 12, kind: input, shape index: {}]   ;;  %s6439_s13 = inlined_call_operand.vmem [shape: f32[2,1,128], index: 13, kind: input, shape index: {}]   ;;  %s6440_s14 = inlined_call_operand.vmem [shape: bf16[2,128,512], index: 14, kind: input, shape index: {}]   ;;  %s6441_s15 = inlined_call_operand.vmem [shape: f32[2,1,512], index: 15, kind: input, shape index: {}]   ;;  %s6442_s16 = inlined_call_operand.vmem [shape: bf16[2,512,128], index: 16, kind: input, shape index: {}]   ;;  %s6443_s17 = inlined_call_operand.vmem [shape: f32[2,1,128], index: 17, kind: input, shape index: {}]   ;;  %s6444_s18 = inlined_call_operand.vmem [shape: f32[1,128], index: 18, kind: input, shape index: {}]   ;;  %s6445_s19 = inlined_call_operand.vmem [shape: f32[1,128], index: 19, kind: input, shape index: {}]   ;;  %s6446_s20 = inlined_call_operand.vmem [shape: f32[1,128], index: 20, kind: input, shape index: {}]   ;;  %s6447_s21 = inlined_call_operand.<no memory space> [shape: f32[1,1], index: 21, kind: input, shape index: {}]   ;;  %s6448_s22 = inlined_call_operand.vmem [shape: f32[2,1], index: 22, kind: output, shape index: {}]  }
   0x1   :  { %6453 = sst [smem:[#allocation6_spill]] %s6426_s0  ;;  %v27_v0 = vstv %s6447_s21 }
   0x2   :  { %6454 = sst [smem:[#allocation7_spill]] %s6427_s1  ;;  %28 = vst [vmem:[#allocation2] sm:$0x1] %v27_v0 }
   0x3   :  { %6455 = sst [smem:[#allocation8_spill]] %s6428_s2 }
   0x4   :  { %6456 = sst [smem:[#allocation9_spill]] %s6429_s3 }
   0x5   :  { %6457 = sst [smem:[#allocation10_spill]] %s6430_s4 }
   0x6   :  { %6458 = sst [smem:[#allocation11_spill]] %s6431_s5 }
   0x7   :  { %6459 = sst [smem:[#allocation12_spill]] %s6432_s6 }
   0x8   :  { %29 = vsyncpa [#allocation4], 0  ;;  %s50_s4 = sshll.u32 %s6434_s8, 4  ;;  %s5062_s0 = smov [#allocation3]   ;;  %s51_s4 = int_to_ptr.hbm [resolvable:$true] %s50_s4 }
   0x9   :  { %s52_s23 = sshll.u32 %s5062_s0, 4  ;;  %s5063_s1 = smov 192   ;;  %s53_s23 = int_to_ptr.vmem [resolvable:$true] %s52_s23 }
   0xa   :  { %s5064_s5 = smov 12  }
   0xb   :  { %58 = dma.hbm_to_vmem [thread:$0]  %s51_s4, 6144, %s53_s23, [#allocation4], %s5063_s1, %s5063_s1, %s5064_s5  }
   0xc   :  { %5060 = dma.done.wait [#allocation4], 6144  }
   0xd   :  { %5061 = vsyncadd [#allocation4], 4294961152  ;;  %s6460_s25 = sld [smem:[#allocation7_spill]]  ;;  %vm576_vm0 = vcmask 1040384   ;;  %vm578_vm1 = vcmask 1044480   ;;  %vm928_vm9 = vcmask 1043456  }
   0xe   :  { %s6461_s1 = sld [smem:[#allocation6_spill]]  ;;  %vm880_vm10 = vcmask 64512  }
   0xf   :  { %s6462_s6 = sld [smem:[#allocation8_spill]] }
  0x10   :  { %s6463_s26 = sld [smem:[#allocation9_spill]] }
  0x11   :  { %s6464_s27 = sld [smem:[#allocation12_spill]] }
  0x12   :  { %s6465_s23 = sld [smem:[#allocation10_spill]] }
  0x13   :  { %v4664_v1 = vld [vmem:[%s6460_s25 + $0x38] sm:$0xff]  ;;  %v4663_v3 = vld [vmem:[%s6460_s25 + $0x30] sm:$0xff]  ;;  %v4662_v9 = vld [vmem:[%s6460_s25 + $0x28] sm:$0xff]  ;;  %s6466_s24 = sld [smem:[#allocation11_spill]] }
  0x14   :  { %v4672_v2 = vld [vmem:[%s6460_s25 + $0x78] sm:$0xff]  ;;  %490 = vmatpush.bf16.msra.mxu0 %v4664_v1  ;;  %v4671_v4 = vld [vmem:[%s6460_s25 + $0x70] sm:$0xff]  ;;  %v4670_v10 = vld [vmem:[%s6460_s25 + $0x68] sm:$0xff] }
  0x15   :  { %503 = vmatpush.bf16.msra.mxu1 %v4672_v2  ;;  %v4680_v5 = vld [vmem:[%s6460_s25 + $0xb8] sm:$0xff]  ;;  %v4679_v7 = vld [vmem:[%s6460_s25 + $0xb0] sm:$0xff]  ;;  %v4678_v11 = vld [vmem:[%s6460_s25 + $0xa8] sm:$0xff] }
  0x16   :  { %v4688_v6 = vld [vmem:[%s6460_s25 + $0xf8] sm:$0xff]  ;;  %516 = vmatpush.bf16.msra.mxu2 %v4680_v5  ;;  %v4687_v8 = vld [vmem:[%s6460_s25 + $0xf0] sm:$0xff]  ;;  %v4686_v12 = vld [vmem:[%s6460_s25 + $0xe8] sm:$0xff] }
  0x17   :  { %529 = vmatpush.bf16.msra.mxu3 %v4688_v6  ;;  %v4661_v13 = vld [vmem:[%s6460_s25 + $0x20] sm:$0xff]  ;;  %v4660_v17 = vld [vmem:[%s6460_s25 + $0x18] sm:$0xff]  ;;  %v4659_v20 = vld [vmem:[%s6460_s25 + $0x10] sm:$0xff] }
  0x18   :  { %491 = vmatpush.bf16.msra.mxu0 %v4663_v3  ;;  %v4669_v14 = vld [vmem:[%s6460_s25 + $0x60] sm:$0xff]  ;;  %v4668_v18 = vld [vmem:[%s6460_s25 + $0x58] sm:$0xff]  ;;  %v4667_v21 = vld [vmem:[%s6460_s25 + $0x50] sm:$0xff] }
  0x19   :  { %504 = vmatpush.bf16.msra.mxu1 %v4671_v4  ;;  %v4677_v15 = vld [vmem:[%s6460_s25 + $0xa0] sm:$0xff]  ;;  %v4676_v19 = vld [vmem:[%s6460_s25 + $0x98] sm:$0xff]  ;;  %v4675_v23 = vld [vmem:[%s6460_s25 + $0x90] sm:$0xff] }
  0x1a   :  { %517 = vmatpush.bf16.msra.mxu2 %v4679_v7  ;;  %v4685_v16 = vld [vmem:[%s6460_s25 + $0xe0] sm:$0xff]  ;;  %v4684_v22 = vld [vmem:[%s6460_s25 + $0xd8] sm:$0xff]  ;;  %v4658_v24 = vld [vmem:[%s6460_s25 + $0x8] sm:$0xff] }
  0x1b   :  { %530 = vmatpush.bf16.msra.mxu3 %v4687_v8  ;;  %v4683_v25 = vld [vmem:[%s6460_s25 + $0xd0] sm:$0xff]  ;;  %v4666_v26 = vld [vmem:[%s6460_s25 + $0x48] sm:$0xff]  ;;  %v4657_v28 = vld [vmem:[%s6460_s25] sm:$0xff] }
  0x1c   :  { %492 = vmatpush.bf16.msra.mxu0 %v4662_v9  ;;  %v4674_v27 = vld [vmem:[%s6460_s25 + $0x88] sm:$0xff]  ;;  %v4665_v30 = vld [vmem:[%s6460_s25 + $0x40] sm:$0xff]  ;;  %v4696_v33 = vld [vmem:[%s6460_s25 + $0x138] sm:$0xff] }
  0x1d   :  { %505 = vmatpush.bf16.msra.mxu1 %v4670_v10  ;;  %v4682_v29 = vld [vmem:[%s6460_s25 + $0xc8] sm:$0xff]  ;;  %v90_v31 = vld [vmem:[%s6461_s1] sm:$0xff]  ;;  %v4704_v34 = vld [vmem:[%s6460_s25 + $0x178] sm:$0xff] }
  0x1e   :  { %518 = vmatpush.bf16.msra.mxu2 %v4678_v11  ;;  %v91_v32 = vld [vmem:[%s6461_s1 + $0x8] sm:$0xff]  ;;  %v4673_v35 = vld [vmem:[%s6460_s25 + $0x80] sm:$0xff]  ;;  %v96_v36 = vpack.c.bf16 %v90_v31, %v90_v31  ;;  %v92_v38 = vld [vmem:[%s6461_s1 + $0x10] sm:$0xff] }
  0x1f   :  { %531 = vmatpush.bf16.msra.mxu3 %v4686_v12  ;;  %v97_v37 = vpack.c.bf16 %v91_v32, %v91_v32  ;;  %v4681_v39 = vld [vmem:[%s6460_s25 + $0xc0] sm:$0xff]  ;;  %v93_v40 = vld [vmem:[%s6461_s1 + $0x18] sm:$0xff]  ;;  %v4695_v41 = vld [vmem:[%s6460_s25 + $0x130] sm:$0xff]  ;;  %v98_v43 = vpack.c.bf16 %v92_v38, %v92_v38 }
  0x20   :  { %493 = vmatpush.bf16.msra.mxu0 %v4661_v13  ;;  %v4703_v42 = vld [vmem:[%s6460_s25 + $0x170] sm:$0xff]  ;;  %v99_v44 = vpack.c.bf16 %v93_v40, %v93_v40  ;;  %v4694_v45 = vld [vmem:[%s6460_s25 + $0x128] sm:$0xff]  ;;  %v4693_v47 = vld [vmem:[%s6460_s25 + $0x120] sm:$0xff] }
  0x21   :  { %506 = vmatpush.bf16.msra.mxu1 %v4669_v14  ;;  %v4702_v46 = vld [vmem:[%s6460_s25 + $0x168] sm:$0xff]  ;;  %v4701_v48 = vld [vmem:[%s6460_s25 + $0x160] sm:$0xff]  ;;  %v4692_v49 = vld [vmem:[%s6460_s25 + $0x118] sm:$0xff] }
  0x22   :  { %519 = vmatpush.bf16.msra.mxu2 %v4677_v15  ;;  %v4700_v50 = vld [vmem:[%s6460_s25 + $0x158] sm:$0xff]  ;;  %v4691_v51 = vld [vmem:[%s6460_s25 + $0x110] sm:$0xff]  ;;  %v4690_v53 = vld [vmem:[%s6460_s25 + $0x108] sm:$0xff] }
  0x23   :  { %532 = vmatpush.bf16.msra.mxu3 %v4685_v16  ;;  %v4699_v52 = vld [vmem:[%s6460_s25 + $0x150] sm:$0xff]  ;;  %v4698_v54 = vld [vmem:[%s6460_s25 + $0x148] sm:$0xff]  ;;  %v4689_v55 = vld [vmem:[%s6460_s25 + $0x100] sm:$0xff] }
  0x24   :  { %494 = vmatpush.bf16.msra.mxu0 %v4660_v17  ;;  %v4697_v56 = vld [vmem:[%s6460_s25 + $0x140] sm:$0xff]  ;;  %v95_v58 = vld [vmem:[%s6461_s1 + $0x28] sm:$0xff] }
  0x25   :  { %507 = vmatpush.bf16.msra.mxu1 %v4668_v18  ;;  %v94_v57 = vld [vmem:[%s6461_s1 + $0x20] sm:$0xff]  ;;  %v101_v60 = vpack.c.bf16 %v95_v58, %v95_v58 }
  0x26   :  { %520 = vmatpush.bf16.msra.mxu2 %v4676_v19  ;;  %v100_v59 = vpack.c.bf16 %v94_v57, %v94_v57  ;;  %v4901_v3 = vld [vmem:[%s6462_s6] ss:$0 sm:$0xff]  ;;  %v4725_v57 = vld [vmem:[#allocation3 + $0xa0] sm:$0xf0] }
  0x27   :  { %533 = vmatpush.bf16.msra.mxu3 %v4684_v22  ;;  %v568_v9 = vld [vmem:[%s6463_s26] sm:$0xff] }
  0x28   :  { %495 = vmatpush.bf16.msra.mxu0 %v4659_v20  ;;  %v570_v14 = vrot.slane %v568_v9, 1  ;;  %v580_v16 = vrot.slane %v568_v9, 5 }
  0x29   :  { %508 = vmatpush.bf16.msra.mxu1 %v4667_v21 }
  0x2a   :  { %521 = vmatpush.bf16.msra.mxu2 %v4675_v23 }
  0x2b   :  { %534 = vmatpush.bf16.msra.mxu3 %v4683_v25 }
  0x2c   :  { %496 = vmatpush.bf16.msra.mxu0 %v4658_v24 }
  0x2d   :  { %509 = vmatpush.bf16.msra.mxu1 %v4666_v26 }
  0x2e   :  { %522 = vmatpush.bf16.msra.mxu2 %v4674_v27  ;;  %v5065_v27 = vmov 128.0  }
  0x2f   :  { %535 = vmatpush.bf16.msra.mxu3 %v4682_v29  ;;  %4919 = vrcp.f32 %v5065_v27  ;;  %v4711_v27 = vld [vmem:[#allocation3 + $0x34] sm:$0xf] }
  0x30   :  { %497 = vmatpush.bf16.msra.mxu0 %v4657_v28 }
  0x31   :  { %510 = vmatpush.bf16.msra.mxu1 %v4665_v30 }
  0x32   :  { %523 = vmatpush.bf16.msra.mxu2 %v4673_v35 }
  0x33   :  { %498 = vmatmul.bf16.vlgmr.msra.gmra.mxu0 %v96_v36  ;;  %536 = vmatpush.bf16.msra.mxu3 %v4681_v39 }
  0x34   :  { %542 = vmatpush.bf16.msrb.mxu0 %v4696_v33  ;;  %511 = vmatmul.bf16.vlgmr.msra.gmra.mxu1 %v97_v37 }
  0x35   :  { %555 = vmatpush.bf16.msrb.mxu1 %v4704_v34  ;;  %524 = vmatmul.bf16.vlgmr.msra.gmra.mxu2 %v98_v43  ;;  %v4920_v28 = vpop.eup %4919  ;;  %v4727_v43 = vld [vmem:[#allocation3 + $0xb0] sm:$0xf0] }
  0x36   :  { %537 = vmatmul.bf16.vlgmr.msra.gmra.mxu3 %v99_v44  ;;  %v597_v29 = vmul.f32 128.0, %v4920_v28  ;;  %vm601_vm2 = vweird.f32 %v4920_v28  ;;  %v4726_v44 = vld [vmem:[#allocation3 + $0xac] sm:$0xf] }
  0x38   :  { %543 = vmatpush.bf16.msrb.mxu0 %v4695_v41  ;;  %v598_v30 = vsub.f32 1.0, %v597_v29  ;;  %v3781_v29 = vld [vmem:[#allocation3 + $0x3c] sm:$0xf0] }
  0x39   :  { %556 = vmatpush.bf16.msrb.mxu1 %v4703_v42  ;;  %v3839_v42 = vld [vmem:[#allocation3 + $0xa8] sm:$0xf] }
  0x3a   :  { %v599_v31 = vmul.f32 %v4920_v28, %v598_v30  ;;  %v3787_v30 = vld [vmem:[#allocation3 + $0x38] sm:$0xf] }
  0x3c   :  { %544 = vmatpush.bf16.msrb.mxu0 %v4694_v45  ;;  %v600_v32 = vadd.f32 %v4920_v28, %v599_v31  ;;  %v3840_v45 = vor.u32 %v4727_v43, %v3839_v42  ;;  %v4713_v31 = vld [vmem:[#allocation3 + $0x40] sm:$0xf0]  ;;  %v3775_v42 = vld [vmem:[#allocation3 + $0x20] sm:$0xf]  ;;  %v4710_v43 = vld [vmem:[#allocation3 + $0x28] sm:$0xf0] }
  0x3d   :  { %557 = vmatpush.bf16.msrb.mxu1 %v4702_v46  ;;  %v3841_v46 = vld [vmem:[#allocation3 + $0xb4] sm:$0xf0] }
  0x3e   :  { %v5363_v33 = vsel %vm601_vm2, %v4920_v28, %v600_v32  ;;  %818 = vmatpush.bf16.msrb.mxu2 %v3840_v45  ;;  %v3784_v32 = vor.u32 %v4711_v27, %v3781_v29  ;;  %v3776_v45 = vor.u32 %v4710_v43, %v3775_v42 }
  0x40   :  { %545 = vmatpush.bf16.msrb.mxu0 %v4693_v47  ;;  %v3847_v47 = vld [vmem:[#allocation3 + $0xb0] sm:$0xf] }
  0x41   :  { %558 = vmatpush.bf16.msrb.mxu1 %v4701_v48  ;;  %v4728_v48 = vld [vmem:[#allocation3 + $0xb8] sm:$0xf0] }
  0x44   :  { %546 = vmatpush.bf16.msrb.mxu0 %v4692_v49  ;;  %v3844_v49 = vor.u32 %v4726_v44, %v3841_v46  ;;  %v3755_v46 = vld [vmem:[#allocation3] sm:$0xf] }
  0x45   :  { %559 = vmatpush.bf16.msrb.mxu1 %v4700_v50  ;;  %v3848_v50 = vor.u32 %v4728_v48, %v3847_v47  ;;  %v4706_v47 = vld [vmem:[#allocation3 + $0x8] sm:$0xf0]  ;;  %v4705_v48 = vld [vmem:[#allocation3 + $0x4] sm:$0xf] }
  0x46   :  { %832 = vmatpush.bf16.msrb.mxu3 %v3844_v49 }
  0x48   :  { %547 = vmatpush.bf16.msrb.mxu0 %v4691_v51  ;;  %v3827_v51 = vld [vmem:[#allocation3 + $0x90] sm:$0xf] }
  0x49   :  { %560 = vmatpush.bf16.msrb.mxu1 %v4699_v52  ;;  %v4724_v52 = vld [vmem:[#allocation3 + $0x98] sm:$0xf0] }
  0x4c   :  { %548 = vmatpush.bf16.msrb.mxu0 %v4690_v53  ;;  %v4723_v53 = vld [vmem:[#allocation3 + $0x94] sm:$0xf] }
  0x4d   :  { %561 = vmatpush.bf16.msrb.mxu1 %v4698_v54  ;;  %v3828_v54 = vor.u32 %v4724_v52, %v3827_v51  ;;  %v3757_v51 = vld [vmem:[#allocation3 + $0xc] sm:$0xf0]  ;;  %v3763_v52 = vld [vmem:[#allocation3 + $0x8] sm:$0xf] }
  0x4f   :  { %819 = vmatpush.bf16.msrb.mxu2 %v3828_v54 }
  0x50   :  { %549 = vmatpush.bf16.msrb.mxu0 %v4689_v55  ;;  %v3829_v55 = vld [vmem:[#allocation3 + $0x9c] sm:$0xf0] }
  0x51   :  { %562 = vmatpush.bf16.msrb.mxu1 %v4697_v56  ;;  %v3835_v56 = vld [vmem:[#allocation3 + $0x98] sm:$0xf]  ;;  %v3832_v58 = vor.u32 %v4723_v53, %v3829_v55  ;;  %v4707_v53 = vld [vmem:[#allocation3 + $0x10] sm:$0xf0]  ;;  %v3760_v55 = vor.u32 %v4705_v48, %v3757_v51 }
  0x53   :  { %550 = vmatmul.bf16.vlgmr.msrb.gmra.mxu0 %v100_v59  ;;  %v3836_v59 = vor.u32 %v4725_v57, %v3835_v56  ;;  %833 = vmatpush.bf16.msrb.mxu3 %v3832_v58  ;;  %v3764_v56 = vor.u32 %v4707_v53, %v3763_v52 }
  0x54   :  { %563 = vmatmul.bf16.vlgmr.msrb.gmra.mxu1 %v101_v60  ;;  %846 = vmatpush.bf16.msra.mxu0 %v3848_v50  ;;  %v3815_v60 = vld [vmem:[#allocation3 + $0x78] sm:$0xf]  ;;  %v3756_v50 = vor.u32 %v4706_v47, %v3755_v46 }
  0x58   :  { %847 = vmatpush.bf16.msra.mxu0 %v3836_v59 }
  0xb0   :  { %v499_v61 = vpop.f32.mrf.mxu0 }
  0xb1   :  { %v512_v62 = vpop.f32.mrf.mxu1  ;;  %v500_v4 = vadd.f32 %v4901_v3, %v499_v61  ;;  %v4721_v61 = vld [vmem:[#allocation3 + $0x80] sm:$0xf0] }
  0xb3   :  { %v513_v7 = vadd.f32 %v512_v62, %v500_v4  ;;  %v4720_v62 = vld [vmem:[#allocation3 + $0x7c] sm:$0xf] }
  0xb8   :  { %v501_v63 = vpop.f32.mrf.mxu0  ;;  %v525_v1 = vpop.f32.mrf.mxu2 }
  0xb9   :  { %v514_v0 = vpop.f32.mrf.mxu1  ;;  %v538_v2 = vpop.f32.mrf.mxu3  ;;  %v526_v8 = vadd.f32 %v525_v1, %v513_v7  ;;  %v3816_v63 = vor.u32 %v4721_v61, %v3815_v60  ;;  %v3823_v1 = vld [vmem:[#allocation3 + $0x80] sm:$0xf]  ;;  %v4717_v7 = vld [vmem:[#allocation3 + $0x64] sm:$0xf] }
  0xba   :  { %v3817_v0 = vld [vmem:[#allocation3 + $0x84] sm:$0xf0] }
  0xbb   :  { %v539_v10 = vadd.f32 %v538_v2, %v526_v8  ;;  %v4722_v2 = vld [vmem:[#allocation3 + $0x88] sm:$0xf0]  ;;  %v3820_v3 = vor.u32 %v4720_v62, %v3817_v0  ;;  %820 = vmatpush.bf16.msrb.mxu2 %v3816_v63 }
  0xbc   :  { %v3824_v4 = vor.u32 %v4722_v2, %v3823_v1 }
  0xbd   :  { %834 = vmatpush.bf16.msrb.mxu3 %v3820_v3 }
  0xbe   :  { %848 = vmatpush.bf16.msra.mxu0 %v3824_v4 }
  0xc0   :  { %v527_v5 = vpop.f32.mrf.mxu2 }
  0xc1   :  { %v540_v6 = vpop.f32.mrf.mxu3  ;;  %v3803_v5 = vld [vmem:[#allocation3 + $0x60] sm:$0xf] }
  0xc2   :  { %v4718_v6 = vld [vmem:[#allocation3 + $0x68] sm:$0xf0] }
  0xc3   :  { %v3804_v8 = vor.u32 %v4718_v6, %v3803_v5 }
  0xc5   :  { %821 = vmatpush.bf16.msrb.mxu2 %v3804_v8 }
  0xd0   :  { %v551_v11 = vpop.f32.mrf.mxu0 }
  0xd1   :  { %v564_v12 = vpop.f32.mrf.mxu1  ;;  %v552_v13 = vadd.f32 %v551_v11, %v539_v10  ;;  %v3811_v10 = vld [vmem:[#allocation3 + $0x68] sm:$0xf]  ;;  %v4719_v11 = vld [vmem:[#allocation3 + $0x70] sm:$0xf0] }
  0xd3   :  { %v565_v15 = vadd.f32 %v564_v12, %v552_v13  ;;  %v3812_v13 = vor.u32 %v4719_v11, %v3811_v10  ;;  %v4902_v10 = vld [vmem:[%s6464_s27] ss:$0 sm:$0xff] }
  0xd5   :  { %v572_v17 = vadd.f32 %v570_v14, %v565_v15  ;;  %v582_v19 = vadd.f32 %v580_v16, %v565_v15  ;;  %849 = vmatpush.bf16.msra.mxu0 %v3812_v13  ;;  %v3791_v14 = vld [vmem:[#allocation3 + $0x48] sm:$0xf]  ;;  %v4715_v15 = vld [vmem:[#allocation3 + $0x50] sm:$0xf0]  ;;  %v4714_v16 = vld [vmem:[#allocation3 + $0x4c] sm:$0xf] }
  0xd7   :  { %v574_v18 = vrot.slane %v572_v17, 7  ;;  %v584_v24 = vrot.slane %v582_v19, 3  ;;  %v3792_v17 = vor.u32 %v4715_v15, %v3791_v14  ;;  %v3799_v19 = vld [vmem:[#allocation3 + $0x50] sm:$0xf]  ;;  %v4903_v15 = vld [vmem:[%s6433_s7] ss:$0 sm:$0xff] }
  0xd8   :  { %v553_v20 = vpop.f32.mrf.mxu0 }
  0xd9   :  { %v566_v21 = vpop.f32.mrf.mxu1  ;;  %v577_v22 = vsel %vm576_vm0, %v568_v9, %v574_v18  ;;  %v586_v25 = vsel %vm576_vm0, %v568_v9, %v584_v24  ;;  %v3805_v9 = vld [vmem:[#allocation3 + $0x6c] sm:$0xf0]  ;;  %v3793_v18 = vld [vmem:[#allocation3 + $0x54] sm:$0xf0]  ;;  %v4716_v20 = vld [vmem:[#allocation3 + $0x58] sm:$0xf0]  ;;  %822 = vmatpush.bf16.msrb.mxu2 %v3792_v17 }
  0xda   :  { %v5356_v23 = vsel %vm578_vm1, %v577_v22, 0.0  ;;  %v5360_v26 = vsel %vm578_vm1, %v586_v25, 0.0  ;;  %v3808_v12 = vor.u32 %v4717_v7, %v3805_v9  ;;  %v3796_v21 = vor.u32 %v4714_v16, %v3793_v18  ;;  %v3779_v24 = vld [vmem:[#allocation3 + $0x30] sm:$0xf]  ;;  %v4712_v25 = vld [vmem:[#allocation3 + $0x38] sm:$0xf0] }
  0xdb   :  { %592 = vadd.xlane.f32.xlu0 %v5356_v23  ;;  %v3800_v22 = vor.u32 %v4716_v20, %v3799_v19  ;;  %v3780_v28 = vor.u32 %v4712_v25, %v3779_v24 }
  0xdc   :  { %835 = vmatpush.bf16.msrb.mxu3 %v3808_v12 }
  0xdd   :  { %850 = vmatpush.bf16.msra.mxu0 %v3800_v22  ;;  %823 = vmatpush.bf16.msrb.mxu2 %v3780_v28 }
  0xe0   :  { %836 = vmatpush.bf16.msrb.mxu3 %v3796_v21 }
  0xe3   :  { %594 = vadd.xlane.f32.xlu0 %v5360_v26 }
  0xe4   :  { %837 = vmatpush.bf16.msrb.mxu3 %v3784_v32 }
 0x14e   :  { %v593_v34 = vpop.xlane.xlu0 %592 }
 0x14f   :  { %v603_v35 = vmul.f32 %v5363_v33, %v593_v34  ;;  %v3788_v34 = vor.u32 %v4713_v31, %v3787_v30 }
 0x151   :  { %v5367_v36 = vsub.f32 %v5356_v23, %v603_v35  ;;  %851 = vmatpush.bf16.msra.mxu0 %v3788_v34  ;;  %v3767_v35 = vld [vmem:[#allocation3 + $0x18] sm:$0xf] }
 0x153   :  { %v607_v37 = vmul.f32 %v5367_v36, %v5367_v36 }
 0x155   :  { %609 = vadd.xlane.f32.xlu1 %v607_v37  ;;  %v4709_v37 = vld [vmem:[#allocation3 + $0x20] sm:$0xf0]  ;;  %852 = vmatpush.bf16.msra.mxu0 %v3776_v45 }
 0x156   :  { %v595_v38 = vpop.xlane.xlu0 %594 }
 0x157   :  { %v604_v39 = vmul.f32 %v5363_v33, %v595_v38  ;;  %v4708_v38 = vld [vmem:[#allocation3 + $0x1c] sm:$0xf] }
 0x159   :  { %v5373_v40 = vsub.f32 %v5360_v26, %v604_v39  ;;  %v3768_v39 = vor.u32 %v4709_v37, %v3767_v35  ;;  %853 = vmatpush.bf16.msra.mxu0 %v3764_v56 }
 0x15b   :  { %v608_v41 = vmul.f32 %v5373_v40, %v5373_v40  ;;  %824 = vmatpush.bf16.msrb.mxu2 %v3768_v39 }
 0x15d   :  { %611 = vadd.xlane.f32.xlu1 %v608_v41  ;;  %v3769_v41 = vld [vmem:[#allocation3 + $0x24] sm:$0xf0] }
 0x15e   :  { %v3772_v44 = vor.u32 %v4708_v38, %v3769_v41 }
 0x15f   :  { %825 = vmatpush.bf16.msrb.mxu2 %v3756_v50 }
 0x160   :  { %838 = vmatpush.bf16.msrb.mxu3 %v3772_v44 }
 0x164   :  { %839 = vmatpush.bf16.msrb.mxu3 %v3760_v55 }
 0x1c8   :  { %v610_v49 = vpop.xlane.xlu1 %609 }
 0x1c9   :  { %v613_v54 = vmul.f32 %v610_v49, %v5363_v33 }
 0x1cb   :  { %v615_v57 = vadd.f32 1e-06, %v613_v54 }
 0x1cd   :  { %4921 = vrsqrt.f32 %v615_v57  ;;  %vm623_vm4 = vweird.f32 %v615_v57 }
 0x1d0   :  { %v612_v58 = vpop.xlane.xlu1 %611 }
 0x1d1   :  { %v614_v59 = vmul.f32 %v612_v58, %v5363_v33 }
 0x1d3   :  { %v4922_v60 = vpop.eup %4921  ;;  %v616_v61 = vadd.f32 1e-06, %v614_v59 }
 0x1d4   :  { %v618_v62 = vmul.f32 %v4922_v60, %v615_v57  ;;  %vm624_vm3 = vweird.f32 %v4922_v60 }
 0x1d5   :  { %4923 = vrsqrt.f32 %v616_v61  ;;  %vm625_vm5 = vmor %vm623_vm4, %vm624_vm3  ;;  %vm633_vm7 = vweird.f32 %v616_v61 }
 0x1d6   :  { %v619_v63 = vmul.f32 %v4922_v60, %v618_v62 }
 0x1d8   :  { %v620_v0 = vmul.f32 0.5, %v619_v63 }
 0x1da   :  { %v621_v1 = vsub.f32 1.5, %v620_v0 }
 0x1db   :  { %v4924_v2 = vpop.eup %4923 }
 0x1dc   :  { %v622_v3 = vmul.f32 %v4922_v60, %v621_v1  ;;  %v628_v4 = vmul.f32 %v4924_v2, %v616_v61  ;;  %vm634_vm6 = vweird.f32 %v4924_v2 }
 0x1dd   :  { %vm635_vm8 = vmor %vm633_vm7, %vm634_vm6 }
 0x1de   :  { %v629_v5 = vmul.f32 %v4924_v2, %v628_v4  ;;  %v626_v6 = vsel %vm625_vm5, %v4922_v60, %v622_v3 }
 0x1df   :  { %v637_v9 = vmul.f32 %v626_v6, %v5367_v36  ;;  %v5390_v36 = vld [vmem:[%s6435_s9] sm:$0x7] }
 0x1e0   :  { %v630_v7 = vmul.f32 0.5, %v629_v5  ;;  %v686_v20 = vperm.slane %v5390_v36, 2  ;;  %v685_v27 = vperm.slane %v5390_v36, 1  ;;  %v684_v28 = vperm.slane %v5390_v36, 0 }
 0x1e1   :  { %v642_v14 = vmul.f32 %v4902_v10, %v637_v9 }
 0x1e2   :  { %v631_v8 = vsub.f32 1.5, %v630_v7 }
 0x1e3   :  { %v647_v17 = vadd.f32 %v4903_v15, %v642_v14 }
 0x1e4   :  { %v632_v11 = vmul.f32 %v4924_v2, %v631_v8 }
 0x1e6   :  { %v636_v12 = vsel %vm635_vm8, %v4924_v2, %v632_v11  ;;  %v5439_v11 = vld [vmem:[%s6466_s24] ss:$0 sm:$0xff] }
 0x1e7   :  { %v638_v13 = vmul.f32 %v636_v12, %v5373_v40  ;;  %v588_v40 = vld [vmem:[%s6465_s23] sm:$0xf] }
 0x1e8   :  { %v5396_v21 = vperm.slane %v588_v40, 1  ;;  %v5398_v22 = vperm.slane %v588_v40, 0  ;;  %v5404_v37 = vperm.slane %v588_v40, 2  ;;  %v5406_v38 = vperm.slane %v588_v40, 3 }
 0x1e9   :  { %v643_v16 = vmul.f32 %v4902_v10, %v638_v13 }
 0x1eb   :  { %v648_v18 = vadd.f32 %v4903_v15, %v643_v16 }
 0x1ed   :  { %v649_v19 = vpack.c.bf16 %v648_v18, %v647_v17 }
 0x1ef   :  { %826 = vmatmul.bf16.vlgmr.msrb.gmra.mxu2 %v649_v19  ;;  %840 = vmatmul.bf16.vlgmr.msrb.gmra.mxu3 %v649_v19 }
 0x1f0   :  { %854 = vmatmul.bf16.vlgmr.msra.gmra.mxu0 %v649_v19 }
 0x26d   :  { %v855_v24 = vpop.f32.mrf.mxu0 }
 0x26e   :  { %v856_v25 = vadd.f32 %v855_v24, %v686_v20 }
 0x270   :  { %v922_v29 = vmul.f32 %v5396_v21, %v856_v25  ;;  %v892_v30 = vmul.f32 %v5398_v22, %v856_v25  ;;  %v991_v46 = vmul.f32 %v5404_v37, %v856_v25  ;;  %v1041_v47 = vmul.f32 %v5406_v38, %v856_v25 }
 0x272   :  { %v827_v31 = vpop.f32.mrf.mxu2  ;;  %v841_v32 = vpop.f32.mrf.mxu3  ;;  %v923_v35 = vpack.c.bf16 %v922_v29, %v922_v29  ;;  %v893_v41 = vpack.c.bf16 %v892_v30, %v892_v30  ;;  %v992_v57 = vpack.c.bf16 %v991_v46, %v991_v46  ;;  %v1042_v58 = vpack.c.bf16 %v1041_v47, %v1041_v47 }
 0x273   :  { %v842_v34 = vadd.f32 %v841_v32, %v685_v27  ;;  %v828_v39 = vadd.f32 %v827_v31, %v684_v28 }
 0x274   :  { %v930_v45 = vsel %vm928_vm9, %v923_v35, 0  ;;  %v949_v48 = vsel %vm928_vm9, %v893_v41, 0  ;;  %v998_v1 = vsel %vm928_vm9, %v992_v57, 0  ;;  %v1048_v2 = vsel %vm928_vm9, %v1042_v58, 0 }
 0x275   :  { %v860_v42 = vpack.c.bf16 %v842_v34, %v842_v34  ;;  %v857_v43 = vpop.f32.mrf.mxu0  ;;  %v862_v50 = vmul.f32 %v5398_v22, %v828_v39  ;;  %v896_v51 = vmul.f32 %v5396_v21, %v828_v39  ;;  %v965_v52 = vmul.f32 %v5404_v37, %v828_v39 }
 0x276   :  { %v5408_v44 = vadd.f32 %v857_v43, %v686_v20  ;;  %v1015_v53 = vmul.f32 %v5406_v38, %v828_v39 }
 0x277   :  { %874 = vmatpush.bf16.xpose.msra.mxu1 %v860_v42  ;;  %905 = vmatpush.bf16.xpose.msra.mxu3 %v860_v42  ;;  %v863_v60 = vpack.c.bf16 %v862_v50, %v862_v50  ;;  %v897_v61 = vpack.c.bf16 %v896_v51, %v896_v51  ;;  %v966_v63 = vpack.c.bf16 %v965_v52, %v965_v52 }
 0x278   :  { %974 = vmatpush.bf16.xpose.msra.mxu2 %v860_v42  ;;  %1024 = vmatpush.bf16.xpose.msrb.mxu0 %v860_v42  ;;  %v1120_v49 = vmul.f32 %v5396_v21, %v5408_v44  ;;  %v1016_v0 = vpack.c.bf16 %v1015_v53, %v1015_v53 }
 0x27a   :  { %v843_v54 = vpop.f32.mrf.mxu3  ;;  %v1121_v55 = vpack.c.bf16 %v1120_v49, %v1120_v49  ;;  %v829_v3 = vpop.f32.mrf.mxu2 }
 0x27b   :  { %v844_v56 = vadd.f32 %v843_v54, %v685_v27  ;;  %v5428_v4 = vadd.f32 %v829_v3, %v684_v28  ;;  %v1187_v54 = vmul.f32 %v5404_v37, %v5408_v44 }
 0x27c   :  { %v1127_v59 = vsel %vm928_vm9, %v1121_v55, 0 }
 0x27d   :  { %v5421_v62 = vpack.c.bf16 %v844_v56, %v844_v56  ;;  %v1065_v5 = vmul.f32 %v5398_v22, %v5428_v4  ;;  %v1161_v7 = vmul.f32 %v5404_v37, %v5428_v4  ;;  %v1188_v56 = vpack.c.bf16 %v1187_v54, %v1187_v54 }
 0x27e   :  { %875 = vmatmul.bf16.vlgmr.msra.gmra.mxu1 %v863_v60  ;;  %906 = vmatmul.bf16.vlgmr.msra.gmra.mxu3 %v897_v61 }
 0x27f   :  { %939 = vmatpush.bf16.msrb.mxu3 %v930_v45  ;;  %958 = vmatpush.bf16.msrb.mxu1 %v949_v48  ;;  %v1066_v6 = vpack.c.bf16 %v1065_v5, %v1065_v5  ;;  %v1162_v8 = vpack.c.bf16 %v1161_v7, %v1161_v7  ;;  %v1194_v58 = vsel %vm928_vm9, %v1188_v56, 0 }
 0x280   :  { %1136 = vmatpush.bf16.msra.mxu0 %v1127_v59  ;;  %975 = vmatmul.bf16.vlgmr.msra.gmra.mxu2 %v966_v63  ;;  %v1094_v59 = vmul.f32 %v5396_v21, %v5428_v4 }
 0x281   :  { %1025 = vmatmul.bf16.vlgmr.msrb.gmra.mxu0 %v1016_v0  ;;  %1074 = vmatpush.bf16.xpose.msrb.mxu2 %v5421_v62 }
 0x282   :  { %v1095_v60 = vpack.c.bf16 %v1094_v59, %v1094_v59 }
 0x283   :  { %1007 = vmatpush.bf16.msra.mxu3 %v998_v1  ;;  %1057 = vmatpush.bf16.msra.mxu1 %v1048_v2 }
 0x284   :  { %1219 = vmatpush.bf16.xpose.msrb.mxu0 %v5421_v62 }
 0x289   :  { %1170 = vmatpush.bf16.xpose.msra.mxu2 %v5421_v62 }
 0x290   :  { %1075 = vmatmul.bf16.vlgmr.msrb.gmra.mxu2 %v1066_v6 }
 0x2a0   :  { %1171 = vmatmul.bf16.vlgmr.msra.gmra.mxu2 %v1162_v8 }
 0x2fb   :  { %v876_v9 = vpop.f32.mrf.mxu1 }
 0x2fc   :  { %v877_v43 = vadd.f32 %v5439_v11, %v876_v9 }
 0x2fe   :  { %v5434_v10 = vpop.f32.mrf.mxu0  ;;  %v881_v45 = vsel %vm880_vm10, %v877_v43, -inf }
 0x2ff   :  { %v1027_v5 = vadd.f32 %v5439_v11, %v5434_v10 }
 0x301   :  { %v907_v12 = vpop.f32.mrf.mxu3  ;;  %v1030_v7 = vsel %vm880_vm10, %v1027_v5, -inf }
 0x302   :  { %v908_v13 = vadd.f32 %v5439_v11, %v907_v12 }
 0x303   :  { %v976_v14 = vpop.f32.mrf.mxu2  ;;  %v878_v15 = vpop.f32.mrf.mxu1 }
 0x304   :  { %v911_v17 = vsel %vm880_vm10, %v908_v13, -inf  ;;  %v977_v18 = vadd.f32 %v5439_v11, %v976_v14 }
 0x305   :  { %912 = vmax.xlane.f32.xlu2 %v911_v17 }
 0x306   :  { %v1028_v16 = vpop.f32.mrf.mxu0  ;;  %v980_v40 = vsel %vm880_vm10, %v977_v18, -inf }
 0x309   :  { %v909_v19 = vpop.f32.mrf.mxu3 }
 0x30b   :  { %v978_v36 = vpop.f32.mrf.mxu2 }
 0x30d   :  { %981 = vmax.xlane.f32.xlu2 %v980_v40 }
 0x313   :  { %v5445_v20 = vpop.f32.mrf.mxu2 }
 0x314   :  { %v1077_v10 = vadd.f32 %v5439_v11, %v5445_v20 }
 0x31b   :  { %v1078_v24 = vpop.f32.mrf.mxu2 }
 0x323   :  { %v1172_v25 = vpop.f32.mrf.mxu2 }
 0x324   :  { %v1173_v46 = vadd.f32 %v5439_v11, %v1172_v25 }
 0x326   :  { %v1176_v47 = vsel %vm880_vm10, %v1173_v46, -inf }
 0x32b   :  { %v1174_v27 = vpop.f32.mrf.mxu2 }
 0x32c   :  { %v1080_v27 = vsel %vm880_vm10, %v1077_v10, -inf }
 0x378   :  { %v913_v28 = vpop.xlane.xlu2 %912 }
 0x379   :  { %v914_v29 = vsub.f32 %v908_v13, %v913_v28 }
 0x37b   :  { %v915_v30 = vmul.f32 1.442695, %v914_v29 }
 0x37d   :  { %4925 = vpow2.f32 %v915_v30 }
 0x380   :  { %v982_v31 = vpop.xlane.xlu2 %981 }
 0x381   :  { %v983_v32 = vsub.f32 %v977_v18, %v982_v31 }
 0x383   :  { %v4926_v34 = vpop.eup %4925  ;;  %v984_v35 = vmul.f32 1.442695, %v983_v32 }
 0x384   :  { %v917_v39 = vsel %vm880_vm10, %v4926_v34, 0.0 }
 0x385   :  { %4927 = vpow2.f32 %v984_v35  ;;  %918 = vadd.xlane.f32.xlu0 %v917_v39 }
 0x38b   :  { %v4928_v41 = vpop.eup %4927 }
 0x38c   :  { %v986_v42 = vsel %vm880_vm10, %v4928_v41, 0.0 }
 0x38d   :  { %987 = vadd.xlane.f32.xlu1 %v986_v42 }
 0x395   :  { %882 = vmax.xlane.f32.xlu1 %v881_v45  ;;  %v1091_v45 = vmul.f32 %v5398_v22, %v5408_v44 }
 0x39d   :  { %1177 = vmax.xlane.f32.xlu1 %v1176_v47 }
 0x3f8   :  { %v919_v48 = vpop.xlane.xlu0 %918 }
 0x3f9   :  { %4929 = vrcp.f32 %v919_v48 }
 0x3ff   :  { %v4930_v49 = vpop.eup %4929 }
 0x400   :  { %v921_v50 = vmul.f32 %v4930_v49, %v4926_v34  ;;  %v988_v52 = vpop.xlane.xlu1 %987 }
 0x401   :  { %4931 = vrcp.f32 %v988_v52 }
 0x402   :  { %v924_v51 = vpack.c.bf16 %v921_v50, %v921_v50  ;;  %v1092_v50 = vpack.c.bf16 %v1091_v45, %v1091_v45  ;;  %v4730_v45 = vld [vmem:[%s6436_s10 + $0x8] sm:$0xff] }
 0x404   :  { %3849 = vmatmul.msk.bf16.vlgmr.msrb.gmra.mxu3 %vm880_vm10, %v924_v51  ;;  %v1146_v54 = vsel %vm928_vm9, %v1092_v50, 0 }
 0x405   :  { %1103 = vmatpush.bf16.xpose.msrb.mxu3 %v5421_v62 }
 0x407   :  { %v4932_v53 = vpop.eup %4931 }
 0x408   :  { %v990_v55 = vmul.f32 %v4932_v53, %v4928_v41  ;;  %v883_v13 = vpop.xlane.xlu1 %882 }
 0x409   :  { %v884_v17 = vsub.f32 %v877_v43, %v883_v13 }
 0x40a   :  { %v993_v57 = vpack.c.bf16 %v990_v55, %v990_v55 }
 0x40b   :  { %v885_v36 = vmul.f32 1.442695, %v884_v17 }
 0x410   :  { %v1178_v40 = vpop.xlane.xlu1 %1177 }
 0x411   :  { %v1179_v25 = vsub.f32 %v1173_v46, %v1178_v40  ;;  %v1210_v46 = vmul.f32 %v5406_v38, %v5428_v4  ;;  %v1236_v4 = vmul.f32 %v5406_v38, %v5408_v44 }
 0x413   :  { %v1180_v29 = vmul.f32 1.442695, %v1179_v25  ;;  %v1211_v53 = vpack.c.bf16 %v1210_v46, %v1210_v46 }
 0x414   :  { %3851 = vmatmul.msk.bf16.vlgmr.msra.gmra.mxu3 %vm880_vm10, %v993_v57 }
 0x415   :  { %1203 = vmatpush.bf16.msra.mxu3 %v1194_v58 }
 0x424   :  { %1104 = vmatmul.bf16.vlgmr.msrb.gmra.mxu3 %v1095_v60  ;;  %v1237_v60 = vpack.c.bf16 %v1236_v4, %v1236_v4 }
 0x487   :  { %v5461_v61 = vpop.f32.mrf.mxu3 }
 0x48f   :  { %v943_v62 = vpop.f32.mrf.mxu3 }
 0x497   :  { %v5463_v63 = vpop.f32.mrf.mxu3 }
 0x49f   :  { %v1011_v0 = vpop.f32.mrf.mxu3 }
 0x4a0   :  { %v1243_v0 = vsel %vm928_vm9, %v1237_v60, 0 }
 0x4a7   :  { %v1105_v1 = vpop.f32.mrf.mxu3 }
 0x4a8   :  { %v1106_v2 = vadd.f32 %v5439_v11, %v1105_v1 }
 0x4aa   :  { %v1109_v3 = vsel %vm880_vm10, %v1106_v2, -inf }
 0x4ab   :  { %1110 = vmax.xlane.f32.xlu2 %v1109_v3 }
 0x4af   :  { %v1107_v6 = vpop.f32.mrf.mxu3 }
 0x4b3   :  { %1031 = vmax.xlane.f32.xlu2 %v1030_v7 }
 0x51e   :  { %v1111_v8 = vpop.xlane.xlu2 %1110 }
 0x51f   :  { %v1112_v9 = vsub.f32 %v1106_v2, %v1111_v8 }
 0x521   :  { %v1113_v12 = vmul.f32 1.442695, %v1112_v9 }
 0x523   :  { %4933 = vpow2.f32 %v1113_v12 }
 0x526   :  { %v1032_v14 = vpop.xlane.xlu2 %1031 }
 0x527   :  { %v1033_v15 = vsub.f32 %v1027_v5, %v1032_v14 }
 0x529   :  { %v4934_v16 = vpop.eup %4933  ;;  %v1034_v18 = vmul.f32 1.442695, %v1033_v15 }
 0x52a   :  { %v1115_v19 = vsel %vm880_vm10, %v4934_v16, 0.0 }
 0x52b   :  { %4935 = vpow2.f32 %v1034_v18  ;;  %1116 = vadd.xlane.f32.xlu0 %v1115_v19 }
 0x52c   :  { %4937 = vpow2.f32 %v885_v36 }
 0x52d   :  { %4939 = vpow2.f32 %v1180_v29 }
 0x531   :  { %v4936_v24 = vpop.eup %4935 }
 0x532   :  { %v1036_v28 = vsel %vm880_vm10, %v4936_v24, 0.0  ;;  %v4938_v30 = vpop.eup %4937 }
 0x533   :  { %1081 = vmax.xlane.f32.xlu0 %v1080_v27  ;;  %1037 = vadd.xlane.f32.xlu1 %v1036_v28  ;;  %v887_v31 = vsel %vm880_vm10, %v4938_v30, 0.0  ;;  %v4940_v32 = vpop.eup %4939 }
 0x534   :  { %v1182_v34 = vsel %vm880_vm10, %v4940_v32, 0.0 }
 0x53b   :  { %888 = vadd.xlane.f32.xlu0 %v887_v31  ;;  %v4735_v31 = vld [vmem:[%s6436_s10 + $0x30] sm:$0xff] }
 0x543   :  { %1183 = vadd.xlane.f32.xlu0 %v1182_v34 }
 0x59e   :  { %v1117_v20 = vpop.xlane.xlu0 %1116 }
 0x59f   :  { %4941 = vrcp.f32 %v1117_v20  ;;  %v4733_v20 = vld [vmem:[%s6436_s10 + $0x20] sm:$0xff] }
 0x5a5   :  { %v4942_v35 = vpop.eup %4941 }
 0x5a6   :  { %v1119_v39 = vmul.f32 %v4942_v35, %v4934_v16  ;;  %v1082_v41 = vpop.xlane.xlu0 %1081  ;;  %v1038_v51 = vpop.xlane.xlu1 %1037 }
 0x5a7   :  { %v1083_v3 = vsub.f32 %v1077_v10, %v1082_v41 }
 0x5a8   :  { %v1122_v42 = vpack.c.bf16 %v1119_v39, %v1119_v39  ;;  %v4732_v39 = vld [vmem:[%s6436_s10 + $0x18] sm:$0xff] }
 0x5a9   :  { %v1084_v5 = vmul.f32 1.442695, %v1083_v3 }
 0x5aa   :  { %3853 = vmatmul.msk.bf16.vlgmr.msra.gmra.mxu0 %vm880_vm10, %v1122_v42 }
 0x5ae   :  { %v889_v43 = vpop.xlane.xlu0 %888 }
 0x5af   :  { %4943 = vrcp.f32 %v889_v43  ;;  %v4731_v43 = vld [vmem:[%s6436_s10 + $0x10] sm:$0xff] }
 0x5b5   :  { %v4944_v47 = vpop.eup %4943 }
 0x5b6   :  { %v891_v48 = vmul.f32 %v4944_v47, %v4938_v30  ;;  %v1184_v49 = vpop.xlane.xlu0 %1183 }
 0x5b7   :  { %4945 = vrcp.f32 %v1184_v49 }
 0x5b8   :  { %v894_v52 = vpack.c.bf16 %v891_v48, %v891_v48  ;;  %4947 = vrcp.f32 %v1038_v51  ;;  %v4729_v48 = vld [vmem:[%s6436_s10] sm:$0xff] }
 0x5b9   :  { %4949 = vpow2.f32 %v1084_v5 }
 0x5ba   :  { %3850 = vmatmul.msk.bf16.vlgmr.msrb.gmra.mxu1 %vm880_vm10, %v894_v52  ;;  %1220 = vmatmul.bf16.vlgmr.msrb.gmra.mxu0 %v1211_v53 }
 0x5bb   :  { %1155 = vmatpush.bf16.msrb.mxu1 %v1146_v54 }
 0x5bd   :  { %v4946_v55 = vpop.eup %4945 }
 0x5be   :  { %v1186_v56 = vmul.f32 %v4946_v55, %v4940_v32  ;;  %v4948_v58 = vpop.eup %4947  ;;  %v4734_v32 = vld [vmem:[%s6436_s10 + $0x28] sm:$0xff]  ;;  %v4905_v55 = vld [vmem:[%s6437_s11] ss:$0 sm:$0xff] }
 0x5bf   :  { %v1040_v59 = vmul.f32 %v4948_v58, %v4936_v24  ;;  %v4950_v44 = vpop.eup %4949 }
 0x5c0   :  { %v1189_v57 = vpack.c.bf16 %v1186_v56, %v1186_v56  ;;  %v1086_v15 = vsel %vm880_vm10, %v4950_v44, 0.0 }
 0x5c1   :  { %v1043_v62 = vpack.c.bf16 %v1040_v59, %v1040_v59 }
 0x5c2   :  { %3855 = vmatmul.msk.bf16.vlgmr.msra.gmra.mxu3 %vm880_vm10, %v1189_v57 }
 0x5ca   :  { %3852 = vmatmul.msk.bf16.vlgmr.msra.gmra.mxu1 %vm880_vm10, %v1043_v62 }
 0x5cb   :  { %1252 = vmatpush.bf16.msra.mxu1 %v1243_v0 }
 0x627   :  { %v1138_v1 = vpop.f32.mrf.mxu0 }
 0x62f   :  { %v1140_v2 = vpop.f32.mrf.mxu0 }
 0x637   :  { %v960_v6 = vpop.f32.mrf.mxu1  ;;  %v1221_v7 = vpop.f32.mrf.mxu0 }
 0x638   :  { %v1222_v8 = vadd.f32 %v5439_v11, %v1221_v7  ;;  %v961_v14 = vadd.f32 %v960_v6, %v5461_v61  ;;  %v4003_v6 = vld [vmem:[%s6440_s14 + $0xe0] sm:$0xf]  ;;  %v4767_v7 = vld [vmem:[%s6440_s14 + $0xec] sm:$0xf0] }
 0x63a   :  { %v1225_v9 = vsel %vm880_vm10, %v1222_v8, -inf  ;;  %v1013_v17 = vadd.f32 %v5463_v63, %v961_v14  ;;  %v4736_v63 = vld [vmem:[%s6436_s10 + $0x38] sm:$0xff] }
 0x63b   :  { %1226 = vmax.xlane.f32.xlu2 %v1225_v9  ;;  %1328 = vmatpush.bf16.msrb.mxu2 %v4736_v63  ;;  %v4004_v9 = vor.u32 %v4767_v7, %v4003_v6  ;;  %v3971_v63 = vld [vmem:[%s6440_s14 + $0xa0] sm:$0xf] }
 0x63d   :  { %1599 = vmatpush.bf16.msrb.mxu3 %v4004_v9  ;;  %v3949_v9 = vld [vmem:[%s6440_s14 + $0x78] sm:$0xf0] }
 0x63f   :  { %v962_v12 = vpop.f32.mrf.mxu1  ;;  %v1223_v13 = vpop.f32.mrf.mxu0  ;;  %1329 = vmatpush.bf16.msrb.mxu2 %v4735_v31  ;;  %v4759_v31 = vld [vmem:[%s6440_s14 + $0xac] sm:$0xf0] }
 0x640   :  { %v4011_v12 = vld [vmem:[%s6440_s14 + $0xe8] sm:$0xf]  ;;  %v4768_v13 = vld [vmem:[%s6440_s14 + $0xf4] sm:$0xf0] }
 0x643   :  { %1087 = vadd.xlane.f32.xlu2 %v1086_v15  ;;  %1330 = vmatpush.bf16.msrb.mxu2 %v4734_v32  ;;  %v4012_v15 = vor.u32 %v4768_v13, %v4011_v12  ;;  %v4757_v32 = vld [vmem:[%s6440_s14 + $0xa4] sm:$0xf]  ;;  %v3923_v12 = vld [vmem:[%s6440_s14 + $0x40] sm:$0xf]  ;;  %v4747_v13 = vld [vmem:[%s6440_s14 + $0x4c] sm:$0xf0] }
 0x645   :  { %v1205_v16 = vpop.f32.mrf.mxu3 }
 0x647   :  { %v1059_v18 = vpop.f32.mrf.mxu1  ;;  %1331 = vmatpush.bf16.msrb.mxu2 %v4733_v20  ;;  %v3973_v20 = vld [vmem:[%s6440_s14 + $0xb0] sm:$0xf0] }
 0x648   :  { %v1063_v19 = vadd.f32 %v1059_v18, %v1013_v17  ;;  %v4013_v17 = vld [vmem:[%s6440_s14 + $0xf8] sm:$0xf0] }
 0x64b   :  { %1332 = vmatpush.bf16.msrb.mxu2 %v4732_v39  ;;  %v4760_v39 = vld [vmem:[%s6440_s14 + $0xb4] sm:$0xf0] }
 0x64d   :  { %v1207_v36 = vpop.f32.mrf.mxu3 }
 0x64e   :  { %v4763_v36 = vld [vmem:[%s6440_s14 + $0xcc] sm:$0xf0] }
 0x64f   :  { %v1061_v10 = vpop.f32.mrf.mxu1  ;;  %1333 = vmatpush.bf16.msrb.mxu2 %v4731_v43  ;;  %v4758_v43 = vld [vmem:[%s6440_s14 + $0xac] sm:$0xf] }
 0x650   :  { %v4761_v10 = vld [vmem:[%s6440_s14 + $0xc4] sm:$0xf] }
 0x653   :  { %1334 = vmatpush.bf16.msrb.mxu2 %v4730_v45  ;;  %v3981_v45 = vld [vmem:[%s6440_s14 + $0xb8] sm:$0xf0] }
 0x657   :  { %1335 = vmatpush.bf16.msrb.mxu2 %v4729_v48  ;;  %v4755_v48 = vld [vmem:[%s6440_s14 + $0x8c] sm:$0xf0] }
 0x6ae   :  { %v1227_v11 = vpop.xlane.xlu2 %1226 }
 0x6af   :  { %v1228_v40 = vsub.f32 %v1222_v8, %v1227_v11  ;;  %v4765_v8 = vld [vmem:[%s6440_s14 + $0xe4] sm:$0xf] }
 0x6b1   :  { %v1229_v24 = vmul.f32 1.442695, %v1228_v40  ;;  %v3989_v40 = vld [vmem:[%s6440_s14 + $0xd0] sm:$0xf0] }
 0x6b3   :  { %4951 = vpow2.f32 %v1229_v24  ;;  %v3995_v24 = vld [vmem:[%s6440_s14 + $0xc8] sm:$0xf] }
 0x6b6   :  { %v1088_v25 = vpop.xlane.xlu2 %1087 }
 0x6b7   :  { %4953 = vrcp.f32 %v1088_v25  ;;  %v4764_v25 = vld [vmem:[%s6440_s14 + $0xd4] sm:$0xf0] }
 0x6b9   :  { %v4952_v27 = vpop.eup %4951 }
 0x6ba   :  { %v1231_v28 = vsel %vm880_vm10, %v4952_v27, 0.0 }
 0x6bb   :  { %1232 = vadd.xlane.f32.xlu1 %v1231_v28  ;;  %v3996_v28 = vor.u32 %v4764_v25, %v3995_v24  ;;  %v3907_v24 = vld [vmem:[%s6440_s14 + $0x20] sm:$0xf]  ;;  %v4743_v25 = vld [vmem:[%s6440_s14 + $0x2c] sm:$0xf0] }
 0x6bd   :  { %v4954_v61 = vpop.eup %4953 }
 0x6be   :  { %v1090_v29 = vmul.f32 %v4954_v61, %v4950_v44  ;;  %v4005_v44 = vld [vmem:[%s6440_s14 + $0xf0] sm:$0xf0]  ;;  %v4762_v61 = vld [vmem:[%s6440_s14 + $0xcc] sm:$0xf] }
 0x6bf   :  { %v4008_v14 = vor.u32 %v4765_v8, %v4005_v44  ;;  %v4750_v8 = vld [vmem:[%s6440_s14 + $0x6c] sm:$0xf] }
 0x6c0   :  { %v1093_v30 = vpack.c.bf16 %v1090_v29, %v1090_v29  ;;  %v3997_v29 = vld [vmem:[%s6440_s14 + $0xd8] sm:$0xf0]  ;;  %v3952_v44 = vor.u32 %v4750_v8, %v3949_v9 }
 0x6c1   :  { %1613 = vmatpush.bf16.msra.mxu0 %v4008_v14  ;;  %v4745_v14 = vld [vmem:[%s6440_s14 + $0x44] sm:$0xf] }
 0x6c2   :  { %3854 = vmatmul.msk.bf16.vlgmr.msrb.gmra.mxu1 %vm880_vm10, %v1093_v30  ;;  %v4000_v30 = vor.u32 %v4762_v61, %v3997_v29  ;;  %v3908_v61 = vor.u32 %v4743_v25, %v3907_v24  ;;  %v3909_v29 = vld [vmem:[%s6440_s14 + $0x30] sm:$0xf0]  ;;  %v4776_v24 = vld [vmem:[%s6442_s16 + $0x38] sm:$0xff] }
 0x6c3   :  { %1627 = vmatpush.bf16.msrb.mxu1 %v4012_v15  ;;  %v3924_v15 = vor.u32 %v4747_v13, %v3923_v12  ;;  %v4906_v12 = vld [vmem:[%s6438_s12] ss:$0 sm:$0xff]  ;;  %v4800_v25 = vld [vmem:[%s6442_s16 + $0xf8] sm:$0xff] }
 0x6c7   :  { %1628 = vmatpush.bf16.msrb.mxu1 %v3996_v28 }
 0x72e   :  { %v1233_v34 = vpop.xlane.xlu1 %1232 }
 0x72f   :  { %4955 = vrcp.f32 %v1233_v34  ;;  %v3972_v34 = vor.u32 %v4759_v31, %v3971_v63  ;;  %v4744_v63 = vld [vmem:[%s6440_s14 + $0x34] sm:$0xf0] }
 0x735   :  { %v4956_v35 = vpop.eup %4955 }
 0x736   :  { %v1235_v41 = vmul.f32 %v4956_v35, %v4952_v27  ;;  %v3992_v27 = vor.u32 %v4761_v10, %v3989_v40  ;;  %v3979_v35 = vld [vmem:[%s6440_s14 + $0xa8] sm:$0xf]  ;;  %v4746_v10 = vld [vmem:[%s6440_s14 + $0x4c] sm:$0xf] }
 0x738   :  { %v1238_v42 = vpack.c.bf16 %v1235_v41, %v1235_v41  ;;  %1614 = vmatpush.bf16.msra.mxu0 %v3992_v27  ;;  %v3976_v41 = vor.u32 %v4757_v32, %v3973_v20  ;;  %v4741_v27 = vld [vmem:[%s6440_s14 + $0x24] sm:$0xf]  ;;  %v4742_v20 = vld [vmem:[%s6440_s14 + $0x2c] sm:$0xf] }
 0x739   :  { %v3912_v32 = vor.u32 %v4741_v27, %v3909_v29  ;;  %v4782_v27 = vld [vmem:[%s6442_s16 + $0x68] sm:$0xff]  ;;  %v4799_v29 = vld [vmem:[%s6442_s16 + $0xf0] sm:$0xff] }
 0x73a   :  { %3856 = vmatmul.msk.bf16.vlgmr.msra.gmra.mxu1 %vm880_vm10, %v1238_v42  ;;  %v3980_v42 = vor.u32 %v4760_v39, %v3979_v35  ;;  %v3917_v35 = vld [vmem:[%s6440_s14 + $0x38] sm:$0xf0]  ;;  %v3891_v39 = vld [vmem:[%s6440_s14] sm:$0xf] }
 0x73c   :  { %1615 = vmatpush.bf16.msra.mxu0 %v3976_v41  ;;  %1629 = vmatpush.bf16.msrb.mxu1 %v3980_v42  ;;  %v3920_v41 = vor.u32 %v4742_v20, %v3917_v35  ;;  %v4739_v42 = vld [vmem:[%s6440_s14 + $0xc] sm:$0xf0]  ;;  %v4788_v20 = vld [vmem:[%s6442_s16 + $0x98] sm:$0xff]  ;;  %v4773_v35 = vld [vmem:[%s6442_s16 + $0x20] sm:$0xff] }
 0x73f   :  { %v1157_v46 = vpop.f32.mrf.mxu1 }
 0x740   :  { %v1158_v49 = vadd.f32 %v1157_v46, %v1138_v1  ;;  %v3984_v46 = vor.u32 %v4758_v43, %v3981_v45  ;;  %v4737_v43 = vld [vmem:[%s6440_s14 + $0x4] sm:$0xf]  ;;  %v3893_v45 = vld [vmem:[%s6440_s14 + $0x10] sm:$0xf0] }
 0x742   :  { %v1209_v50 = vadd.f32 %v1205_v16, %v1158_v49  ;;  %v4766_v16 = vld [vmem:[%s6440_s14 + $0xec] sm:$0xf]  ;;  %v4753_v49 = vld [vmem:[%s6440_s14 + $0x84] sm:$0xf] }
 0x743   :  { %v4016_v18 = vor.u32 %v4766_v16, %v4013_v17  ;;  %v3925_v16 = vld [vmem:[%s6440_s14 + $0x50] sm:$0xf0]  ;;  %v3931_v17 = vld [vmem:[%s6440_s14 + $0x48] sm:$0xf] }
 0x745   :  { %1641 = vmatpush.bf16.msra.mxu2 %v4016_v18  ;;  %v4748_v18 = vld [vmem:[%s6440_s14 + $0x54] sm:$0xf0] }
 0x747   :  { %v1159_v47 = vpop.f32.mrf.mxu1 }
 0x748   :  { %v3955_v47 = vld [vmem:[%s6440_s14 + $0x80] sm:$0xf] }
 0x749   :  { %1642 = vmatpush.bf16.msra.mxu2 %v4000_v30  ;;  %v3915_v30 = vld [vmem:[%s6440_s14 + $0x28] sm:$0xf] }
 0x74d   :  { %1643 = vmatpush.bf16.msra.mxu2 %v3984_v46 }
 0x7b7   :  { %v1254_v51 = vpop.f32.mrf.mxu1 }
 0x7b8   :  { %v1258_v52 = vadd.f32 %v1254_v51, %v1209_v50  ;;  %v3956_v50 = vor.u32 %v4755_v48, %v3955_v47  ;;  %v3957_v51 = vld [vmem:[%s6440_s14 + $0x90] sm:$0xf0]  ;;  %v3892_v47 = vor.u32 %v4739_v42, %v3891_v39  ;;  %v3899_v48 = vld [vmem:[%s6440_s14 + $0x8] sm:$0xf]  ;;  %v4797_v39 = vld [vmem:[%s6442_s16 + $0xe0] sm:$0xff] }
 0x7b9   :  { %v4787_v42 = vld [vmem:[%s6442_s16 + $0x90] sm:$0xff] }
 0x7ba   :  { %v1259_v53 = vpack.c.bf16 %v1258_v52, %v1063_v19  ;;  %v3987_v19 = vld [vmem:[%s6440_s14 + $0xc0] sm:$0xf]  ;;  %v3963_v52 = vld [vmem:[%s6440_s14 + $0x88] sm:$0xf] }
 0x7bb   :  { %v3988_v11 = vor.u32 %v4763_v36, %v3987_v19  ;;  %v3928_v19 = vor.u32 %v4745_v14, %v3925_v16  ;;  %v3932_v36 = vor.u32 %v4748_v18, %v3931_v17  ;;  %v4907_v17 = vld [vmem:[%s6439_s13] ss:$0 sm:$0xff] }
 0x7bc   :  { %1336 = vmatmul.bf16.vlgmr.msrb.gmra.mxu2 %v1259_v53  ;;  %v4756_v53 = vld [vmem:[%s6440_s14 + $0x94] sm:$0xf0] }
 0x7bd   :  { %1600 = vmatpush.bf16.msrb.mxu3 %v3988_v11  ;;  %v3933_v11 = vld [vmem:[%s6440_s14 + $0x58] sm:$0xf0] }
 0x7be   :  { %v3936_v40 = vor.u32 %v4746_v10, %v3933_v11  ;;  %v4783_v11 = vld [vmem:[%s6442_s16 + $0x70] sm:$0xff] }
 0x7bf   :  { %v1256_v54 = vpop.f32.mrf.mxu1 }
 0x7c0   :  { %v3960_v54 = vor.u32 %v4753_v49, %v3957_v51  ;;  %v4740_v49 = vld [vmem:[%s6440_s14 + $0x14] sm:$0xf0] }
 0x7c1   :  { %1601 = vmatpush.bf16.msrb.mxu3 %v3972_v34  ;;  %v3916_v34 = vor.u32 %v4744_v63, %v3915_v30  ;;  %v3900_v51 = vor.u32 %v4740_v49, %v3899_v48  ;;  %v4781_v30 = vld [vmem:[%s6442_s16 + $0x60] sm:$0xff]  ;;  %v4786_v48 = vld [vmem:[%s6442_s16 + $0x88] sm:$0xff]  ;;  %v4771_v49 = vld [vmem:[%s6442_s16 + $0x10] sm:$0xff] }
 0x7c2   :  { %1616 = vmatpush.bf16.msra.mxu0 %v3960_v54  ;;  %v4789_v63 = vld [vmem:[%s6442_s16 + $0xa0] sm:$0xff] }
 0x7c5   :  { %1602 = vmatpush.bf16.msrb.mxu3 %v3956_v50  ;;  %v3896_v50 = vor.u32 %v4737_v43, %v3893_v45  ;;  %v5809_v43 = vld [vmem:[%s6441_s15] sm:$0xf]  ;;  %v4772_v45 = vld [vmem:[%s6442_s16 + $0x18] sm:$0xff] }
 0x83f   :  { %v1337_v56 = vpop.f32.mrf.mxu2 }
 0x840   :  { %v1338_v57 = vadd.f32 %v4905_v55, %v1337_v56  ;;  %v4754_v56 = vld [vmem:[%s6440_s14 + $0x8c] sm:$0xf] }
 0x842   :  { %v5525_v58 = vadd.f32 %v1338_v57, %v5356_v23  ;;  %v3965_v57 = vld [vmem:[%s6440_s14 + $0x98] sm:$0xf0] }
 0x844   :  { %1346 = vadd.xlane.f32.xlu2 %v5525_v58 }
 0x847   :  { %v1339_v4 = vpop.f32.mrf.mxu2 }
 0x848   :  { %v1340_v59 = vadd.f32 %v4905_v55, %v1339_v4  ;;  %v3964_v55 = vor.u32 %v4756_v53, %v3963_v52  ;;  %v3968_v4 = vor.u32 %v4754_v56, %v3965_v57  ;;  %v4738_v52 = vld [vmem:[%s6440_s14 + $0xc] sm:$0xf]  ;;  %v3901_v53 = vld [vmem:[%s6440_s14 + $0x18] sm:$0xf0] }
 0x849   :  { %v3904_v54 = vor.u32 %v4738_v52, %v3901_v53  ;;  %v1433_v52 = vperm.slane %v5809_v43, 2  ;;  %v4777_v53 = vld [vmem:[%s6442_s16 + $0x40] sm:$0xff] }
 0x84a   :  { %v5529_v60 = vadd.f32 %v1340_v59, %v5360_v26  ;;  %1630 = vmatpush.bf16.msrb.mxu1 %v3964_v55  ;;  %v3939_v59 = vld [vmem:[%s6440_s14 + $0x60] sm:$0xf]  ;;  %1644 = vmatpush.bf16.msra.mxu2 %v3968_v4 }
 0x84c   :  { %1348 = vadd.xlane.f32.xlu0 %v5529_v60 }
 0x84e   :  { %1645 = vmatpush.bf16.msra.mxu2 %v3952_v44 }
 0x852   :  { %1646 = vmatpush.bf16.msra.mxu2 %v3936_v40  ;;  %v4791_v40 = vld [vmem:[%s6442_s16 + $0xb0] sm:$0xff] }
 0x856   :  { %1647 = vmatpush.bf16.msra.mxu2 %v3920_v41  ;;  %v4779_v41 = vld [vmem:[%s6442_s16 + $0x50] sm:$0xff] }
 0x85a   :  { %1648 = vmatpush.bf16.msra.mxu2 %v3904_v54  ;;  %v4785_v54 = vld [vmem:[%s6442_s16 + $0x80] sm:$0xff] }
 0x85e   :  { %2033 = vmatpush.bf16.msrb.mxu2 %v4800_v25 }
 0x862   :  { %2034 = vmatpush.bf16.msrb.mxu2 %v4799_v29 }
 0x8b7   :  { %v1347_v62 = vpop.xlane.xlu2 %1346 }
 0x8b8   :  { %v1350_v0 = vmul.f32 %v1347_v62, %v5363_v33  ;;  %v4751_v62 = vld [vmem:[%s6440_s14 + $0x6c] sm:$0xf0] }
 0x8ba   :  { %v5534_v1 = vsub.f32 %v5525_v58, %v1350_v0  ;;  %v4749_v0 = vld [vmem:[%s6440_s14 + $0x64] sm:$0xf] }
 0x8bc   :  { %v1354_v2 = vmul.f32 %v5534_v1, %v5534_v1 }
 0x8be   :  { %1356 = vadd.xlane.f32.xlu1 %v1354_v2  ;;  %v3940_v2 = vor.u32 %v4751_v62, %v3939_v59 }
 0x8bf   :  { %v1349_v23 = vpop.xlane.xlu0 %1348 }
 0x8c0   :  { %v1351_v3 = vmul.f32 %v1349_v23, %v5363_v33  ;;  %v3941_v23 = vld [vmem:[%s6440_s14 + $0x70] sm:$0xf0]  ;;  %1603 = vmatpush.bf16.msrb.mxu3 %v3940_v2 }
 0x8c1   :  { %v3944_v6 = vor.u32 %v4749_v0, %v3941_v23 }
 0x8c2   :  { %v5540_v5 = vsub.f32 %v5529_v60, %v1351_v3  ;;  %v3947_v3 = vld [vmem:[%s6440_s14 + $0x68] sm:$0xf] }
 0x8c3   :  { %1617 = vmatpush.bf16.msra.mxu0 %v3944_v6 }
 0x8c4   :  { %v1355_v26 = vmul.f32 %v5540_v5, %v5540_v5  ;;  %1604 = vmatpush.bf16.msrb.mxu3 %v3924_v15 }
 0x8c6   :  { %1358 = vadd.xlane.f32.xlu2 %v1355_v26  ;;  %v4752_v26 = vld [vmem:[%s6440_s14 + $0x74] sm:$0xf0] }
 0x8c7   :  { %v3948_v7 = vor.u32 %v4752_v26, %v3947_v3  ;;  %1618 = vmatpush.bf16.msra.mxu0 %v3928_v19 }
 0x8c8   :  { %1605 = vmatpush.bf16.msrb.mxu3 %v3908_v61  ;;  %v4775_v61 = vld [vmem:[%s6442_s16 + $0x30] sm:$0xff] }
 0x8c9   :  { %1631 = vmatpush.bf16.msrb.mxu1 %v3948_v7 }
 0x8cb   :  { %1619 = vmatpush.bf16.msra.mxu0 %v3912_v32  ;;  %v4798_v32 = vld [vmem:[%s6442_s16 + $0xe8] sm:$0xff] }
 0x8cc   :  { %1606 = vmatpush.bf16.msrb.mxu3 %v3892_v47  ;;  %2035 = vmatpush.bf16.msrb.mxu2 %v4798_v32  ;;  %v4778_v47 = vld [vmem:[%s6442_s16 + $0x48] sm:$0xff] }
 0x8cd   :  { %1632 = vmatpush.bf16.msrb.mxu1 %v3932_v36 }
 0x8cf   :  { %1620 = vmatpush.bf16.msra.mxu0 %v3896_v50  ;;  %v4795_v50 = vld [vmem:[%s6442_s16 + $0xd0] sm:$0xff] }
 0x8d0   :  { %1991 = vmatpush.bf16.msra.mxu3 %v4776_v24  ;;  %2036 = vmatpush.bf16.msrb.mxu2 %v4797_v39 }
 0x8d1   :  { %1633 = vmatpush.bf16.msrb.mxu1 %v3916_v34  ;;  %v4780_v34 = vld [vmem:[%s6442_s16 + $0x58] sm:$0xff] }
 0x8d4   :  { %1992 = vmatpush.bf16.msra.mxu3 %v4775_v61 }
 0x8d5   :  { %1634 = vmatpush.bf16.msrb.mxu1 %v3900_v51  ;;  %v1432_v51 = vperm.slane %v5809_v43, 1 }
 0x931   :  { %v1357_v28 = vpop.xlane.xlu1 %1356 }
 0x932   :  { %v1360_v31 = vmul.f32 %v1357_v28, %v5363_v33  ;;  %v4790_v28 = vld [vmem:[%s6442_s16 + $0xa8] sm:$0xff] }
 0x934   :  { %v1362_v46 = vadd.f32 1e-06, %v1360_v31  ;;  %v4774_v31 = vld [vmem:[%s6442_s16 + $0x28] sm:$0xff] }
 0x935   :  { %1993 = vmatpush.bf16.msra.mxu3 %v4774_v31 }
 0x936   :  { %4957 = vrsqrt.f32 %v1362_v46  ;;  %vm1370_vm12 = vweird.f32 %v1362_v46 }
 0x939   :  { %v1359_v55 = vpop.xlane.xlu2 %1358  ;;  %1994 = vmatpush.bf16.msra.mxu3 %v4773_v35 }
 0x93a   :  { %v1361_v56 = vmul.f32 %v1359_v55, %v5363_v33 }
 0x93c   :  { %v4958_v57 = vpop.eup %4957  ;;  %v1363_v4 = vadd.f32 1e-06, %v1361_v56  ;;  %v4770_v56 = vld [vmem:[%s6442_s16 + $0x8] sm:$0xff] }
 0x93d   :  { %v1365_v59 = vmul.f32 %v4958_v57, %v1362_v46  ;;  %vm1371_vm11 = vweird.f32 %v4958_v57  ;;  %v4796_v46 = vld [vmem:[%s6442_s16 + $0xd8] sm:$0xff]  ;;  %1995 = vmatpush.bf16.msra.mxu3 %v4772_v45 }
 0x93e   :  { %4959 = vrsqrt.f32 %v1363_v4  ;;  %vm1372_vm13 = vmor %vm1370_vm12, %vm1371_vm11  ;;  %vm1380_vm15 = vweird.f32 %v1363_v4  ;;  %2037 = vmatpush.bf16.msrb.mxu2 %v4796_v46 }
 0x93f   :  { %v1366_v62 = vmul.f32 %v4958_v57, %v1365_v59 }
 0x941   :  { %v1367_v0 = vmul.f32 0.5, %v1366_v62  ;;  %1996 = vmatpush.bf16.msra.mxu3 %v4771_v49 }
 0x942   :  { %2038 = vmatpush.bf16.msrb.mxu2 %v4795_v50 }
 0x943   :  { %v1368_v2 = vsub.f32 1.5, %v1367_v0 }
 0x944   :  { %v4960_v23 = vpop.eup %4959 }
 0x945   :  { %v1369_v3 = vmul.f32 %v4958_v57, %v1368_v2  ;;  %v1375_v26 = vmul.f32 %v4960_v23, %v1363_v4  ;;  %vm1381_vm14 = vweird.f32 %v4960_v23  ;;  %v1431_v2 = vperm.slane %v5809_v43, 0  ;;  %1997 = vmatpush.bf16.msra.mxu3 %v4770_v56 }
 0x946   :  { %vm1382_vm1 = vmor %vm1380_vm15, %vm1381_vm14  ;;  %vm3510_vm14 = vcmask 1041408  }
 0x947   :  { %v1376_v6 = vmul.f32 %v4960_v23, %v1375_v26  ;;  %v1373_v7 = vsel %vm1372_vm13, %v4958_v57, %v1369_v3  ;;  %v4794_v57 = vld [vmem:[%s6442_s16 + $0xc8] sm:$0xff]  ;;  %v1434_v3 = vperm.slane %v5809_v43, 3  ;;  %v4769_v26 = vld [vmem:[%s6442_s16] sm:$0xff] }
 0x948   :  { %v1384_v44 = vmul.f32 %v1373_v7, %v5534_v1  ;;  %v4784_v1 = vld [vmem:[%s6442_s16 + $0x78] sm:$0xff]  ;;  %2039 = vmatpush.bf16.msrb.mxu2 %v4794_v57 }
 0x949   :  { %v1377_v8 = vmul.f32 0.5, %v1376_v6  ;;  %2005 = vmatpush.bf16.msrb.mxu0 %v4784_v1  ;;  %v4793_v6 = vld [vmem:[%s6442_s16 + $0xc0] sm:$0xff]  ;;  %1998 = vmatpush.bf16.msra.mxu3 %v4769_v26 }
 0x94a   :  { %v1389_v16 = vmul.f32 %v4906_v12, %v1384_v44 }
 0x94b   :  { %v1378_v9 = vsub.f32 1.5, %v1377_v8 }
 0x94c   :  { %v1394_v19 = vadd.f32 %v4907_v17, %v1389_v16  ;;  %2040 = vmatpush.bf16.msrb.mxu2 %v4793_v6 }
 0x94d   :  { %v1379_v13 = vmul.f32 %v4960_v23, %v1378_v9  ;;  %2006 = vmatpush.bf16.msrb.mxu0 %v4783_v11 }
 0x94f   :  { %v1383_v14 = vsel %vm1382_vm1, %v4960_v23, %v1379_v13 }
 0x950   :  { %v1385_v15 = vmul.f32 %v1383_v14, %v5540_v5  ;;  %v4792_v5 = vld [vmem:[%s6442_s16 + $0xb8] sm:$0xff] }
 0x951   :  { %2019 = vmatpush.bf16.msra.mxu1 %v4792_v5  ;;  %2007 = vmatpush.bf16.msrb.mxu0 %v4782_v27 }
 0x952   :  { %v1390_v18 = vmul.f32 %v4906_v12, %v1385_v15 }
 0x954   :  { %v1395_v36 = vadd.f32 %v4907_v17, %v1390_v18 }
 0x955   :  { %2020 = vmatpush.bf16.msra.mxu1 %v4791_v40  ;;  %2008 = vmatpush.bf16.msrb.mxu0 %v4781_v30 }
 0x956   :  { %v1396_v10 = vpack.c.bf16 %v1395_v36, %v1394_v19 }
 0x958   :  { %1607 = vmatmul.bf16.vlgmr.msrb.gmra.mxu3 %v1396_v10  ;;  %1621 = vmatmul.bf16.vlgmr.msra.gmra.mxu0 %v1396_v10 }
 0x959   :  { %1635 = vmatmul.bf16.vlgmr.msrb.gmra.mxu1 %v1396_v10  ;;  %1649 = vmatmul.bf16.vlgmr.msra.gmra.mxu2 %v1396_v10 }
 0x95a   :  { %2021 = vmatpush.bf16.msra.mxu1 %v4790_v28  ;;  %2009 = vmatpush.bf16.msrb.mxu0 %v4780_v34 }
 0x95e   :  { %2022 = vmatpush.bf16.msra.mxu1 %v4789_v63  ;;  %2010 = vmatpush.bf16.msrb.mxu0 %v4779_v41 }
 0x962   :  { %2023 = vmatpush.bf16.msra.mxu1 %v4788_v20  ;;  %2011 = vmatpush.bf16.msrb.mxu0 %v4778_v47 }
 0x966   :  { %2024 = vmatpush.bf16.msra.mxu1 %v4787_v42  ;;  %2012 = vmatpush.bf16.msrb.mxu0 %v4777_v53 }
 0x96a   :  { %2025 = vmatpush.bf16.msra.mxu1 %v4786_v48 }
 0x96e   :  { %2026 = vmatpush.bf16.msra.mxu1 %v4785_v54 }
 0x9d5   :  { %v1622_v55 = vpop.f32.mrf.mxu0 }
 0x9d6   :  { %v5843_v4 = vadd.f32 %v1622_v55, %v1432_v51  ;;  %v1636_v59 = vpop.f32.mrf.mxu1 }
 0x9d7   :  { %v5845_v62 = vadd.f32 %v1636_v59, %v1433_v52 }
 0x9d8   :  { %v1664_v0 = vmul.f32 0.044715, %v5843_v4 }
 0x9d9   :  { %v1665_v23 = vmul.f32 0.044715, %v5845_v62 }
 0x9da   :  { %v1672_v7 = vmul.f32 %v1664_v0, %v5843_v4 }
 0x9db   :  { %v1673_v8 = vmul.f32 %v1665_v23, %v5845_v62  ;;  %v1608_v9 = vpop.f32.mrf.mxu3 }
 0x9dc   :  { %v1680_v44 = vmul.f32 %v1672_v7, %v5843_v4  ;;  %v5860_v12 = vadd.f32 %v1608_v9, %v1431_v2  ;;  %v1650_v13 = vpop.f32.mrf.mxu2 }
 0x9dd   :  { %v1681_v14 = vmul.f32 %v1673_v8, %v5845_v62  ;;  %v5863_v15 = vadd.f32 %v1650_v13, %v1434_v3  ;;  %v1624_v16 = vpop.f32.mrf.mxu0  ;;  %v1656_v8 = vmul.f32 0.5, %v5843_v4 }
 0x9de   :  { %v1688_v17 = vadd.f32 %v1680_v44, %v5843_v4  ;;  %v1663_v18 = vmul.f32 0.044715, %v5860_v12  ;;  %v1625_v19 = vadd.f32 %v1624_v16, %v1432_v51  ;;  %v1638_v36 = vpop.f32.mrf.mxu1  ;;  %v1655_v4 = vmul.f32 0.5, %v5860_v12 }
 0x9df   :  { %v1689_v10 = vadd.f32 %v1681_v14, %v5845_v62  ;;  %v1666_v1 = vmul.f32 0.044715, %v5863_v15  ;;  %v1639_v5 = vadd.f32 %v1638_v36, %v1433_v52  ;;  %v1657_v14 = vmul.f32 0.5, %v5845_v62 }
 0x9e0   :  { %v1671_v11 = vmul.f32 %v1663_v18, %v5860_v12  ;;  %v1668_v40 = vmul.f32 0.044715, %v1625_v19  ;;  %v1696_v27 = vmul.f32 0.7978846, %v1688_v17  ;;  %v1660_v9 = vmul.f32 0.5, %v1625_v19 }
 0x9e1   :  { %v1674_v24 = vmul.f32 %v1666_v1, %v5863_v15  ;;  %v1669_v25 = vmul.f32 0.044715, %v1639_v5  ;;  %v1697_v29 = vmul.f32 0.7978846, %v1689_v10  ;;  %v1661_v16 = vmul.f32 0.5, %v1639_v5 }
 0x9e2   :  { %v1679_v28 = vmul.f32 %v1671_v11, %v5860_v12  ;;  %v1676_v61 = vmul.f32 %v1668_v40, %v1625_v19  ;;  %4961 = vtanh.f32 %v1696_v27  ;;  %v1658_v62 = vmul.f32 0.5, %v5863_v15 }
 0x9e3   :  { %v1682_v30 = vmul.f32 %v1674_v24, %v5863_v15  ;;  %v1677_v63 = vmul.f32 %v1669_v25, %v1639_v5  ;;  %v1610_v31 = vpop.f32.mrf.mxu3  ;;  %4963 = vtanh.f32 %v1697_v29 }
 0x9e4   :  { %v1687_v32 = vadd.f32 %v1679_v28, %v5860_v12  ;;  %v1684_v34 = vmul.f32 %v1676_v61, %v1625_v19  ;;  %v1611_v20 = vadd.f32 %v1610_v31, %v1431_v2  ;;  %v1652_v35 = vpop.f32.mrf.mxu2 }
 0x9e5   :  { %v1690_v39 = vadd.f32 %v1682_v30, %v5863_v15  ;;  %v1685_v41 = vmul.f32 %v1677_v63, %v1639_v5  ;;  %v1653_v42 = vadd.f32 %v1652_v35, %v1434_v3 }
 0x9e6   :  { %v1692_v43 = vadd.f32 %v1684_v34, %v1625_v19  ;;  %v1667_v45 = vmul.f32 0.044715, %v1611_v20  ;;  %v1695_v48 = vmul.f32 0.7978846, %v1687_v32  ;;  %v1659_v19 = vmul.f32 0.5, %v1611_v20 }
 0x9e7   :  { %v1693_v46 = vadd.f32 %v1685_v41, %v1639_v5  ;;  %v1670_v47 = vmul.f32 0.044715, %v1653_v42  ;;  %v1698_v51 = vmul.f32 0.7978846, %v1690_v39  ;;  %v1662_v5 = vmul.f32 0.5, %v1653_v42 }
 0x9e8   :  { %v1700_v49 = vmul.f32 0.7978846, %v1692_v43  ;;  %v1675_v50 = vmul.f32 %v1667_v45, %v1611_v20  ;;  %v4962_v56 = vpop.eup %4961  ;;  %v4908_v41 = vld [vmem:[%s6443_s17] ss:$0 sm:$0xff] }
 0x9e9   :  { %v1701_v52 = vmul.f32 0.7978846, %v1693_v46  ;;  %v1678_v53 = vmul.f32 %v1670_v47, %v1653_v42  ;;  %v4964_v59 = vpop.eup %4963  ;;  %v1712_v3 = vadd.f32 1.0, %v4962_v56 }
 0x9ea   :  { %v1683_v54 = vmul.f32 %v1675_v50, %v1611_v20  ;;  %4965 = vtanh.f32 %v1700_v49  ;;  %v1713_v6 = vadd.f32 1.0, %v4964_v59 }
 0x9eb   :  { %v1686_v55 = vmul.f32 %v1678_v53, %v1653_v42  ;;  %4967 = vtanh.f32 %v1701_v52  ;;  %v1720_v36 = vmul.f32 %v1712_v3, %v1656_v8  ;;  %v4822_v8 = vld [vmem:[#allocation3 + $0x16c] sm:$0xf] }
 0x9ec   :  { %v1691_v57 = vadd.f32 %v1683_v54, %v1611_v20  ;;  %4969 = vtanh.f32 %v1695_v48  ;;  %v1721_v1 = vmul.f32 %v1713_v6, %v1657_v14  ;;  %v4234_v6 = vld [vmem:[#allocation3 + $0x168] sm:$0xf]  ;;  %v4824_v14 = vld [vmem:[#allocation3 + $0x178] sm:$0xf0] }
 0x9ed   :  { %v1694_v0 = vadd.f32 %v1686_v55, %v1653_v42  ;;  %4971 = vtanh.f32 %v1698_v51 }
 0x9ee   :  { %v1699_v2 = vmul.f32 0.7978846, %v1691_v57 }
 0x9ef   :  { %v1702_v23 = vmul.f32 0.7978846, %v1694_v0 }
 0x9f0   :  { %v4966_v26 = vpop.eup %4965  ;;  %4973 = vtanh.f32 %v1699_v2 }
 0x9f1   :  { %v4968_v7 = vpop.eup %4967  ;;  %v1716_v44 = vadd.f32 1.0, %v4966_v26  ;;  %4975 = vtanh.f32 %v1702_v23 }
 0x9f2   :  { %v4970_v13 = vpop.eup %4969  ;;  %v1717_v17 = vadd.f32 1.0, %v4968_v7  ;;  %v4823_v7 = vld [vmem:[#allocation3 + $0x170] sm:$0xf0] }
 0x9f3   :  { %v4972_v18 = vpop.eup %4971  ;;  %v1724_v10 = vmul.f32 %v1716_v44, %v1660_v9  ;;  %v1711_v24 = vadd.f32 1.0, %v4970_v13  ;;  %v4235_v9 = vor.u32 %v4823_v7, %v4234_v6  ;;  %v4236_v44 = vld [vmem:[#allocation3 + $0x174] sm:$0xf0]  ;;  %v4242_v13 = vld [vmem:[#allocation3 + $0x170] sm:$0xf] }
 0x9f4   :  { %v1725_v11 = vmul.f32 %v1717_v17, %v1661_v16  ;;  %v1714_v28 = vadd.f32 1.0, %v4972_v18  ;;  %v4239_v16 = vor.u32 %v4822_v8, %v4236_v44  ;;  %v4243_v17 = vor.u32 %v4824_v14, %v4242_v13  ;;  %v4222_v18 = vld [vmem:[#allocation3 + $0x150] sm:$0xf]  ;;  %v4805_v6 = vld [vmem:[#allocation3 + $0xe0] sm:$0xf0] }
 0x9f5   :  { %v1728_v40 = vpack.c.bf16 %v1724_v10, %v1720_v36  ;;  %v1719_v63 = vmul.f32 %v1711_v24, %v1655_v4  ;;  %2274 = vmatpush.bf16.msrb.mxu3 %v4235_v9  ;;  %v4820_v36 = vld [vmem:[#allocation3 + $0x158] sm:$0xf0]  ;;  %v4819_v10 = vld [vmem:[#allocation3 + $0x154] sm:$0xf]  ;;  %v4821_v24 = vld [vmem:[#allocation3 + $0x160] sm:$0xf0] }
 0x9f6   :  { %v4974_v25 = vpop.eup %4973  ;;  %v1729_v27 = vpack.c.bf16 %v1725_v11, %v1721_v1  ;;  %v1722_v32 = vmul.f32 %v1714_v28, %v1658_v62  ;;  %2288 = vmatpush.bf16.msra.mxu0 %v4239_v16  ;;  %2302 = vmatpush.bf16.msrb.mxu1 %v4243_v17  ;;  %v4223_v1 = vor.u32 %v4820_v36, %v4222_v18  ;;  %v4224_v11 = vld [vmem:[#allocation3 + $0x15c] sm:$0xf0]  ;;  %v4210_v28 = vld [vmem:[#allocation3 + $0x138] sm:$0xf]  ;;  %v4816_v4 = vld [vmem:[#allocation3 + $0x13c] sm:$0xf] }
 0x9f7   :  { %v4976_v61 = vpop.eup %4975  ;;  %2013 = vmatmul.bf16.vlgmr.msrb.gmra.mxu0 %v1728_v40  ;;  %v1715_v29 = vadd.f32 1.0, %v4974_v25  ;;  %v4230_v40 = vld [vmem:[#allocation3 + $0x158] sm:$0xf]  ;;  %v4227_v25 = vor.u32 %v4819_v10, %v4224_v11  ;;  %v4218_v62 = vld [vmem:[#allocation3 + $0x140] sm:$0xf] }
 0x9f8   :  { %2027 = vmatmul.bf16.vlgmr.msra.gmra.mxu1 %v1729_v27  ;;  %v1718_v30 = vadd.f32 1.0, %v4976_v61  ;;  %v4231_v27 = vor.u32 %v4821_v24, %v4230_v40  ;;  %v4817_v61 = vld [vmem:[#allocation3 + $0x140] sm:$0xf0]  ;;  %v4804_v7 = vld [vmem:[#allocation3 + $0xdc] sm:$0xf] }
 0x9f9   :  { %v1723_v31 = vmul.f32 %v1715_v29, %v1659_v19  ;;  %2275 = vmatpush.bf16.msrb.mxu3 %v4223_v1  ;;  %v4211_v19 = vor.u32 %v4817_v61, %v4210_v28  ;;  %v4212_v29 = vld [vmem:[#allocation3 + $0x144] sm:$0xf0]  ;;  %v4170_v13 = vld [vmem:[#allocation3 + $0xe0] sm:$0xf]  ;;  %v4806_v14 = vld [vmem:[#allocation3 + $0xe8] sm:$0xf0] }
 0x9fa   :  { %v1726_v34 = vmul.f32 %v1718_v30, %v1662_v5  ;;  %2289 = vmatpush.bf16.msra.mxu0 %v4227_v25  ;;  %2303 = vmatpush.bf16.msrb.mxu1 %v4231_v27  ;;  %v4818_v5 = vld [vmem:[#allocation3 + $0x148] sm:$0xf0]  ;;  %v4215_v30 = vor.u32 %v4816_v4, %v4212_v29  ;;  %v4164_v44 = vld [vmem:[#allocation3 + $0xe4] sm:$0xf0]  ;;  %v4171_v18 = vor.u32 %v4806_v14, %v4170_v13  ;;  %v4150_v36 = vld [vmem:[#allocation3 + $0xc0] sm:$0xf] }
 0x9fb   :  { %v1727_v35 = vpack.c.bf16 %v1723_v31, %v1719_v63  ;;  %v4219_v63 = vor.u32 %v4818_v5, %v4218_v62  ;;  %v4198_v31 = vld [vmem:[#allocation3 + $0x120] sm:$0xf]  ;;  %v4167_v17 = vor.u32 %v4804_v7, %v4164_v44  ;;  %v4802_v10 = vld [vmem:[#allocation3 + $0xc8] sm:$0xf0]  ;;  %v4801_v1 = vld [vmem:[#allocation3 + $0xc4] sm:$0xf] }
 0x9fc   :  { %v1730_v39 = vpack.c.bf16 %v1726_v34, %v1722_v32  ;;  %v4814_v32 = vld [vmem:[#allocation3 + $0x128] sm:$0xf0]  ;;  %v4813_v34 = vld [vmem:[#allocation3 + $0x124] sm:$0xf]  ;;  %v4152_v11 = vld [vmem:[#allocation3 + $0xcc] sm:$0xf0]  ;;  %v4151_v27 = vor.u32 %v4802_v10, %v4150_v36 }
 0x9fd   :  { %1999 = vmatmul.bf16.vlgmr.msra.gmra.mxu3 %v1727_v35  ;;  %v4199_v35 = vor.u32 %v4814_v32, %v4198_v31  ;;  %v4158_v40 = vld [vmem:[#allocation3 + $0xc8] sm:$0xf]  ;;  %v4803_v24 = vld [vmem:[#allocation3 + $0xd0] sm:$0xf0]  ;;  %v4155_v28 = vor.u32 %v4801_v1, %v4152_v11 }
 0x9fe   :  { %2041 = vmatmul.bf16.vlgmr.msrb.gmra.mxu2 %v1730_v39  ;;  %2276 = vmatpush.bf16.msrb.mxu3 %v4211_v19  ;;  %v4200_v39 = vld [vmem:[#allocation3 + $0x12c] sm:$0xf0]  ;;  %v4159_v61 = vor.u32 %v4803_v24, %v4158_v40 }
 0x9ff   :  { %2290 = vmatpush.bf16.msra.mxu0 %v4215_v30  ;;  %2304 = vmatpush.bf16.msrb.mxu1 %v4219_v63 }
 0xa02   :  { %2277 = vmatpush.bf16.msrb.mxu3 %v4199_v35 }
 0xa74   :  { %v2014_v12 = vpop.f32.mrf.mxu0 }
 0xa75   :  { %v2028_v45 = vpop.f32.mrf.mxu1 }
 0xa7c   :  { %v2016_v51 = vpop.f32.mrf.mxu0 }
 0xa7d   :  { %v2030_v53 = vpop.f32.mrf.mxu1 }
 0xa80   :  { %v2000_v20 = vpop.f32.mrf.mxu3 }
 0xa81   :  { %v2001_v43 = vadd.f32 %v4908_v41, %v2000_v20  ;;  %v2042_v15 = vpop.f32.mrf.mxu2  ;;  %v4203_v20 = vor.u32 %v4813_v34, %v4200_v39 }
 0xa83   :  { %v2015_v46 = vadd.f32 %v2014_v12, %v2001_v43  ;;  %v4815_v12 = vld [vmem:[#allocation3 + $0x130] sm:$0xf0]  ;;  %2291 = vmatpush.bf16.msra.mxu0 %v4203_v20 }
 0xa85   :  { %v2029_v42 = vadd.f32 %v2028_v45, %v2015_v46  ;;  %v4186_v45 = vld [vmem:[#allocation3 + $0x108] sm:$0xf]  ;;  %v4811_v46 = vld [vmem:[#allocation3 + $0x110] sm:$0xf0] }
 0xa87   :  { %v2043_v47 = vadd.f32 %v2042_v15, %v2029_v42  ;;  %v4810_v15 = vld [vmem:[#allocation3 + $0x10c] sm:$0xf]  ;;  %v4187_v42 = vor.u32 %v4811_v46, %v4186_v45  ;;  %v4909_v45 = vld [vmem:[%s6464_s27 + $0x1] ss:$0 sm:$0xff] }
 0xa88   :  { %v2002_v48 = vpop.f32.mrf.mxu3 }
 0xa89   :  { %v5883_v49 = vadd.f32 %v2043_v47, %v5525_v58  ;;  %v2003_v50 = vadd.f32 %v4908_v41, %v2002_v48  ;;  %v2044_v55 = vpop.f32.mrf.mxu2  ;;  %v4206_v41 = vld [vmem:[#allocation3 + $0x128] sm:$0xf]  ;;  %v4188_v47 = vld [vmem:[#allocation3 + $0x114] sm:$0xf0]  ;;  %v4194_v48 = vld [vmem:[#allocation3 + $0x110] sm:$0xf]  ;;  %2278 = vmatpush.bf16.msrb.mxu3 %v4187_v42 }
 0xa8a   :  { %v4207_v43 = vor.u32 %v4815_v12, %v4206_v41 }
 0xa8b   :  { %v2017_v52 = vadd.f32 %v2016_v51, %v2003_v50  ;;  %2053 = vadd.xlane.f32.xlu0 %v5883_v49  ;;  %v4812_v50 = vld [vmem:[#allocation3 + $0x118] sm:$0xf0]  ;;  %v4191_v51 = vor.u32 %v4810_v15, %v4188_v47 }
 0xa8c   :  { %2305 = vmatpush.bf16.msrb.mxu1 %v4207_v43 }
 0xa8d   :  { %v2031_v54 = vadd.f32 %v2030_v53, %v2017_v52  ;;  %v4195_v52 = vor.u32 %v4812_v50, %v4194_v48  ;;  %2292 = vmatpush.bf16.msra.mxu0 %v4191_v51  ;;  %v4174_v53 = vld [vmem:[#allocation3 + $0xf0] sm:$0xf]  ;;  %v4910_v48 = vld [vmem:[%s6433_s7 + $0x1] ss:$0 sm:$0xff] }
 0xa8f   :  { %v2045_v56 = vadd.f32 %v2044_v55, %v2031_v54  ;;  %v4808_v54 = vld [vmem:[#allocation3 + $0xf8] sm:$0xf0]  ;;  %v4807_v55 = vld [vmem:[#allocation3 + $0xf4] sm:$0xf] }
 0xa90   :  { %2306 = vmatpush.bf16.msrb.mxu1 %v4195_v52 }
 0xa91   :  { %v5887_v57 = vadd.f32 %v2045_v56, %v5529_v60  ;;  %v4175_v56 = vor.u32 %v4808_v54, %v4174_v53 }
 0xa93   :  { %2055 = vadd.xlane.f32.xlu1 %v5887_v57  ;;  %2279 = vmatpush.bf16.msrb.mxu3 %v4175_v56 }
 0xafe   :  { %v2054_v59 = vpop.xlane.xlu0 %2053 }
 0xaff   :  { %v2057_v0 = vmul.f32 %v2054_v59, %v5363_v33  ;;  %v4176_v59 = vld [vmem:[#allocation3 + $0xfc] sm:$0xf0] }
 0xb01   :  { %v5892_v58 = vsub.f32 %v5883_v49, %v2057_v0  ;;  %v4182_v0 = vld [vmem:[#allocation3 + $0xf8] sm:$0xf] }
 0xb03   :  { %v2061_v2 = vmul.f32 %v5892_v58, %v5892_v58 }
 0xb05   :  { %2063 = vadd.xlane.f32.xlu2 %v2061_v2  ;;  %v4809_v2 = vld [vmem:[#allocation3 + $0x100] sm:$0xf0] }
 0xb06   :  { %v2056_v23 = vpop.xlane.xlu1 %2055 }
 0xb07   :  { %v2058_v3 = vmul.f32 %v2056_v23, %v5363_v33  ;;  %v4179_v23 = vor.u32 %v4807_v55, %v4176_v59 }
 0xb09   :  { %v5898_v26 = vsub.f32 %v5887_v57, %v2058_v3  ;;  %v4183_v3 = vor.u32 %v4809_v2, %v4182_v0  ;;  %2293 = vmatpush.bf16.msra.mxu0 %v4179_v23 }
 0xb0b   :  { %v2062_v60 = vmul.f32 %v5898_v26, %v5898_v26  ;;  %2307 = vmatpush.bf16.msrb.mxu1 %v4183_v3 }
 0xb0d   :  { %2065 = vadd.xlane.f32.xlu0 %v2062_v60  ;;  %v4162_v60 = vld [vmem:[#allocation3 + $0xd8] sm:$0xf]  ;;  %2294 = vmatpush.bf16.msra.mxu0 %v4167_v17 }
 0xb0e   :  { %v4163_v9 = vor.u32 %v4805_v6, %v4162_v60 }
 0xb0f   :  { %2308 = vmatpush.bf16.msrb.mxu1 %v4171_v18 }
 0xb10   :  { %2280 = vmatpush.bf16.msrb.mxu3 %v4163_v9 }
 0xb11   :  { %2295 = vmatpush.bf16.msra.mxu0 %v4155_v28 }
 0xb13   :  { %2309 = vmatpush.bf16.msrb.mxu1 %v4159_v61 }
 0xb14   :  { %2281 = vmatpush.bf16.msrb.mxu3 %v4151_v27 }
 0xb78   :  { %v2064_v8 = vpop.xlane.xlu2 %2063 }
 0xb79   :  { %v2067_v16 = vmul.f32 %v2064_v8, %v5363_v33 }
 0xb7b   :  { %v2069_v25 = vadd.f32 1e-06, %v2067_v16 }
 0xb7d   :  { %4977 = vrsqrt.f32 %v2069_v25  ;;  %vm2077_vm3 = vweird.f32 %v2069_v25 }
 0xb80   :  { %v2066_v4 = vpop.xlane.xlu0 %2065 }
 0xb81   :  { %v2068_v19 = vmul.f32 %v2066_v4, %v5363_v33 }
 0xb83   :  { %v4978_v29 = vpop.eup %4977  ;;  %v2070_v62 = vadd.f32 1e-06, %v2068_v19 }
 0xb84   :  { %v2072_v5 = vmul.f32 %v4978_v29, %v2069_v25  ;;  %vm2078_vm2 = vweird.f32 %v4978_v29 }
 0xb85   :  { %4979 = vrsqrt.f32 %v2070_v62  ;;  %vm2079_vm4 = vmor %vm2077_vm3, %vm2078_vm2  ;;  %vm2087_vm6 = vweird.f32 %v2070_v62  ;;  %vm3554_vm2 = vcmask 1024  }
 0xb86   :  { %v2073_v30 = vmul.f32 %v4978_v29, %v2072_v5 }
 0xb88   :  { %v2074_v63 = vmul.f32 0.5, %v2073_v30 }
 0xb8a   :  { %v2075_v31 = vsub.f32 1.5, %v2074_v63 }
 0xb8b   :  { %v4980_v32 = vpop.eup %4979 }
 0xb8c   :  { %v2076_v34 = vmul.f32 %v4978_v29, %v2075_v31  ;;  %v2082_v35 = vmul.f32 %v4980_v32, %v2070_v62  ;;  %vm2088_vm5 = vweird.f32 %v4980_v32 }
 0xb8d   :  { %vm2089_vm7 = vmor %vm2087_vm6, %vm2088_vm5 }
 0xb8e   :  { %v2083_v39 = vmul.f32 %v4980_v32, %v2082_v35  ;;  %v2080_v41 = vsel %vm2079_vm4, %v4978_v29, %v2076_v34  ;;  %v5954_v34 = vld [vmem:[%s6466_s24] ss:$0 sm:$0xff] }
 0xb8f   :  { %v2091_v43 = vmul.f32 %v2080_v41, %v5892_v58  ;;  %v5915_v58 = vld [vmem:[%s6435_s9 + $0x3] sm:$0x7] }
 0xb90   :  { %v2084_v12 = vmul.f32 0.5, %v2083_v39  ;;  %v2141_v54 = vperm.slane %v5915_v58, 1  ;;  %v2140_v23 = vperm.slane %v5915_v58, 0 }
 0xb91   :  { %v2096_v47 = vmul.f32 %v4909_v45, %v2091_v43 }
 0xb92   :  { %v2085_v20 = vsub.f32 1.5, %v2084_v12 }
 0xb93   :  { %v2101_v51 = vadd.f32 %v4910_v48, %v2096_v47 }
 0xb94   :  { %v2086_v46 = vmul.f32 %v4980_v32, %v2085_v20 }
 0xb96   :  { %v2090_v15 = vsel %vm2089_vm7, %v4980_v32, %v2086_v46 }
 0xb97   :  { %v2092_v42 = vmul.f32 %v2090_v15, %v5898_v26  ;;  %v2142_v26 = vperm.slane %v5915_v58, 2 }
 0xb99   :  { %v2097_v50 = vmul.f32 %v4909_v45, %v2092_v42 }
 0xb9b   :  { %v2102_v52 = vadd.f32 %v4910_v48, %v2097_v50 }
 0xb9d   :  { %v2103_v53 = vpack.c.bf16 %v2102_v52, %v2101_v51 }
 0xb9f   :  { %2282 = vmatmul.bf16.vlgmr.msrb.gmra.mxu3 %v2103_v53  ;;  %2296 = vmatmul.bf16.vlgmr.msra.gmra.mxu0 %v2103_v53 }
 0xba0   :  { %2310 = vmatmul.bf16.vlgmr.msrb.gmra.mxu1 %v2103_v53 }
 0xc1c   :  { %v2297_v55 = vpop.f32.mrf.mxu0 }
 0xc1d   :  { %v2298_v56 = vadd.f32 %v2297_v55, %v2141_v54  ;;  %v2311_v59 = vpop.f32.mrf.mxu1 }
 0xc1e   :  { %v2312_v0 = vadd.f32 %v2311_v59, %v2142_v26 }
 0xc1f   :  { %v2316_v2 = vpack.c.bf16 %v2298_v56, %v2298_v56 }
 0xc20   :  { %v2372_v3 = vmul.f32 %v2312_v0, %v5396_v21  ;;  %v2343_v60 = vmul.f32 %v2312_v0, %v5398_v22  ;;  %v2439_v6 = vmul.f32 %v2312_v0, %v5404_v37  ;;  %v2488_v7 = vmul.f32 %v2312_v0, %v5406_v38 }
 0xc21   :  { %2326 = vmatpush.bf16.xpose.msra.mxu2 %v2316_v2  ;;  %2355 = vmatpush.bf16.xpose.msra.mxu3 %v2316_v2 }
 0xc22   :  { %v2283_v8 = vpop.f32.mrf.mxu3  ;;  %v2373_v9 = vpack.c.bf16 %v2372_v3, %v2372_v3  ;;  %v2344_v44 = vpack.c.bf16 %v2343_v60, %v2343_v60  ;;  %v2440_v13 = vpack.c.bf16 %v2439_v6, %v2439_v6  ;;  %v2489_v14 = vpack.c.bf16 %v2488_v7, %v2488_v7 }
 0xc23   :  { %v5926_v16 = vadd.f32 %v2283_v8, %v2140_v23 }
 0xc24   :  { %v2299_v17 = vpop.f32.mrf.mxu0  ;;  %v2379_v18 = vsel %vm928_vm9, %v2373_v9, 0  ;;  %v2398_v36 = vsel %vm928_vm9, %v2344_v44, 0  ;;  %v2446_v10 = vsel %vm928_vm9, %v2440_v13, 0  ;;  %v2495_v1 = vsel %vm928_vm9, %v2489_v14, 0 }
 0xc25   :  { %v2300_v11 = vadd.f32 %v2299_v17, %v2141_v54  ;;  %2388 = vmatpush.bf16.msrb.mxu0 %v2379_v18  ;;  %2407 = vmatpush.bf16.msra.mxu1 %v2398_v36  ;;  %v2317_v40 = vmul.f32 %v5926_v16, %v5398_v22  ;;  %v2346_v24 = vmul.f32 %v5926_v16, %v5396_v21 }
 0xc26   :  { %v2413_v61 = vmul.f32 %v5926_v16, %v5404_v37 }
 0xc27   :  { %v5936_v25 = vpack.c.bf16 %v2300_v11, %v2300_v11  ;;  %v2318_v27 = vpack.c.bf16 %v2317_v40, %v2317_v40  ;;  %v2347_v28 = vpack.c.bf16 %v2346_v24, %v2346_v24  ;;  %v2462_v11 = vmul.f32 %v5926_v16, %v5406_v38 }
 0xc28   :  { %v2414_v4 = vpack.c.bf16 %v2413_v61, %v2413_v61 }
 0xc29   :  { %2422 = vmatpush.bf16.xpose.msrb.mxu2 %v2316_v2  ;;  %2455 = vmatpush.bf16.msrb.mxu3 %v2446_v10  ;;  %v2463_v40 = vpack.c.bf16 %v2462_v11, %v2462_v11 }
 0xc2a   :  { %2471 = vmatpush.bf16.xpose.msra.mxu0 %v2316_v2  ;;  %2504 = vmatpush.bf16.msrb.mxu1 %v2495_v1  ;;  %v2285_v19 = vpop.f32.mrf.mxu3 }
 0xc2b   :  { %2327 = vmatmul.bf16.vlgmr.msra.gmra.mxu2 %v2318_v27  ;;  %2356 = vmatmul.bf16.vlgmr.msra.gmra.mxu3 %v2347_v28  ;;  %v5943_v29 = vadd.f32 %v2285_v19, %v2140_v23  ;;  %v2313_v23 = vpop.f32.mrf.mxu1 }
 0xc2c   :  { %v5966_v3 = vadd.f32 %v2313_v23, %v2142_v26 }
 0xc2d   :  { %2550 = vmatpush.bf16.xpose.msra.mxu3 %v5936_v25  ;;  %v2512_v62 = vmul.f32 %v5943_v29, %v5398_v22  ;;  %v2608_v30 = vmul.f32 %v5943_v29, %v5404_v37  ;;  %v2541_v10 = vmul.f32 %v5943_v29, %v5396_v21 }
 0xc2e   :  { %v2634_v6 = vmul.f32 %v5966_v3, %v5404_v37  ;;  %v2567_v58 = vmul.f32 %v5966_v3, %v5396_v21 }
 0xc2f   :  { %v2513_v5 = vpack.c.bf16 %v2512_v62, %v2512_v62  ;;  %v2609_v63 = vpack.c.bf16 %v2608_v30, %v2608_v30  ;;  %v2542_v1 = vpack.c.bf16 %v2541_v10, %v2541_v10 }
 0xc30   :  { %v2635_v44 = vpack.c.bf16 %v2634_v6, %v2634_v6  ;;  %v2568_v18 = vpack.c.bf16 %v2567_v58, %v2567_v58 }
 0xc31   :  { %2521 = vmatpush.bf16.xpose.msra.mxu2 %v5936_v25 }
 0xc32   :  { %v2641_v14 = vsel %vm928_vm9, %v2635_v44, 0  ;;  %v2574_v37 = vsel %vm928_vm9, %v2568_v18, 0 }
 0xc3b   :  { %2423 = vmatmul.bf16.vlgmr.msrb.gmra.mxu2 %v2414_v4 }
 0xc3c   :  { %2617 = vmatpush.bf16.xpose.msrb.mxu2 %v5936_v25 }
 0xc4b   :  { %2522 = vmatmul.bf16.vlgmr.msra.gmra.mxu2 %v2513_v5 }
 0xc5b   :  { %2618 = vmatmul.bf16.vlgmr.msrb.gmra.mxu2 %v2609_v63 }
 0xcae   :  { %v5949_v31 = vpop.f32.mrf.mxu2  ;;  %v2357_v32 = vpop.f32.mrf.mxu3 }
 0xcaf   :  { %v2358_v35 = vadd.f32 %v5954_v34, %v2357_v32 }
 0xcb1   :  { %v2361_v39 = vsel %vm880_vm10, %v2358_v35, -inf }
 0xcb2   :  { %2362 = vmax.xlane.f32.xlu0 %v2361_v39 }
 0xcb6   :  { %v2330_v41 = vpop.f32.mrf.mxu2  ;;  %v2359_v12 = vpop.f32.mrf.mxu3 }
 0xcbe   :  { %v2424_v20 = vpop.f32.mrf.mxu2 }
 0xcbf   :  { %v2425_v43 = vadd.f32 %v5954_v34, %v2424_v20 }
 0xcc1   :  { %v2428_v45 = vsel %vm880_vm10, %v2425_v43, -inf }
 0xcc2   :  { %2429 = vmax.xlane.f32.xlu1 %v2428_v45 }
 0xcc6   :  { %v2426_v46 = vpop.f32.mrf.mxu2 }
 0xcce   :  { %v5960_v15 = vpop.f32.mrf.mxu2 }
 0xcd6   :  { %v2525_v42 = vpop.f32.mrf.mxu2 }
 0xcde   :  { %v2619_v47 = vpop.f32.mrf.mxu2 }
 0xce6   :  { %v2621_v48 = vpop.f32.mrf.mxu2 }
 0xd25   :  { %v2363_v50 = vpop.xlane.xlu0 %2362 }
 0xd26   :  { %v2364_v53 = vsub.f32 %v2358_v35, %v2363_v50  ;;  %v2620_v35 = vadd.f32 %v5954_v34, %v2619_v47 }
 0xd28   :  { %v2365_v55 = vmul.f32 1.442695, %v2364_v53  ;;  %v2623_v39 = vsel %vm880_vm10, %v2620_v35, -inf  ;;  %v2524_v53 = vadd.f32 %v5954_v34, %v5960_v15 }
 0xd35   :  { %v2430_v51 = vpop.xlane.xlu1 %2429 }
 0xd36   :  { %v2431_v52 = vsub.f32 %v2425_v43, %v2430_v51 }
 0xd38   :  { %v2432_v54 = vmul.f32 1.442695, %v2431_v52 }
 0xd3a   :  { %4981 = vpow2.f32 %v2432_v54 }
 0xd3b   :  { %4983 = vpow2.f32 %v2365_v55 }
 0xd40   :  { %v4982_v56 = vpop.eup %4981 }
 0xd41   :  { %v2434_v59 = vsel %vm880_vm10, %v4982_v56, 0.0  ;;  %v4984_v0 = vpop.eup %4983 }
 0xd42   :  { %2435 = vadd.xlane.f32.xlu2 %v2434_v59  ;;  %v2367_v2 = vsel %vm880_vm10, %v4984_v0, 0.0 }
 0xd4a   :  { %2368 = vadd.xlane.f32.xlu2 %v2367_v2 }
 0xdb5   :  { %v2436_v60 = vpop.xlane.xlu2 %2435 }
 0xdb6   :  { %4985 = vrcp.f32 %v2436_v60 }
 0xdbc   :  { %v4986_v7 = vpop.eup %4985 }
 0xdbd   :  { %v2438_v8 = vmul.f32 %v4986_v7, %v4982_v56  ;;  %v2369_v9 = vpop.xlane.xlu2 %2368  ;;  %v2527_v56 = vsel %vm880_vm10, %v2524_v53, -inf }
 0xdbe   :  { %4987 = vrcp.f32 %v2369_v9 }
 0xdbf   :  { %v2441_v13 = vpack.c.bf16 %v2438_v8, %v2438_v8 }
 0xdc1   :  { %4246 = vmatmul.msk.bf16.vlgmr.msrb.gmra.mxu3 %vm880_vm10, %v2441_v13  ;;  %v2538_v13 = vmul.f32 %v5966_v3, %v5398_v22 }
 0xdc2   :  { %2650 = vmatpush.bf16.msrb.mxu3 %v2641_v14  ;;  %v2657_v14 = vmul.f32 %v5943_v29, %v5406_v38  ;;  %v2683_v29 = vmul.f32 %v5966_v3, %v5406_v38 }
 0xdc3   :  { %v2539_v18 = vpack.c.bf16 %v2538_v13, %v2538_v13 }
 0xdc4   :  { %v4988_v26 = vpop.eup %4987 }
 0xdc5   :  { %v2371_v17 = vmul.f32 %v4988_v26, %v4984_v0 }
 0xdc7   :  { %v2374_v36 = vpack.c.bf16 %v2371_v17, %v2371_v17 }
 0xdc9   :  { %4244 = vmatmul.msk.bf16.vlgmr.msrb.gmra.mxu0 %vm880_vm10, %v2374_v36  ;;  %v2658_v36 = vpack.c.bf16 %v2657_v14, %v2657_v14 }
 0xdca   :  { %2583 = vmatpush.bf16.msrb.mxu0 %v2574_v37 }
 0xdd1   :  { %2551 = vmatmul.bf16.vlgmr.msra.gmra.mxu3 %v2542_v1  ;;  %v2593_v1 = vsel %vm928_vm9, %v2539_v18, 0 }
 0xdd9   :  { %2472 = vmatmul.bf16.vlgmr.msra.gmra.mxu0 %v2463_v40 }
 0xdda   :  { %2666 = vmatpush.bf16.xpose.msra.mxu0 %v5936_v25  ;;  %v2329_v25 = vadd.f32 %v5954_v34, %v5949_v31 }
 0xddc   :  { %v2332_v32 = vsel %vm880_vm10, %v2329_v25, -inf }
 0xe44   :  { %v5981_v24 = vpop.f32.mrf.mxu3 }
 0xe46   :  { %v5983_v27 = vpop.f32.mrf.mxu0 }
 0xe4c   :  { %v2459_v28 = vpop.f32.mrf.mxu3 }
 0xe4e   :  { %v2392_v61 = vpop.f32.mrf.mxu0 }
 0xe54   :  { %v2552_v4 = vpop.f32.mrf.mxu3 }
 0xe55   :  { %v2553_v19 = vadd.f32 %v5954_v34, %v2552_v4  ;;  %v2684_v4 = vpack.c.bf16 %v2683_v29, %v2683_v29 }
 0xe56   :  { %v2473_v62 = vpop.f32.mrf.mxu0 }
 0xe57   :  { %v2474_v21 = vadd.f32 %v5954_v34, %v2473_v62  ;;  %v2556_v5 = vsel %vm880_vm10, %v2553_v19, -inf  ;;  %v2690_v62 = vsel %vm928_vm9, %v2684_v4, 0 }
 0xe58   :  { %2557 = vmax.xlane.f32.xlu1 %v2556_v5 }
 0xe59   :  { %v2477_v16 = vsel %vm880_vm10, %v2474_v21, -inf }
 0xe5a   :  { %2478 = vmax.xlane.f32.xlu2 %v2477_v16 }
 0xe5c   :  { %v2554_v30 = vpop.f32.mrf.mxu3 }
 0xe5e   :  { %v2475_v63 = vpop.f32.mrf.mxu0 }
 0xe60   :  { %2333 = vmax.xlane.f32.xlu1 %v2332_v32 }
 0xe68   :  { %2624 = vmax.xlane.f32.xlu1 %v2623_v39 }
 0xecb   :  { %v2558_v41 = vpop.xlane.xlu1 %2557 }
 0xecc   :  { %v2559_v12 = vsub.f32 %v2553_v19, %v2558_v41 }
 0xecd   :  { %v2479_v20 = vpop.xlane.xlu2 %2478 }
 0xece   :  { %v2560_v43 = vmul.f32 1.442695, %v2559_v12  ;;  %v2480_v45 = vsub.f32 %v2474_v21, %v2479_v20 }
 0xed0   :  { %4989 = vpow2.f32 %v2560_v43  ;;  %v2481_v46 = vmul.f32 1.442695, %v2480_v45 }
 0xed2   :  { %4991 = vpow2.f32 %v2481_v46 }
 0xed3   :  { %v2334_v42 = vpop.xlane.xlu1 %2333 }
 0xed4   :  { %v2335_v48 = vsub.f32 %v2329_v25, %v2334_v42 }
 0xed6   :  { %v4990_v31 = vpop.eup %4989  ;;  %v2336_v52 = vmul.f32 1.442695, %v2335_v48 }
 0xed7   :  { %v2562_v50 = vsel %vm880_vm10, %v4990_v31, 0.0 }
 0xed8   :  { %v4992_v51 = vpop.eup %4991  ;;  %2563 = vadd.xlane.f32.xlu0 %v2562_v50  ;;  %4993 = vpow2.f32 %v2336_v52 }
 0xed9   :  { %v2483_v47 = vsel %vm880_vm10, %v4992_v51, 0.0 }
 0xeda   :  { %2484 = vadd.xlane.f32.xlu1 %v2483_v47 }
 0xedb   :  { %v2625_v54 = vpop.xlane.xlu1 %2624 }
 0xedc   :  { %v2626_v55 = vsub.f32 %v2620_v35, %v2625_v54 }
 0xede   :  { %v2627_v59 = vmul.f32 1.442695, %v2626_v55  ;;  %v4994_v0 = vpop.eup %4993  ;;  %v4831_v55 = vld [vmem:[%s6436_s10 + $0x70] sm:$0xff] }
 0xedf   :  { %v2338_v2 = vsel %vm880_vm10, %v4994_v0, 0.0 }
 0xee0   :  { %2528 = vmax.xlane.f32.xlu0 %v2527_v56  ;;  %4995 = vpow2.f32 %v2627_v59  ;;  %v4830_v56 = vld [vmem:[%s6436_s10 + $0x68] sm:$0xff] }
 0xee6   :  { %v4996_v23 = vpop.eup %4995 }
 0xee7   :  { %v2629_v60 = vsel %vm880_vm10, %v4996_v23, 0.0 }
 0xee8   :  { %2339 = vadd.xlane.f32.xlu0 %v2338_v2 }
 0xef0   :  { %2630 = vadd.xlane.f32.xlu0 %v2629_v60 }
 0xf4b   :  { %v2564_v6 = vpop.xlane.xlu0 %2563 }
 0xf4c   :  { %4997 = vrcp.f32 %v2564_v6 }
 0xf4d   :  { %v2485_v37 = vpop.xlane.xlu1 %2484 }
 0xf52   :  { %v4998_v7 = vpop.eup %4997 }
 0xf53   :  { %v2566_v15 = vmul.f32 %v4998_v7, %v4990_v31  ;;  %v2529_v8 = vpop.xlane.xlu0 %2528  ;;  %v4827_v7 = vld [vmem:[%s6436_s10 + $0x50] sm:$0xff] }
 0xf54   :  { %v2530_v16 = vsub.f32 %v2524_v53, %v2529_v8 }
 0xf55   :  { %v2569_v9 = vpack.c.bf16 %v2566_v15, %v2566_v15  ;;  %v4826_v15 = vld [vmem:[%s6436_s10 + $0x48] sm:$0xff] }
 0xf56   :  { %v2531_v25 = vmul.f32 1.442695, %v2530_v16  ;;  %v4861_v16 = vld [vmem:[%s6440_s14 + $0x1e4] sm:$0xf] }
 0xf57   :  { %4248 = vmatmul.msk.bf16.vlgmr.msrb.gmra.mxu0 %vm880_vm10, %v2569_v9 }
 0xf5b   :  { %v2340_v44 = vpop.xlane.xlu0 %2339 }
 0xf5c   :  { %4999 = vrcp.f32 %v2340_v44  ;;  %v4825_v44 = vld [vmem:[%s6436_s10 + $0x40] sm:$0xff] }
 0xf62   :  { %v5000_v58 = vpop.eup %4999 }
 0xf63   :  { %v2342_v26 = vmul.f32 %v5000_v58, %v4994_v0  ;;  %v2631_v17 = vpop.xlane.xlu0 %2630  ;;  %v4829_v0 = vld [vmem:[%s6436_s10 + $0x60] sm:$0xff] }
 0xf64   :  { %5001 = vrcp.f32 %v2631_v17 }
 0xf65   :  { %v2345_v10 = vpack.c.bf16 %v2342_v26, %v2342_v26  ;;  %5003 = vrcp.f32 %v2485_v37 }
 0xf66   :  { %5005 = vpow2.f32 %v2531_v25 }
 0xf67   :  { %4245 = vmatmul.msk.bf16.vlgmr.msra.gmra.mxu1 %vm880_vm10, %v2345_v10  ;;  %2667 = vmatmul.bf16.vlgmr.msra.gmra.mxu0 %v2658_v36  ;;  %v4911_v36 = vld [vmem:[%s6437_s11 + $0x1] ss:$0 sm:$0xff] }
 0xf68   :  { %2602 = vmatpush.bf16.msra.mxu1 %v2593_v1 }
 0xf6a   :  { %v5002_v11 = vpop.eup %5001 }
 0xf6b   :  { %v2633_v22 = vmul.f32 %v5002_v11, %v4996_v23  ;;  %v5004_v28 = vpop.eup %5003  ;;  %v4828_v23 = vld [vmem:[%s6436_s10 + $0x58] sm:$0xff] }
 0xf6c   :  { %v2487_v61 = vmul.f32 %v5004_v28, %v4992_v51  ;;  %v5006_v38 = vpop.eup %5005 }
 0xf6d   :  { %v2636_v40 = vpack.c.bf16 %v2633_v22, %v2633_v22  ;;  %v2533_v12 = vsel %vm880_vm10, %v5006_v38, 0.0 }
 0xf6e   :  { %v2490_v19 = vpack.c.bf16 %v2487_v61, %v2487_v61 }
 0xf6f   :  { %4250 = vmatmul.msk.bf16.vlgmr.msrb.gmra.mxu3 %vm880_vm10, %v2636_v40 }
 0xf77   :  { %4247 = vmatmul.msk.bf16.vlgmr.msrb.gmra.mxu1 %vm880_vm10, %v2490_v19 }
 0xf78   :  { %2699 = vmatpush.bf16.msrb.mxu1 %v2690_v62 }
 0xfd4   :  { %v2585_v21 = vpop.f32.mrf.mxu0 }
 0xfdc   :  { %v2587_v5 = vpop.f32.mrf.mxu0 }
 0xfdd   :  { %v4863_v5 = vld [vmem:[%s6440_s14 + $0x1ec] sm:$0xf0] }
 0xfe4   :  { %v2409_v30 = vpop.f32.mrf.mxu1  ;;  %v2668_v63 = vpop.f32.mrf.mxu0 }
 0xfe5   :  { %v2669_v32 = vadd.f32 %v5954_v34, %v2668_v63  ;;  %v2410_v41 = vadd.f32 %v2409_v30, %v5983_v27  ;;  %v4452_v30 = vld [vmem:[%s6440_s14 + $0x1f0] sm:$0xf0]  ;;  %v4458_v63 = vld [vmem:[%s6440_s14 + $0x1e8] sm:$0xf] }
 0xfe7   :  { %v2672_v35 = vsel %vm880_vm10, %v2669_v32, -inf  ;;  %v2461_v43 = vadd.f32 %v5981_v24, %v2410_v41  ;;  %v4832_v24 = vld [vmem:[%s6436_s10 + $0x78] sm:$0xff] }
 0xfe8   :  { %2673 = vmax.xlane.f32.xlu2 %v2672_v35  ;;  %2777 = vmatpush.bf16.msra.mxu2 %v4832_v24  ;;  %v4455_v35 = vor.u32 %v4861_v16, %v4452_v30  ;;  %v4420_v24 = vld [vmem:[%s6440_s14 + $0x1b0] sm:$0xf0]  ;;  %v4843_v16 = vld [vmem:[%s6440_s14 + $0x14c] sm:$0xf0] }
 0xfea   :  { %3066 = vmatpush.bf16.msrb.mxu0 %v4455_v35  ;;  %v4844_v35 = vld [vmem:[%s6440_s14 + $0x154] sm:$0xf0] }
 0xfec   :  { %v2411_v3 = vpop.f32.mrf.mxu1  ;;  %v2670_v39 = vpop.f32.mrf.mxu0  ;;  %2778 = vmatpush.bf16.msra.mxu2 %v4831_v55  ;;  %v4426_v55 = vld [vmem:[%s6440_s14 + $0x1a8] sm:$0xf] }
 0xfed   :  { %v4862_v3 = vld [vmem:[%s6440_s14 + $0x1ec] sm:$0xf]  ;;  %v4460_v39 = vld [vmem:[%s6440_s14 + $0x1f8] sm:$0xf0] }
 0xfee   :  { %v4463_v41 = vor.u32 %v4862_v3, %v4460_v39  ;;  %v4842_v39 = vld [vmem:[%s6440_s14 + $0x14c] sm:$0xf] }
 0xff0   :  { %2534 = vadd.xlane.f32.xlu2 %v2533_v12  ;;  %2779 = vmatpush.bf16.msra.mxu2 %v4830_v56  ;;  %v4434_v12 = vld [vmem:[%s6440_s14 + $0x1c0] sm:$0xf]  ;;  %v4856_v56 = vld [vmem:[%s6440_s14 + $0x1b4] sm:$0xf0] }
 0xff2   :  { %v2652_v20 = vpop.f32.mrf.mxu3 }
 0xff4   :  { %v2506_v45 = vpop.f32.mrf.mxu1  ;;  %2780 = vmatpush.bf16.msra.mxu2 %v4829_v0  ;;  %v4427_v0 = vor.u32 %v4856_v56, %v4426_v55  ;;  %v4835_v55 = vld [vmem:[%s6440_s14 + $0x10c] sm:$0xf0] }
 0xff5   :  { %v2510_v46 = vadd.f32 %v2506_v45, %v2461_v43  ;;  %v4857_v43 = vld [vmem:[%s6440_s14 + $0x1c4] sm:$0xf] }
 0xff8   :  { %2781 = vmatpush.bf16.msra.mxu2 %v4828_v23  ;;  %v4428_v23 = vld [vmem:[%s6440_s14 + $0x1b8] sm:$0xf0] }
 0xffa   :  { %v2654_v42 = vpop.f32.mrf.mxu3 }
 0xffb   :  { %v4442_v42 = vld [vmem:[%s6440_s14 + $0x1c8] sm:$0xf] }
 0xffc   :  { %v2508_v31 = vpop.f32.mrf.mxu1  ;;  %2782 = vmatpush.bf16.msra.mxu2 %v4827_v7  ;;  %v4851_v7 = vld [vmem:[%s6440_s14 + $0x18c] sm:$0xf0] }
 0xffd   :  { %v4860_v31 = vld [vmem:[%s6440_s14 + $0x1d4] sm:$0xf0] }
0x1000   :  { %2783 = vmatpush.bf16.msra.mxu2 %v4826_v15  ;;  %v4849_v15 = vld [vmem:[%s6440_s14 + $0x184] sm:$0xf] }
0x1004   :  { %2784 = vmatpush.bf16.msra.mxu2 %v4825_v44  ;;  %v4410_v44 = vld [vmem:[%s6440_s14 + $0x188] sm:$0xf] }
0x1008   :  { %3094 = vmatpush.bf16.msrb.mxu2 %v4463_v41  ;;  %v4380_v41 = vld [vmem:[%s6440_s14 + $0x158] sm:$0xf0] }
0x105b   :  { %v2674_v34 = vpop.xlane.xlu2 %2673 }
0x105c   :  { %v2675_v48 = vsub.f32 %v2669_v32, %v2674_v34  ;;  %v4864_v32 = vld [vmem:[%s6440_s14 + $0x1f4] sm:$0xf0] }
0x105e   :  { %v2676_v50 = vmul.f32 1.442695, %v2675_v48  ;;  %v4443_v48 = vor.u32 %v4860_v31, %v4442_v42 }
0x1060   :  { %5007 = vpow2.f32 %v2676_v50  ;;  %v4858_v50 = vld [vmem:[%s6440_s14 + $0x1cc] sm:$0xf] }
0x1063   :  { %v2535_v51 = vpop.xlane.xlu2 %2534 }
0x1064   :  { %5009 = vrcp.f32 %v2535_v51  ;;  %v4444_v51 = vld [vmem:[%s6440_s14 + $0x1d8] sm:$0xf0] }
0x1066   :  { %v5008_v47 = vpop.eup %5007 }
0x1067   :  { %v2678_v52 = vsel %vm880_vm10, %v5008_v47, 0.0 }
0x1068   :  { %2679 = vadd.xlane.f32.xlu1 %v2678_v52  ;;  %v4418_v52 = vld [vmem:[%s6440_s14 + $0x1a0] sm:$0xf] }
0x106a   :  { %v5010_v27 = vpop.eup %5009 }
0x106b   :  { %v2537_v53 = vmul.f32 %v5010_v27, %v5006_v38  ;;  %v4459_v38 = vor.u32 %v4864_v32, %v4458_v63  ;;  %v4855_v27 = vld [vmem:[%s6440_s14 + $0x1ac] sm:$0xf0]  ;;  %v4372_v63 = vld [vmem:[%s6440_s14 + $0x150] sm:$0xf0]  ;;  %v4378_v32 = vld [vmem:[%s6440_s14 + $0x148] sm:$0xf] }
0x106c   :  { %v4379_v3 = vor.u32 %v4844_v35, %v4378_v32  ;;  %v4888_v35 = vld [vmem:[%s6442_s16 + $0x1b8] sm:$0xff] }
0x106d   :  { %v2540_v54 = vpack.c.bf16 %v2537_v53, %v2537_v53  ;;  %v4853_v53 = vld [vmem:[%s6440_s14 + $0x1a4] sm:$0xf] }
0x106f   :  { %4249 = vmatmul.msk.bf16.vlgmr.msra.gmra.mxu1 %vm880_vm10, %v2540_v54  ;;  %v4419_v54 = vor.u32 %v4855_v27, %v4418_v52  ;;  %v4838_v52 = vld [vmem:[%s6440_s14 + $0x12c] sm:$0xf]  ;;  %v4364_v27 = vld [vmem:[%s6440_s14 + $0x138] sm:$0xf0] }
0x1070   :  { %3080 = vmatpush.bf16.msra.mxu1 %v4459_v38 }
0x1074   :  { %3081 = vmatpush.bf16.msra.mxu1 %v4443_v48  ;;  %v4362_v48 = vld [vmem:[%s6440_s14 + $0x128] sm:$0xf] }
0x1078   :  { %3082 = vmatpush.bf16.msra.mxu1 %v4427_v0  ;;  %v4340_v0 = vld [vmem:[%s6440_s14 + $0x110] sm:$0xf0] }
0x10db   :  { %v2680_v59 = vpop.xlane.xlu1 %2679 }
0x10dc   :  { %5011 = vrcp.f32 %v2680_v59  ;;  %v4423_v59 = vor.u32 %v4853_v53, %v4420_v24  ;;  %v4338_v24 = vld [vmem:[%s6440_s14 + $0x100] sm:$0xf] }
0x10dd   :  { %v4339_v56 = vor.u32 %v4835_v55, %v4338_v24  ;;  %v4874_v24 = vld [vmem:[%s6442_s16 + $0x148] sm:$0xff] }
0x10de   :  { %v4882_v55 = vld [vmem:[%s6442_s16 + $0x188] sm:$0xff] }
0x10e2   :  { %v5012_v2 = vpop.eup %5011 }
0x10e3   :  { %v2682_v60 = vmul.f32 %v5012_v2, %v5008_v47  ;;  %v4447_v47 = vor.u32 %v4858_v50, %v4444_v51  ;;  %v4854_v2 = vld [vmem:[%s6440_s14 + $0x1ac] sm:$0xf]  ;;  %v4840_v50 = vld [vmem:[%s6440_s14 + $0x134] sm:$0xf0] }
0x10e5   :  { %v2685_v6 = vpack.c.bf16 %v2682_v60, %v2682_v60  ;;  %3095 = vmatpush.bf16.msrb.mxu2 %v4447_v47  ;;  %v4431_v60 = vor.u32 %v4854_v2, %v4428_v23  ;;  %v4363_v47 = vor.u32 %v4840_v50, %v4362_v48  ;;  %v4346_v2 = vld [vmem:[%s6440_s14 + $0x108] sm:$0xf]  ;;  %v4884_v48 = vld [vmem:[%s6442_s16 + $0x198] sm:$0xff]  ;;  %v4869_v50 = vld [vmem:[%s6442_s16 + $0x120] sm:$0xff] }
0x10e7   :  { %4251 = vmatmul.msk.bf16.vlgmr.msrb.gmra.mxu1 %vm880_vm10, %v2685_v6  ;;  %v4402_v6 = vld [vmem:[%s6440_s14 + $0x180] sm:$0xf] }
0x10e9   :  { %3096 = vmatpush.bf16.msrb.mxu2 %v4431_v60  ;;  %v4836_v60 = vld [vmem:[%s6440_s14 + $0x114] sm:$0xf0] }
0x10ec   :  { %v2604_v8 = vpop.f32.mrf.mxu1 }
0x10ed   :  { %v2605_v13 = vadd.f32 %v2604_v8, %v2585_v21  ;;  %v4450_v21 = vld [vmem:[%s6440_s14 + $0x1e0] sm:$0xf]  ;;  %v4403_v8 = vor.u32 %v4851_v7, %v4402_v6  ;;  %v4834_v6 = vld [vmem:[%s6440_s14 + $0x10c] sm:$0xf]  ;;  %v4348_v7 = vld [vmem:[%s6440_s14 + $0x118] sm:$0xf0] }
0x10ee   :  { %v4451_v25 = vor.u32 %v4863_v5, %v4450_v21  ;;  %v4370_v5 = vld [vmem:[%s6440_s14 + $0x140] sm:$0xf] }
0x10ef   :  { %v2656_v14 = vadd.f32 %v2652_v20, %v2605_v13  ;;  %v4859_v20 = vld [vmem:[%s6440_s14 + $0x1cc] sm:$0xf0]  ;;  %v4852_v13 = vld [vmem:[%s6440_s14 + $0x194] sm:$0xf0]  ;;  %v4371_v30 = vor.u32 %v4843_v16, %v4370_v5 }
0x10f0   :  { %3052 = vmatpush.bf16.msra.mxu3 %v4451_v25  ;;  %v4435_v45 = vor.u32 %v4859_v20, %v4434_v12  ;;  %v4841_v25 = vld [vmem:[%s6440_s14 + $0x144] sm:$0xf]  ;;  %v4383_v12 = vor.u32 %v4842_v39, %v4380_v41  ;;  %v4896_v39 = vld [vmem:[%s6442_s16 + $0x1f8] sm:$0xff]  ;;  %v4878_v41 = vld [vmem:[%s6442_s16 + $0x168] sm:$0xff] }
0x10f1   :  { %v4375_v38 = vor.u32 %v4841_v25, %v4372_v63 }
0x10f4   :  { %v2606_v9 = vpop.f32.mrf.mxu1  ;;  %3053 = vmatpush.bf16.msra.mxu3 %v4435_v45  ;;  %v4839_v45 = vld [vmem:[%s6440_s14 + $0x12c] sm:$0xf0] }
0x10f5   :  { %v4404_v9 = vld [vmem:[%s6440_s14 + $0x190] sm:$0xf0] }
0x10f8   :  { %3054 = vmatpush.bf16.msra.mxu3 %v4419_v54  ;;  %v4367_v54 = vor.u32 %v4838_v52, %v4364_v27  ;;  %v4883_v52 = vld [vmem:[%s6442_s16 + $0x190] sm:$0xff]  ;;  %v6333_v27 = vld [vmem:[%s6441_s15 + $0x4] sm:$0xf] }
0x10fc   :  { %3055 = vmatpush.bf16.msra.mxu3 %v4403_v8  ;;  %v4351_v8 = vor.u32 %v4834_v6, %v4348_v7  ;;  %v4881_v6 = vld [vmem:[%s6442_s16 + $0x180] sm:$0xff] }
0x1164   :  { %v2701_v58 = vpop.f32.mrf.mxu1 }
0x1165   :  { %v2705_v26 = vadd.f32 %v2701_v58, %v2656_v14  ;;  %v4407_v14 = vor.u32 %v4849_v15, %v4404_v9  ;;  %v4411_v58 = vor.u32 %v4852_v13, %v4410_v44  ;;  %v4347_v15 = vor.u32 %v4836_v60, %v4346_v2  ;;  %v4891_v2 = vld [vmem:[%s6442_s16 + $0x1d0] sm:$0xff]  ;;  %v4873_v60 = vld [vmem:[%s6442_s16 + $0x140] sm:$0xff] }
0x1167   :  { %v2706_v17 = vpack.c.bf16 %v2705_v26, %v2510_v46  ;;  %v4436_v46 = vld [vmem:[%s6440_s14 + $0x1d0] sm:$0xf0]  ;;  %v4850_v26 = vld [vmem:[%s6440_s14 + $0x18c] sm:$0xf]  ;;  %3083 = vmatpush.bf16.msra.mxu1 %v4411_v58 }
0x1168   :  { %v4439_v34 = vor.u32 %v4857_v43, %v4436_v46  ;;  %v4354_v43 = vld [vmem:[%s6440_s14 + $0x120] sm:$0xf]  ;;  %v4837_v46 = vld [vmem:[%s6440_s14 + $0x124] sm:$0xf] }
0x1169   :  { %2785 = vmatmul.bf16.vlgmr.msra.gmra.mxu2 %v2706_v17  ;;  %v4412_v17 = vld [vmem:[%s6440_s14 + $0x198] sm:$0xf0]  ;;  %v4355_v31 = vor.u32 %v4839_v45, %v4354_v43  ;;  %v4895_v43 = vld [vmem:[%s6442_s16 + $0x1f0] sm:$0xff]  ;;  %v4877_v45 = vld [vmem:[%s6442_s16 + $0x160] sm:$0xff] }
0x116a   :  { %3067 = vmatpush.bf16.msrb.mxu0 %v4439_v34  ;;  %v4356_v34 = vld [vmem:[%s6440_s14 + $0x130] sm:$0xf0] }
0x116b   :  { %v4359_v51 = vor.u32 %v4837_v46, %v4356_v34  ;;  %v4885_v46 = vld [vmem:[%s6442_s16 + $0x1a0] sm:$0xff]  ;;  %v4876_v34 = vld [vmem:[%s6442_s16 + $0x158] sm:$0xff] }
0x116c   :  { %v2703_v18 = vpop.f32.mrf.mxu1 }
0x116d   :  { %v4415_v18 = vor.u32 %v4850_v26, %v4412_v17 }
0x116e   :  { %3068 = vmatpush.bf16.msrb.mxu0 %v4423_v59  ;;  %v4833_v59 = vld [vmem:[%s6440_s14 + $0x104] sm:$0xf] }
0x116f   :  { %3097 = vmatpush.bf16.msrb.mxu2 %v4415_v18  ;;  %v4343_v23 = vor.u32 %v4833_v59, %v4340_v0  ;;  %v2886_v59 = vperm.slane %v6333_v27, 2  ;;  %v4867_v0 = vld [vmem:[%s6442_s16 + $0x110] sm:$0xff] }
0x1172   :  { %3069 = vmatpush.bf16.msrb.mxu0 %v4407_v14 }
0x11ec   :  { %v2786_v37 = vpop.f32.mrf.mxu2 }
0x11ed   :  { %v2787_v10 = vadd.f32 %v4911_v36, %v2786_v37  ;;  %v4847_v37 = vld [vmem:[%s6440_s14 + $0x16c] sm:$0xf0] }
0x11ef   :  { %v6049_v1 = vadd.f32 %v2787_v10, %v5883_v49  ;;  %v4845_v10 = vld [vmem:[%s6440_s14 + $0x164] sm:$0xf] }
0x11f1   :  { %2797 = vadd.xlane.f32.xlu2 %v6049_v1 }
0x11f4   :  { %v2788_v11 = vpop.f32.mrf.mxu2 }
0x11f5   :  { %v2789_v22 = vadd.f32 %v4911_v36, %v2788_v11  ;;  %v4386_v36 = vld [vmem:[%s6440_s14 + $0x160] sm:$0xf] }
0x11f6   :  { %v4387_v11 = vor.u32 %v4847_v37, %v4386_v36 }
0x11f7   :  { %v6053_v40 = vadd.f32 %v2789_v22, %v5887_v57  ;;  %v4388_v22 = vld [vmem:[%s6440_s14 + $0x170] sm:$0xf0] }
0x11f8   :  { %3056 = vmatpush.bf16.msra.mxu3 %v4387_v11 }
0x11f9   :  { %2799 = vadd.xlane.f32.xlu0 %v6053_v40 }
0x11fc   :  { %3057 = vmatpush.bf16.msra.mxu3 %v4371_v30 }
0x1200   :  { %3058 = vmatpush.bf16.msra.mxu3 %v4355_v31  ;;  %v4894_v31 = vld [vmem:[%s6442_s16 + $0x1e8] sm:$0xff] }
0x1204   :  { %3059 = vmatpush.bf16.msra.mxu3 %v4339_v56  ;;  %v2885_v56 = vperm.slane %v6333_v27, 1 }
0x1264   :  { %v2798_v28 = vpop.xlane.xlu2 %2797 }
0x1265   :  { %v2801_v29 = vmul.f32 %v2798_v28, %v5363_v33  ;;  %v4394_v28 = vld [vmem:[%s6440_s14 + $0x168] sm:$0xf] }
0x1267   :  { %v6058_v61 = vsub.f32 %v6049_v1, %v2801_v29  ;;  %v4848_v29 = vld [vmem:[%s6440_s14 + $0x174] sm:$0xf0] }
0x1269   :  { %v2805_v4 = vmul.f32 %v6058_v61, %v6058_v61 }
0x126b   :  { %2807 = vadd.xlane.f32.xlu1 %v2805_v4  ;;  %v4391_v4 = vor.u32 %v4845_v10, %v4388_v22 }
0x126c   :  { %v2800_v49 = vpop.xlane.xlu0 %2799 }
0x126d   :  { %v2802_v19 = vmul.f32 %v2800_v49, %v5363_v33  ;;  %v4395_v49 = vor.u32 %v4848_v29, %v4394_v28  ;;  %3070 = vmatpush.bf16.msrb.mxu0 %v4391_v4  ;;  %v4912_v4 = vld [vmem:[%s6438_s12 + $0x1] ss:$0 sm:$0xff] }
0x126f   :  { %v6064_v62 = vsub.f32 %v6053_v40, %v2802_v19  ;;  %v4846_v19 = vld [vmem:[%s6440_s14 + $0x16c] sm:$0xf]  ;;  %3084 = vmatpush.bf16.msra.mxu1 %v4395_v49 }
0x1271   :  { %v2806_v57 = vmul.f32 %v6064_v62, %v6064_v62  ;;  %3071 = vmatpush.bf16.msrb.mxu0 %v4375_v38  ;;  %v4887_v38 = vld [vmem:[%s6442_s16 + $0x1b0] sm:$0xff] }
0x1273   :  { %2809 = vadd.xlane.f32.xlu2 %v2806_v57  ;;  %v4396_v57 = vld [vmem:[%s6440_s14 + $0x178] sm:$0xf0]  ;;  %3085 = vmatpush.bf16.msra.mxu1 %v4379_v3 }
0x1274   :  { %v4399_v21 = vor.u32 %v4846_v19, %v4396_v57  ;;  %v4872_v3 = vld [vmem:[%s6442_s16 + $0x138] sm:$0xff] }
0x1275   :  { %3072 = vmatpush.bf16.msrb.mxu0 %v4359_v51  ;;  %3446 = vmatpush.bf16.msrb.mxu3 %v4872_v3  ;;  %v4893_v51 = vld [vmem:[%s6442_s16 + $0x1e0] sm:$0xff] }
0x1276   :  { %3098 = vmatpush.bf16.msrb.mxu2 %v4399_v21  ;;  %v4913_v21 = vld [vmem:[%s6439_s13 + $0x1] ss:$0 sm:$0xff] }
0x1277   :  { %3086 = vmatpush.bf16.msra.mxu1 %v4363_v47  ;;  %v4875_v47 = vld [vmem:[%s6442_s16 + $0x150] sm:$0xff] }
0x1279   :  { %3073 = vmatpush.bf16.msrb.mxu0 %v4343_v23 }
0x127a   :  { %3099 = vmatpush.bf16.msrb.mxu2 %v4383_v12  ;;  %v4886_v12 = vld [vmem:[%s6442_s16 + $0x1a8] sm:$0xff] }
0x127b   :  { %3087 = vmatpush.bf16.msra.mxu1 %v4347_v15 }
0x127e   :  { %3100 = vmatpush.bf16.msrb.mxu2 %v4367_v54  ;;  %v4892_v54 = vld [vmem:[%s6442_s16 + $0x1d8] sm:$0xff] }
0x127f   :  { %3474 = vmatpush.bf16.msrb.mxu1 %v4888_v35 }
0x1282   :  { %3101 = vmatpush.bf16.msrb.mxu2 %v4351_v8 }
0x1283   :  { %3475 = vmatpush.bf16.msrb.mxu1 %v4887_v38 }
0x1286   :  { %3488 = vmatpush.bf16.msra.mxu2 %v4896_v39 }
0x1287   :  { %3476 = vmatpush.bf16.msrb.mxu1 %v4886_v12 }
0x128a   :  { %3489 = vmatpush.bf16.msra.mxu2 %v4895_v43 }
0x128b   :  { %3477 = vmatpush.bf16.msrb.mxu1 %v4885_v46 }
0x128e   :  { %3490 = vmatpush.bf16.msra.mxu2 %v4894_v31 }
0x128f   :  { %3478 = vmatpush.bf16.msrb.mxu1 %v4884_v48 }
0x1292   :  { %3491 = vmatpush.bf16.msra.mxu2 %v4893_v51 }
0x1293   :  { %3479 = vmatpush.bf16.msrb.mxu1 %v4883_v52 }
0x1296   :  { %3492 = vmatpush.bf16.msra.mxu2 %v4892_v54 }
0x1297   :  { %3480 = vmatpush.bf16.msrb.mxu1 %v4882_v55 }
0x129a   :  { %3493 = vmatpush.bf16.msra.mxu2 %v4891_v2 }
0x129b   :  { %3481 = vmatpush.bf16.msrb.mxu1 %v4881_v6 }
0x12de   :  { %v2808_v20 = vpop.xlane.xlu1 %2807 }
0x12df   :  { %v2811_v42 = vmul.f32 %v2808_v20, %v5363_v33  ;;  %v4871_v20 = vld [vmem:[%s6442_s16 + $0x130] sm:$0xff] }
0x12e0   :  { %3447 = vmatpush.bf16.msrb.mxu3 %v4871_v20 }
0x12e1   :  { %v2813_v53 = vadd.f32 1e-06, %v2811_v42  ;;  %v4870_v42 = vld [vmem:[%s6442_s16 + $0x128] sm:$0xff] }
0x12e3   :  { %5013 = vrsqrt.f32 %v2813_v53  ;;  %vm2821_vm9 = vweird.f32 %v2813_v53 }
0x12e4   :  { %3448 = vmatpush.bf16.msrb.mxu3 %v4870_v42 }
0x12e6   :  { %v2810_v9 = vpop.xlane.xlu2 %2809 }
0x12e7   :  { %v2812_v44 = vmul.f32 %v2810_v9, %v5363_v33  ;;  %v4866_v9 = vld [vmem:[%s6442_s16 + $0x108] sm:$0xff] }
0x12e8   :  { %3449 = vmatpush.bf16.msrb.mxu3 %v4869_v50 }
0x12e9   :  { %v5014_v13 = vpop.eup %5013  ;;  %v2814_v14 = vadd.f32 1e-06, %v2812_v44  ;;  %v4890_v44 = vld [vmem:[%s6442_s16 + $0x1c8] sm:$0xff] }
0x12ea   :  { %v2816_v58 = vmul.f32 %v5014_v13, %v2813_v53  ;;  %vm2822_vm8 = vweird.f32 %v5014_v13  ;;  %v4868_v53 = vld [vmem:[%s6442_s16 + $0x118] sm:$0xff]  ;;  %3494 = vmatpush.bf16.msra.mxu2 %v4890_v44 }
0x12eb   :  { %5015 = vrsqrt.f32 %v2814_v14  ;;  %vm2823_vm10 = vmor %vm2821_vm9, %vm2822_vm8  ;;  %vm2831_vm12 = vweird.f32 %v2814_v14 }
0x12ec   :  { %v2817_v26 = vmul.f32 %v5014_v13, %v2816_v58  ;;  %3450 = vmatpush.bf16.msrb.mxu3 %v4868_v53 }
0x12ee   :  { %v2818_v17 = vmul.f32 0.5, %v2817_v26  ;;  %v2887_v26 = vperm.slane %v6333_v27, 3 }
0x12f0   :  { %v2819_v18 = vsub.f32 1.5, %v2818_v17  ;;  %3451 = vmatpush.bf16.msrb.mxu3 %v4867_v0  ;;  %v4865_v17 = vld [vmem:[%s6442_s16 + $0x100] sm:$0xff] }
0x12f1   :  { %v5016_v36 = vpop.eup %5015 }
0x12f2   :  { %v2820_v37 = vmul.f32 %v5014_v13, %v2819_v18  ;;  %v2826_v10 = vmul.f32 %v5016_v36, %v2814_v14  ;;  %vm2832_vm11 = vweird.f32 %v5016_v36  ;;  %v2884_v14 = vperm.slane %v6333_v27, 0  ;;  %v4889_v18 = vld [vmem:[%s6442_s16 + $0x1c0] sm:$0xff] }
0x12f3   :  { %vm2833_vm13 = vmor %vm2831_vm12, %vm2832_vm11  ;;  %3495 = vmatpush.bf16.msra.mxu2 %v4889_v18 }
0x12f4   :  { %v2827_v11 = vmul.f32 %v5016_v36, %v2826_v10  ;;  %v2824_v22 = vsel %vm2823_vm10, %v5014_v13, %v2820_v37  ;;  %3452 = vmatpush.bf16.msrb.mxu3 %v4866_v9 }
0x12f5   :  { %v2835_v49 = vmul.f32 %v2824_v22, %v6058_v61  ;;  %v4880_v61 = vld [vmem:[%s6442_s16 + $0x178] sm:$0xff] }
0x12f6   :  { %v2828_v28 = vmul.f32 0.5, %v2827_v11  ;;  %3460 = vmatpush.bf16.msra.mxu0 %v4880_v61 }
0x12f7   :  { %v2840_v5 = vmul.f32 %v4912_v4, %v2835_v49 }
0x12f8   :  { %v2829_v29 = vsub.f32 1.5, %v2828_v28  ;;  %3453 = vmatpush.bf16.msrb.mxu3 %v4865_v17 }
0x12f9   :  { %v2845_v30 = vadd.f32 %v4913_v21, %v2840_v5 }
0x12fa   :  { %v2830_v19 = vmul.f32 %v5016_v36, %v2829_v29 }
0x12fc   :  { %v2834_v57 = vsel %vm2833_vm13, %v5016_v36, %v2830_v19 }
0x12fd   :  { %v2836_v16 = vmul.f32 %v2834_v57, %v6064_v62  ;;  %v4879_v62 = vld [vmem:[%s6442_s16 + $0x170] sm:$0xff] }
0x12fe   :  { %3461 = vmatpush.bf16.msra.mxu0 %v4879_v62 }
0x12ff   :  { %v2841_v25 = vmul.f32 %v4912_v4, %v2836_v16 }
0x1301   :  { %v2846_v63 = vadd.f32 %v4913_v21, %v2841_v25 }
0x1302   :  { %3462 = vmatpush.bf16.msra.mxu0 %v4878_v41 }
0x1303   :  { %v2847_v32 = vpack.c.bf16 %v2846_v63, %v2845_v30 }
0x1305   :  { %3060 = vmatmul.bf16.vlgmr.msra.gmra.mxu3 %v2847_v32  ;;  %3074 = vmatmul.bf16.vlgmr.msrb.gmra.mxu0 %v2847_v32 }
0x1306   :  { %3088 = vmatmul.bf16.vlgmr.msra.gmra.mxu1 %v2847_v32  ;;  %3102 = vmatmul.bf16.vlgmr.msrb.gmra.mxu2 %v2847_v32 }
0x1307   :  { %3463 = vmatpush.bf16.msra.mxu0 %v4877_v45 }
0x130b   :  { %3464 = vmatpush.bf16.msra.mxu0 %v4876_v34 }
0x130f   :  { %3465 = vmatpush.bf16.msra.mxu0 %v4875_v47 }
0x1313   :  { %3466 = vmatpush.bf16.msra.mxu0 %v4874_v24 }
0x1317   :  { %3467 = vmatpush.bf16.msra.mxu0 %v4873_v60 }
0x1382   :  { %v3075_v23 = vpop.f32.mrf.mxu0 }
0x1383   :  { %v6361_v7 = vadd.f32 %v3075_v23, %v2885_v56  ;;  %v3089_v15 = vpop.f32.mrf.mxu1 }
0x1384   :  { %v6363_v8 = vadd.f32 %v3089_v15, %v2886_v59 }
0x1385   :  { %v3117_v13 = vmul.f32 0.044715, %v6361_v7 }
0x1386   :  { %v3118_v58 = vmul.f32 0.044715, %v6363_v8 }
0x1387   :  { %v3125_v36 = vmul.f32 %v3117_v13, %v6361_v7 }
0x1388   :  { %v3126_v37 = vmul.f32 %v3118_v58, %v6363_v8  ;;  %v3061_v10 = vpop.f32.mrf.mxu3 }
0x1389   :  { %v3133_v11 = vmul.f32 %v3125_v36, %v6361_v7  ;;  %v6384_v22 = vadd.f32 %v3061_v10, %v2884_v14  ;;  %v3103_v28 = vpop.f32.mrf.mxu2 }
0x138a   :  { %v3134_v29 = vmul.f32 %v3126_v37, %v6363_v8  ;;  %v6387_v4 = vadd.f32 %v3103_v28, %v2887_v26  ;;  %v3077_v49 = vpop.f32.mrf.mxu0  ;;  %v3110_v37 = vmul.f32 0.5, %v6363_v8 }
0x138b   :  { %v3141_v19 = vadd.f32 %v3133_v11, %v6361_v7  ;;  %v3116_v57 = vmul.f32 0.044715, %v6384_v22  ;;  %v3078_v21 = vadd.f32 %v3077_v49, %v2885_v56  ;;  %v3091_v5 = vpop.f32.mrf.mxu1 }
0x138c   :  { %v3142_v16 = vadd.f32 %v3134_v29, %v6363_v8  ;;  %v3119_v25 = vmul.f32 0.044715, %v6387_v4  ;;  %v3092_v30 = vadd.f32 %v3091_v5, %v2886_v59  ;;  %v3111_v8 = vmul.f32 0.5, %v6387_v4 }
0x138d   :  { %v3124_v63 = vmul.f32 %v3116_v57, %v6384_v22  ;;  %v3121_v32 = vmul.f32 0.044715, %v3078_v21  ;;  %v3149_v62 = vmul.f32 0.7978846, %v3141_v19  ;;  %v3113_v17 = vmul.f32 0.5, %v3078_v21 }
0x138e   :  { %v3127_v61 = vmul.f32 %v3119_v25, %v6387_v4  ;;  %v3122_v35 = vmul.f32 0.044715, %v3092_v30  ;;  %v3150_v39 = vmul.f32 0.7978846, %v3142_v16  ;;  %v3114_v10 = vmul.f32 0.5, %v3092_v30 }
0x138f   :  { %v3132_v38 = vmul.f32 %v3124_v63, %v6384_v22  ;;  %v3129_v3 = vmul.f32 %v3121_v32, %v3078_v21  ;;  %5017 = vtanh.f32 %v3149_v62 }
0x1390   :  { %v3135_v41 = vmul.f32 %v3127_v61, %v6387_v4  ;;  %v3130_v12 = vmul.f32 %v3122_v35, %v3092_v30  ;;  %v3063_v20 = vpop.f32.mrf.mxu3  ;;  %5019 = vtanh.f32 %v3150_v39 }
0x1391   :  { %v3140_v43 = vadd.f32 %v3132_v38, %v6384_v22  ;;  %v3137_v45 = vmul.f32 %v3129_v3, %v3078_v21  ;;  %v3064_v46 = vadd.f32 %v3063_v20, %v2884_v14  ;;  %v3105_v42 = vpop.f32.mrf.mxu2 }
0x1392   :  { %v3143_v31 = vadd.f32 %v3135_v41, %v6387_v4  ;;  %v3138_v34 = vmul.f32 %v3130_v12, %v3092_v30  ;;  %v3106_v48 = vadd.f32 %v3105_v42, %v2887_v26  ;;  %v3109_v26 = vmul.f32 0.5, %v6361_v7 }
0x1393   :  { %v3145_v50 = vadd.f32 %v3137_v45, %v3078_v21  ;;  %v3120_v51 = vmul.f32 0.044715, %v3064_v46  ;;  %v3148_v27 = vmul.f32 0.7978846, %v3140_v43  ;;  %v3108_v7 = vmul.f32 0.5, %v6384_v22 }
0x1394   :  { %v3146_v47 = vadd.f32 %v3138_v34, %v3092_v30  ;;  %v3123_v52 = vmul.f32 0.044715, %v3106_v48  ;;  %v3151_v24 = vmul.f32 0.7978846, %v3143_v31  ;;  %v3112_v21 = vmul.f32 0.5, %v3064_v46 }
0x1395   :  { %v3153_v53 = vmul.f32 0.7978846, %v3145_v50  ;;  %v3128_v54 = vmul.f32 %v3120_v51, %v3064_v46  ;;  %v5018_v2 = vpop.eup %5017  ;;  %v3115_v30 = vmul.f32 0.5, %v3106_v48  ;;  %v4914_v22 = vld [vmem:[%s6443_s17 + $0x1] ss:$0 sm:$0xff] }
0x1396   :  { %v3154_v55 = vmul.f32 0.7978846, %v3146_v47  ;;  %v3131_v56 = vmul.f32 %v3123_v52, %v3106_v48  ;;  %v5020_v60 = vpop.eup %5019  ;;  %v3165_v9 = vadd.f32 1.0, %v5018_v2 }
0x1397   :  { %5021 = vtanh.f32 %v3153_v53  ;;  %v3136_v59 = vmul.f32 %v3128_v54, %v3064_v46  ;;  %v3166_v14 = vadd.f32 1.0, %v5020_v60 }
0x1398   :  { %5023 = vtanh.f32 %v3154_v55  ;;  %v3139_v0 = vmul.f32 %v3131_v56, %v3106_v48  ;;  %v3173_v29 = vmul.f32 %v3165_v9, %v3109_v26 }
0x1399   :  { %5025 = vtanh.f32 %v3148_v27  ;;  %v3144_v23 = vadd.f32 %v3136_v59, %v3064_v46  ;;  %v3174_v19 = vmul.f32 %v3166_v14, %v3110_v37 }
0x139a   :  { %5027 = vtanh.f32 %v3151_v24  ;;  %v3147_v6 = vadd.f32 %v3139_v0, %v3106_v48 }
0x139b   :  { %v3152_v15 = vmul.f32 0.7978846, %v3144_v23 }
0x139c   :  { %v3155_v44 = vmul.f32 0.7978846, %v3147_v6 }
0x139d   :  { %v5022_v13 = vpop.eup %5021  ;;  %5029 = vtanh.f32 %v3152_v15 }
0x139e   :  { %v5024_v58 = vpop.eup %5023  ;;  %v3169_v18 = vadd.f32 1.0, %v5022_v13  ;;  %5031 = vtanh.f32 %v3155_v44 }
0x139f   :  { %v5026_v36 = vpop.eup %5025  ;;  %v3170_v11 = vadd.f32 1.0, %v5024_v58 }
0x13a0   :  { %v5028_v28 = vpop.eup %5027  ;;  %v3177_v49 = vmul.f32 %v3169_v18, %v3113_v17  ;;  %v3164_v5 = vadd.f32 1.0, %v5026_v36  ;;  %v4915_v36 = vld [vmem:[%s6444_s18] ss:$0 sm:$0xff] }
0x13a1   :  { %v3178_v57 = vmul.f32 %v3170_v11, %v3114_v10  ;;  %v3167_v63 = vadd.f32 1.0, %v5028_v28  ;;  %v4917_v28 = vld [vmem:[%s6446_s20] ss:$0 sm:$0xff] }
0x13a2   :  { %v3181_v16 = vpack.c.bf16 %v3177_v49, %v3173_v29  ;;  %v3172_v38 = vmul.f32 %v3164_v5, %v3108_v7 }
0x13a3   :  { %v5030_v25 = vpop.eup %5029  ;;  %v3182_v32 = vpack.c.bf16 %v3178_v57, %v3174_v19  ;;  %v3175_v39 = vmul.f32 %v3167_v63, %v3111_v8  ;;  %v4918_v57 = vld [vmem:[#allocation2] ss:$0 sm:$0xff] }
0x13a4   :  { %v5032_v61 = vpop.eup %5031  ;;  %v3168_v35 = vadd.f32 1.0, %v5030_v25  ;;  %3468 = vmatmul.bf16.vlgmr.msra.gmra.mxu0 %v3181_v16 }
0x13a5   :  { %v3171_v62 = vadd.f32 1.0, %v5032_v61  ;;  %3482 = vmatmul.bf16.vlgmr.msrb.gmra.mxu1 %v3182_v32 }
0x13a6   :  { %v3176_v3 = vmul.f32 %v3168_v35, %v3112_v21 }
0x13a7   :  { %v3179_v41 = vmul.f32 %v3171_v62, %v3115_v30 }
0x13a8   :  { %v3180_v12 = vpack.c.bf16 %v3176_v3, %v3172_v38 }
0x13a9   :  { %v3183_v20 = vpack.c.bf16 %v3179_v41, %v3175_v39 }
0x13aa   :  { %3454 = vmatmul.bf16.vlgmr.msrb.gmra.mxu3 %v3180_v12 }
0x13ab   :  { %3496 = vmatmul.bf16.vlgmr.msra.gmra.mxu2 %v3183_v20 }
0x1421   :  { %v3469_v43 = vpop.f32.mrf.mxu0 }
0x1422   :  { %v3483_v46 = vpop.f32.mrf.mxu1 }
0x1429   :  { %v3471_v50 = vpop.f32.mrf.mxu0 }
0x142a   :  { %v3485_v52 = vpop.f32.mrf.mxu1 }
0x142d   :  { %v3455_v45 = vpop.f32.mrf.mxu3 }
0x142e   :  { %v3456_v42 = vadd.f32 %v4914_v22, %v3455_v45  ;;  %v3497_v4 = vpop.f32.mrf.mxu2 }
0x1430   :  { %v3470_v31 = vadd.f32 %v3469_v43, %v3456_v42 }
0x1432   :  { %v3484_v51 = vadd.f32 %v3483_v46, %v3470_v31 }
0x1434   :  { %v3498_v54 = vadd.f32 %v3497_v4, %v3484_v51 }
0x1435   :  { %v3457_v34 = vpop.f32.mrf.mxu3 }
0x1436   :  { %v3458_v48 = vadd.f32 %v4914_v22, %v3457_v34  ;;  %v3499_v53 = vpop.f32.mrf.mxu2  ;;  %v3502_v56 = vadd.f32 %v3498_v54, %v6049_v1 }
0x1438   :  { %v3472_v47 = vadd.f32 %v3471_v50, %v3458_v48 }
0x143a   :  { %v3486_v27 = vadd.f32 %v3485_v52, %v3472_v47 }
0x143c   :  { %v3500_v24 = vadd.f32 %v3499_v53, %v3486_v27 }
0x143e   :  { %v3503_v55 = vadd.f32 %v3500_v24, %v6053_v40 }
0x1440   :  { %v3505_v59 = vrot.slane %v3503_v55, 7 }
0x1442   :  { %v3507_v0 = vsel %vm576_vm0, %v3502_v56, %v3505_v59 }
0x1443   :  { %v3511_v2 = vsel %vm3510_vm14, %v3507_v0, 0.0 }
0x1444   :  { %3512 = vadd.xlane.f32.xlu0 %v3511_v2 }
0x14b7   :  { %v3513_v23 = vpop.xlane.xlu0 %3512 }
0x14b8   :  { %v3514_v60 = vmul.f32 %v3513_v23, %v5363_v33 }
0x14ba   :  { %v3515_v6 = vsub.f32 %v3507_v0, %v3514_v60 }
0x14bc   :  { %v3516_v15 = vmul.f32 %v3515_v6, %v3515_v6 }
0x14be   :  { %v3517_v9 = vsel %vm3510_vm14, %v3516_v15, 0.0 }
0x14bf   :  { %3518 = vadd.xlane.f32.xlu1 %v3517_v9 }
0x1532   :  { %v3519_v44 = vpop.xlane.xlu1 %3518 }
0x1533   :  { %v3520_v40 = vmul.f32 %v3519_v44, %v5363_v33  ;;  %v4916_v33 = vld [vmem:[%s6445_s19] ss:$0 sm:$0xff] }
0x1535   :  { %v3521_v13 = vadd.f32 1e-06, %v3520_v40 }
0x1537   :  { %5033 = vrsqrt.f32 %v3521_v13  ;;  %vm3528_vm15 = vweird.f32 %v3521_v13 }
0x153d   :  { %v5034_v1 = vpop.eup %5033 }
0x153e   :  { %v3523_v14 = vmul.f32 %v5034_v1, %v3521_v13  ;;  %vm3529_vm0 = vweird.f32 %v5034_v1 }
0x153f   :  { %vm3530_vm1 = vmor %vm3528_vm15, %vm3529_vm0 }
0x1540   :  { %v3524_v58 = vmul.f32 %v5034_v1, %v3523_v14 }
0x1542   :  { %v3525_v26 = vmul.f32 0.5, %v3524_v58 }
0x1544   :  { %v3526_v17 = vsub.f32 1.5, %v3525_v26 }
0x1546   :  { %v3527_v18 = vmul.f32 %v5034_v1, %v3526_v17 }
0x1548   :  { %v3531_v37 = vsel %vm3530_vm1, %v5034_v1, %v3527_v18 }
0x1549   :  { %v3532_v10 = vmul.f32 %v3531_v37, %v3515_v6 }
0x154b   :  { %v3536_v11 = vmul.f32 %v4915_v36, %v3532_v10 }
0x154d   :  { %v3540_v29 = vadd.f32 %v4916_v33, %v3536_v11 }
0x154f   :  { %v3545_v49 = vmul.f32 %v4917_v28, %v3540_v29 }
0x1551   :  { %v3546_v19 = vsel %vm3510_vm14, %v3545_v49, 0.0 }
0x1552   :  { %3547 = vadd.xlane.f32.xlu2 %v3546_v19 }
0x15c5   :  { %v3548_v5 = vpop.xlane.xlu2 %3547 }
0x15c6   :  { %v3553_v16 = vadd.f32 %v4918_v57, %v3548_v5 }
0x15c8   :  { %3555 = vst.msk [vmem:[%s6448_s22] sm:$0x3] %vm3554_vm2, %v3553_v16 }
0x15c9   :  { %3560 = vsyncpa [#allocation4], 1 }

</bundles_post_ra>
